<compile_context>
chip_gen: v6e
topology: v6e:2x2x1
jax: 0.10.0
libtpu: 0.0.40
codegen_flags: <defaults>
</compile_context>

<pallas_src>
import jax
import jax.numpy as jnp
from jax.experimental import pallas as pl
from jax.experimental.pallas import tpu as pltpu


# ----------------------------------------------------------------------------
# Fused kernel: [conv3x3 + BN + ReLU] x 2, intermediate kept in VMEM
# ----------------------------------------------------------------------------
def _fused_encoder_kernel(x_ref, w1_ref, b1_ref, w2_ref, b2_ref, out_ref,
                          xpad_s, hpad_s, p1_s, p2_s):
    # x_ref  : [1, H, W, Cin]    f32  (one batch element, unpadded NHWC)
    # w1_ref : [9*Cin, Hid]      bf16 (im2col layout, BN scale folded in)
    # b1_ref : [1, Hid]          f32  (folded BN bias)
    # w2_ref : [9*Hid, CoutP]    bf16 (CoutP = Cout padded up to 128 lanes)
    # b2_ref : [1, CoutP]        f32
    # out_ref: [1, H*W, CoutP]   f32  (lane-dense output slab)
    # xpad_s : [H+2, W+2, Cin]   f32  scratch: zero-padded input
    # hpad_s : [H+2, W+2, Hid]   f32  scratch: zero-padded intermediate
    # p1_s   : [H*W, 9*Cin]      bf16 scratch: im2col patches, layer 1
    # p2_s   : [H*W, 9*Hid]      bf16 scratch: im2col patches, layer 2
    H = x_ref.shape[1]
    W = x_ref.shape[2]
    Cin = x_ref.shape[3]
    Hid = w1_ref.shape[1]

    # ---- in-kernel zero padding of the input (no host-side jnp.pad) --------
    xpad_s[...] = jnp.zeros_like(xpad_s)
    xpad_s[1:H + 1, 1:W + 1, :] = x_ref[0]

    # ---- layer 1: im2col -> single K=9*Cin bf16 matmul, +bias, ReLU --------
    for k in range(9):                       # static unroll: 9 shifted windows
        dy, dx = k // 3, k % 3
        p1_s[:, k * Cin:(k + 1) * Cin] = (
            xpad_s[dy:dy + H, dx:dx + W, :]
            .reshape(H * W, Cin).astype(p1_s.dtype))
    a1 = jnp.dot(p1_s[...], w1_ref[...], preferred_element_type=jnp.float32)
    h = jnp.maximum(a1 + b1_ref[...], 0.0)                   # [H*W, Hid] f32

    # ---- intermediate stays in VMEM: pad it for the second conv ------------
    hpad_s[...] = jnp.zeros_like(hpad_s)
    hpad_s[1:H + 1, 1:W + 1, :] = h.reshape(H, W, Hid)

    # ---- layer 2: im2col -> single K=9*Hid bf16 matmul, +bias, ReLU --------
    for k in range(9):
        dy, dx = k // 3, k % 3
        p2_s[:, k * Hid:(k + 1) * Hid] = (
            hpad_s[dy:dy + H, dx:dx + W, :]
            .reshape(H * W, Hid).astype(p2_s.dtype))
    a2 = jnp.dot(p2_s[...], w2_ref[...], preferred_element_type=jnp.float32)
    out_ref[0] = jnp.maximum(a2 + b2_ref[...], 0.0).astype(out_ref.dtype)


def fused_double_conv(x_nhwc, w1_mat, b1, w2_mat, b2):
    """x_nhwc: [N,H,W,Cin] f32; w1_mat: [9*Cin,Hid] bf16; w2_mat: [9*Hid,CoutP] bf16."""
    N, H, W, Cin = x_nhwc.shape
    Hid = w1_mat.shape[1]
    CoutP = w2_mat.shape[1]

    return pl.pallas_call(
        _fused_encoder_kernel,
        out_shape=jax.ShapeDtypeStruct((N, H * W, CoutP), jnp.float32),
        grid=(N,),
        in_specs=[
            pl.BlockSpec((1, H, W, Cin), lambda n: (n, 0, 0, 0)),
            pl.BlockSpec((9 * Cin, Hid), lambda n: (0, 0)),
            pl.BlockSpec((1, Hid), lambda n: (0, 0)),
            pl.BlockSpec((9 * Hid, CoutP), lambda n: (0, 0)),
            pl.BlockSpec((1, CoutP), lambda n: (0, 0)),
        ],
        out_specs=pl.BlockSpec((1, H * W, CoutP), lambda n: (n, 0, 0)),
        scratch_shapes=[
            pltpu.VMEM((H + 2, W + 2, Cin), jnp.float32),
            pltpu.VMEM((H + 2, W + 2, Hid), jnp.float32),
            pltpu.VMEM((H * W, 9 * Cin), jnp.bfloat16),
            pltpu.VMEM((H * W, 9 * Hid), jnp.bfloat16),
        ],
        compiler_params=pltpu.CompilerParams(
            dimension_semantics=("parallel",)),   # feeds both TCs on v7x (N>=2)
    )(x_nhwc, w1_mat, b1, w2_mat, b2)


# ----------------------------------------------------------------------------
# BaseEncoder in JAX/Pallas
# ----------------------------------------------------------------------------
_INPUT_CH = {'norm_ver': 6, 'norm': 3, 'tex_norm': 6, 'tex_ver': 6, 'all': 9}
_BN_EPS = 1e-5


def _round_up(x, m):
    return (x + m - 1) // m * m


def _fold_bn(gamma, beta, mean, var):
    scale = gamma / jnp.sqrt(var + _BN_EPS)
    bias = beta - mean * scale
    return scale, bias                      # both [C]


def _to_im2col_matrix(w_oihw, scale):
    """(Cout, Cin, 3, 3) * scale[o] -> (9*Cin, Cout), row index = (ky*3+kx)*Cin + i."""
    cout, cin = w_oihw.shape[0], w_oihw.shape[1]
    w = jnp.transpose(w_oihw, (2, 3, 1, 0)).reshape(9 * cin, cout)
    return w * scale[None, :]


class BaseEncoderPallas:
    def __init__(self, hidden_channels: int, out_channels: int,
                 input_maps: str = 'all', key=None):
        if input_maps not in _INPUT_CH:
            raise ValueError(f'Input map selection ({input_maps}) not supported!')
        self.input_maps = input_maps
        cin = _INPUT_CH[input_maps]
        self.enc_in_channels = cin
        self.hidden_channels = hidden_channels
        self.out_channels = out_channels
        if key is None:
            key = jax.random.PRNGKey(0)
        ks = jax.random.split(key, 10)

        # Deterministic synthetic parameters (PyTorch OIHW layout for convs).
        w1 = 0.1 * jax.random.normal(ks[0], (hidden_channels, cin, 3, 3), jnp.float32)
        g1 = 1.0 + 0.1 * jax.random.normal(ks[1], (hidden_channels,), jnp.float32)
        b1 = 0.1 * jax.random.normal(ks[2], (hidden_channels,), jnp.float32)
        m1 = 0.1 * jax.random.normal(ks[3], (hidden_channels,), jnp.float32)
        v1 = jax.random.uniform(ks[4], (hidden_channels,), jnp.float32, 0.5, 1.5)

        w2 = 0.1 * jax.random.normal(ks[5], (out_channels, hidden_channels, 3, 3), jnp.float32)
        g2 = 1.0 + 0.1 * jax.random.normal(ks[6], (out_channels,), jnp.float32)
        b2 = 0.1 * jax.random.normal(ks[7], (out_channels,), jnp.float32)
        m2 = 0.1 * jax.random.normal(ks[8], (out_channels,), jnp.float32)
        v2 = jax.random.uniform(ks[9], (out_channels,), jnp.float32, 0.5, 1.5)

        self.w1_oihw, self.w2_oihw = w1, w2
        s1, bias1 = _fold_bn(g1, b1, m1, v1)
        s2, bias2 = _fold_bn(g2, b2, m2, v2)
        self.s1, self.bias1 = s1, bias1
        self.s2, self.bias2 = s2, bias2

        # Kernel-side parameters: BN scale folded into weights, bf16 im2col matrices,
        # second-layer output channels zero-padded to a lane-dense width (128 multiple).
        coutp = _round_up(out_channels, 128)
        self.cout_padded = coutp
        self.w1_mat = _to_im2col_matrix(w1, s1).astype(jnp.bfloat16)          # [9*Cin, Hid]
        self.b1_row = bias1.reshape(1, -1).astype(jnp.float32)                # [1, Hid]
        w2m = _to_im2col_matrix(w2, s2)                                       # [9*Hid, Cout]
        self.w2_mat = jnp.pad(w2m, ((0, 0), (0, coutp - out_channels))).astype(jnp.bfloat16)
        self.b2_row = jnp.pad(bias2.reshape(1, -1),
                              ((0, 0), (0, coutp - out_channels))).astype(jnp.float32)

    def _select(self, x_nchw):
        if self.input_maps == 'norm_ver':
            return x_nchw[:, 3:, ...]
        elif self.input_maps == 'norm':
            return x_nchw[:, 3:6, ...]
        elif self.input_maps == 'tex_norm':
            return x_nchw[:, :6, ...]
        elif self.input_maps == 'tex_ver':
            return jnp.concatenate((x_nchw[:, :3, ...], x_nchw[:, 6:, ...]), axis=1)
        return x_nchw

    def __call__(self, x_nchw):
        x_in = self._select(x_nchw)
        x_nhwc = jnp.transpose(x_in, (0, 2, 3, 1)).astype(jnp.float32)   # NCHW -> NHWC
        N, H, W, _ = x_nhwc.shape
        out = fused_double_conv(x_nhwc, self.w1_mat, self.b1_row,
                                self.w2_mat, self.b2_row)                # [N, H*W, CoutP]
        out = out[:, :, :self.out_channels].reshape(N, H, W, self.out_channels)
        return jnp.transpose(out, (0, 3, 1, 2))                          # NHWC -> NCHW

    # Pure-JAX reference (NCHW, f32), for correctness checking only.
    def reference(self, x_nchw):
        x_in = self._select(x_nchw)

        def conv(x, w):
            return jax.lax.conv_general_dilated(
                x, w, window_strides=(1, 1), padding=((1, 1), (1, 1)),
                dimension_numbers=('NCHW', 'OIHW', 'NCHW'))

        s1 = self.s1.reshape(1, -1, 1, 1)
        bi1 = self.bias1.reshape(1, -1, 1, 1)
        s2 = self.s2.reshape(1, -1, 1, 1)
        bi2 = self.bias2.reshape(1, -1, 1, 1)
        h = jnp.maximum(conv(x_in, self.w1_oihw) * s1 + bi1, 0.0)
        return jnp.maximum(conv(h, self.w2_oihw) * s2 + bi2, 0.0)


if __name__ == "__main__":
    key = jax.random.PRNGKey(0)
    k_x, k_p = jax.random.split(key)

    N, C, H, W = 2, 9, 16, 16            # 'all' -> 9 input channels
    hidden_channels, out_channels = 32, 16
    x = jax.random.normal(k_x, (N, C, H, W), jnp.float32)

    enc = BaseEncoderPallas(hidden_channels, out_channels, input_maps='all', key=k_p)

    out = jax.block_until_ready(enc(x))
    assert out.shape == (N, out_channels, H, W), out.shape

    ref = jax.block_until_ready(enc.reference(x))
    # bf16 MXU operands (f32 accumulation) -> relaxed tolerance vs. the f32 reference.
    assert jnp.allclose(out, ref, atol=1e-1, rtol=1e-1), (
        float(jnp.max(jnp.abs(out - ref))))

    print("KERNEL_OK")
</pallas_src>

<mosaic_0001>
module attributes {stable_mosaic.version = 11 : i64} {
  func.func @_fused_encoder_kernel(%arg0: i32, %arg1: memref<1x16x16x9xf32, #tpu.memory_space<vmem>>, %arg2: memref<81x32xbf16, #tpu.memory_space<vmem>>, %arg3: memref<1x32xf32, #tpu.memory_space<vmem>>, %arg4: memref<288x128xbf16, #tpu.memory_space<vmem>>, %arg5: memref<1x128xf32, #tpu.memory_space<vmem>>, %arg6: memref<1x256x128xf32, #tpu.memory_space<vmem>>, %arg7: memref<18x18x9xf32, #tpu.memory_space<vmem>>, %arg8: memref<18x18x32xf32, #tpu.memory_space<vmem>>, %arg9: memref<256x81xbf16, #tpu.memory_space<vmem>>, %arg10: memref<256x288xbf16, #tpu.memory_space<vmem>>) attributes {dimension_semantics = [#tpu.dimension_semantics<parallel>], iteration_bounds = array<i64: 2>, scalar_prefetch = 0 : i64, scratch_operands = 4 : i64, tpu.core_type = #tpu.core_type<tc>, window_params = [{transform_indices = @transform_0, window_bounds = array<i64: 1, 16, 16, 9>}, {pipeline_mode = #tpu.pipeline_mode<synchronous>, transform_indices = @transform_1, window_bounds = array<i64: 81, 32>}, {pipeline_mode = #tpu.pipeline_mode<synchronous>, transform_indices = @transform_2, window_bounds = array<i64: 1, 32>}, {pipeline_mode = #tpu.pipeline_mode<synchronous>, transform_indices = @transform_3, window_bounds = array<i64: 288, 128>}, {pipeline_mode = #tpu.pipeline_mode<synchronous>, transform_indices = @transform_4, window_bounds = array<i64: 1, 128>}, {transform_indices = @transform_5, window_bounds = array<i64: 1, 256, 128>}]} {
    %cst = arith.constant 0.000000e+00 : f32
    %0 = vector.broadcast %cst : f32 to vector<18x18x9xf32>
    %c0 = arith.constant 0 : index
    %c0_0 = arith.constant 0 : index
    %c0_1 = arith.constant 0 : index
    %1 = vector.load %arg7[%c0, %c0_0, %c0_1] : memref<18x18x9xf32, #tpu.memory_space<vmem>>, vector<18x18x9xf32>
    tpu.vector_store %arg7[%c0, %c0_0, %c0_1], %0 {strides = array<i32>} : memref<18x18x9xf32, #tpu.memory_space<vmem>>, vector<18x18x9xf32>,
    %c0_2 = arith.constant 0 : index
    %c0_3 = arith.constant 0 : index
    %c0_4 = arith.constant 0 : index
    %c0_5 = arith.constant 0 : index
    %2 = vector.load %arg1[%c0_2, %c0_3, %c0_4, %c0_5] : memref<1x16x16x9xf32, #tpu.memory_space<vmem>>, vector<1x16x16x9xf32>
    %3 = vector.shape_cast %2 : vector<1x16x16x9xf32> to vector<16x16x9xf32>
    %c1 = arith.constant 1 : index
    %c1_6 = arith.constant 1 : index
    %c0_7 = arith.constant 0 : index
    %4 = vector.load %arg7[%c1, %c1_6, %c0_7] : memref<18x18x9xf32, #tpu.memory_space<vmem>>, vector<16x16x9xf32>
    tpu.vector_store %arg7[%c1, %c1_6, %c0_7], %3 {strides = array<i32>} : memref<18x18x9xf32, #tpu.memory_space<vmem>>, vector<16x16x9xf32>,
    %c0_8 = arith.constant 0 : index
    %c0_9 = arith.constant 0 : index
    %c0_10 = arith.constant 0 : index
    %5 = vector.load %arg7[%c0_8, %c0_9, %c0_10] : memref<18x18x9xf32, #tpu.memory_space<vmem>>, vector<16x16x9xf32>
    %6 = vector.shape_cast %5 : vector<16x16x9xf32> to vector<256x9xf32>
    %7 = arith.truncf %6 : vector<256x9xf32> to vector<256x9xbf16>
    %c0_11 = arith.constant 0 : index
    %c0_12 = arith.constant 0 : index
    %8 = vector.load %arg9[%c0_11, %c0_12] : memref<256x81xbf16, #tpu.memory_space<vmem>>, vector<256x9xbf16>
    tpu.vector_store %arg9[%c0_11, %c0_12], %7 {strides = array<i32>} : memref<256x81xbf16, #tpu.memory_space<vmem>>, vector<256x9xbf16>,
    %c0_13 = arith.constant 0 : index
    %c1_14 = arith.constant 1 : index
    %c0_15 = arith.constant 0 : index
    %9 = vector.load %arg7[%c0_13, %c1_14, %c0_15] : memref<18x18x9xf32, #tpu.memory_space<vmem>>, vector<16x16x9xf32>
    %10 = vector.shape_cast %9 : vector<16x16x9xf32> to vector<256x9xf32>
    %11 = arith.truncf %10 : vector<256x9xf32> to vector<256x9xbf16>
    %c0_16 = arith.constant 0 : index
    %c9 = arith.constant 9 : index
    %12 = vector.load %arg9[%c0_16, %c9] : memref<256x81xbf16, #tpu.memory_space<vmem>>, vector<256x9xbf16>
    tpu.vector_store %arg9[%c0_16, %c9], %11 {strides = array<i32>} : memref<256x81xbf16, #tpu.memory_space<vmem>>, vector<256x9xbf16>,
    %c0_17 = arith.constant 0 : index
    %c2 = arith.constant 2 : index
    %c0_18 = arith.constant 0 : index
    %13 = vector.load %arg7[%c0_17, %c2, %c0_18] : memref<18x18x9xf32, #tpu.memory_space<vmem>>, vector<16x16x9xf32>
    %14 = vector.shape_cast %13 : vector<16x16x9xf32> to vector<256x9xf32>
    %15 = arith.truncf %14 : vector<256x9xf32> to vector<256x9xbf16>
    %c0_19 = arith.constant 0 : index
    %c18 = arith.constant 18 : index
    %16 = vector.load %arg9[%c0_19, %c18] : memref<256x81xbf16, #tpu.memory_space<vmem>>, vector<256x9xbf16>
    tpu.vector_store %arg9[%c0_19, %c18], %15 {strides = array<i32>} : memref<256x81xbf16, #tpu.memory_space<vmem>>, vector<256x9xbf16>,
    %c1_20 = arith.constant 1 : index
    %c0_21 = arith.constant 0 : index
    %c0_22 = arith.constant 0 : index
    %17 = vector.load %arg7[%c1_20, %c0_21, %c0_22] : memref<18x18x9xf32, #tpu.memory_space<vmem>>, vector<16x16x9xf32>
    %18 = vector.shape_cast %17 : vector<16x16x9xf32> to vector<256x9xf32>
    %19 = arith.truncf %18 : vector<256x9xf32> to vector<256x9xbf16>
    %c0_23 = arith.constant 0 : index
    %c27 = arith.constant 27 : index
    %20 = vector.load %arg9[%c0_23, %c27] : memref<256x81xbf16, #tpu.memory_space<vmem>>, vector<256x9xbf16>
    tpu.vector_store %arg9[%c0_23, %c27], %19 {strides = array<i32>} : memref<256x81xbf16, #tpu.memory_space<vmem>>, vector<256x9xbf16>,
    %c1_24 = arith.constant 1 : index
    %c1_25 = arith.constant 1 : index
    %c0_26 = arith.constant 0 : index
    %21 = vector.load %arg7[%c1_24, %c1_25, %c0_26] : memref<18x18x9xf32, #tpu.memory_space<vmem>>, vector<16x16x9xf32>
    %22 = vector.shape_cast %21 : vector<16x16x9xf32> to vector<256x9xf32>
    %23 = arith.truncf %22 : vector<256x9xf32> to vector<256x9xbf16>
    %c0_27 = arith.constant 0 : index
    %c36 = arith.constant 36 : index
    %24 = vector.load %arg9[%c0_27, %c36] : memref<256x81xbf16, #tpu.memory_space<vmem>>, vector<256x9xbf16>
    tpu.vector_store %arg9[%c0_27, %c36], %23 {strides = array<i32>} : memref<256x81xbf16, #tpu.memory_space<vmem>>, vector<256x9xbf16>,
    %c1_28 = arith.constant 1 : index
    %c2_29 = arith.constant 2 : index
    %c0_30 = arith.constant 0 : index
    %25 = vector.load %arg7[%c1_28, %c2_29, %c0_30] : memref<18x18x9xf32, #tpu.memory_space<vmem>>, vector<16x16x9xf32>
    %26 = vector.shape_cast %25 : vector<16x16x9xf32> to vector<256x9xf32>
    %27 = arith.truncf %26 : vector<256x9xf32> to vector<256x9xbf16>
    %c0_31 = arith.constant 0 : index
    %c45 = arith.constant 45 : index
    %28 = vector.load %arg9[%c0_31, %c45] : memref<256x81xbf16, #tpu.memory_space<vmem>>, vector<256x9xbf16>
    tpu.vector_store %arg9[%c0_31, %c45], %27 {strides = array<i32>} : memref<256x81xbf16, #tpu.memory_space<vmem>>, vector<256x9xbf16>,
    %c2_32 = arith.constant 2 : index
    %c0_33 = arith.constant 0 : index
    %c0_34 = arith.constant 0 : index
    %29 = vector.load %arg7[%c2_32, %c0_33, %c0_34] : memref<18x18x9xf32, #tpu.memory_space<vmem>>, vector<16x16x9xf32>
    %30 = vector.shape_cast %29 : vector<16x16x9xf32> to vector<256x9xf32>
    %31 = arith.truncf %30 : vector<256x9xf32> to vector<256x9xbf16>
    %c0_35 = arith.constant 0 : index
    %c54 = arith.constant 54 : index
    %32 = vector.load %arg9[%c0_35, %c54] : memref<256x81xbf16, #tpu.memory_space<vmem>>, vector<256x9xbf16>
    tpu.vector_store %arg9[%c0_35, %c54], %31 {strides = array<i32>} : memref<256x81xbf16, #tpu.memory_space<vmem>>, vector<256x9xbf16>,
    %c2_36 = arith.constant 2 : index
    %c1_37 = arith.constant 1 : index
    %c0_38 = arith.constant 0 : index
    %33 = vector.load %arg7[%c2_36, %c1_37, %c0_38] : memref<18x18x9xf32, #tpu.memory_space<vmem>>, vector<16x16x9xf32>
    %34 = vector.shape_cast %33 : vector<16x16x9xf32> to vector<256x9xf32>
    %35 = arith.truncf %34 : vector<256x9xf32> to vector<256x9xbf16>
    %c0_39 = arith.constant 0 : index
    %c63 = arith.constant 63 : index
    %36 = vector.load %arg9[%c0_39, %c63] : memref<256x81xbf16, #tpu.memory_space<vmem>>, vector<256x9xbf16>
    tpu.vector_store %arg9[%c0_39, %c63], %35 {strides = array<i32>} : memref<256x81xbf16, #tpu.memory_space<vmem>>, vector<256x9xbf16>,
    %c2_40 = arith.constant 2 : index
    %c2_41 = arith.constant 2 : index
    %c0_42 = arith.constant 0 : index
    %37 = vector.load %arg7[%c2_40, %c2_41, %c0_42] : memref<18x18x9xf32, #tpu.memory_space<vmem>>, vector<16x16x9xf32>
    %38 = vector.shape_cast %37 : vector<16x16x9xf32> to vector<256x9xf32>
    %39 = arith.truncf %38 : vector<256x9xf32> to vector<256x9xbf16>
    %c0_43 = arith.constant 0 : index
    %c72 = arith.constant 72 : index
    %40 = vector.load %arg9[%c0_43, %c72] : memref<256x81xbf16, #tpu.memory_space<vmem>>, vector<256x9xbf16>
    tpu.vector_store %arg9[%c0_43, %c72], %39 {strides = array<i32>} : memref<256x81xbf16, #tpu.memory_space<vmem>>, vector<256x9xbf16>,
    %c0_44 = arith.constant 0 : index
    %c0_45 = arith.constant 0 : index
    %41 = vector.load %arg9[%c0_44, %c0_45] : memref<256x81xbf16, #tpu.memory_space<vmem>>, vector<256x81xbf16>
    %c0_46 = arith.constant 0 : index
    %c0_47 = arith.constant 0 : index
    %42 = vector.load %arg2[%c0_46, %c0_47] : memref<81x32xbf16, #tpu.memory_space<vmem>>, vector<81x32xbf16>
    %cst_48 = arith.constant dense<0.000000e+00> : vector<256x32xf32>
    %43 = tpu.matmul %41, %42, %cst_48 {dimension_numbers = #tpu.dot_dimension_numbers<[1], [0], [0], [1], [0, 0, 1, 1], [], []>} : vector<256x81xbf16>, vector<81x32xbf16>, vector<256x32xf32> -> vector<256x32xf32>
    %c0_49 = arith.constant 0 : index
    %c0_50 = arith.constant 0 : index
    %44 = vector.load %arg3[%c0_49, %c0_50] : memref<1x32xf32, #tpu.memory_space<vmem>>, vector<1x32xf32>
    %45 = vector.broadcast %44 : vector<1x32xf32> to vector<256x32xf32>
    %46 = arith.addf %43, %45 : vector<256x32xf32>
    %cst_51 = arith.constant 0.000000e+00 : f32
    %47 = vector.broadcast %cst_51 : f32 to vector<256x32xf32>
    %48 = arith.maximumf %46, %47 : vector<256x32xf32>
    %cst_52 = arith.constant 0.000000e+00 : f32
    %49 = vector.broadcast %cst_52 : f32 to vector<18x18x32xf32>
    %c0_53 = arith.constant 0 : index
    %c0_54 = arith.constant 0 : index
    %c0_55 = arith.constant 0 : index
    %50 = vector.load %arg8[%c0_53, %c0_54, %c0_55] : memref<18x18x32xf32, #tpu.memory_space<vmem>>, vector<18x18x32xf32>
    tpu.vector_store %arg8[%c0_53, %c0_54, %c0_55], %49 {strides = array<i32>} : memref<18x18x32xf32, #tpu.memory_space<vmem>>, vector<18x18x32xf32>,
    %51 = vector.shape_cast %48 : vector<256x32xf32> to vector<16x16x32xf32>
    %c1_56 = arith.constant 1 : index
    %c1_57 = arith.constant 1 : index
    %c0_58 = arith.constant 0 : index
    %52 = vector.load %arg8[%c1_56, %c1_57, %c0_58] : memref<18x18x32xf32, #tpu.memory_space<vmem>>, vector<16x16x32xf32>
    tpu.vector_store %arg8[%c1_56, %c1_57, %c0_58], %51 {strides = array<i32>} : memref<18x18x32xf32, #tpu.memory_space<vmem>>, vector<16x16x32xf32>,
    %c0_59 = arith.constant 0 : index
    %c0_60 = arith.constant 0 : index
    %c0_61 = arith.constant 0 : index
    %53 = vector.load %arg8[%c0_59, %c0_60, %c0_61] : memref<18x18x32xf32, #tpu.memory_space<vmem>>, vector<16x16x32xf32>
    %54 = vector.shape_cast %53 : vector<16x16x32xf32> to vector<256x32xf32>
    %55 = arith.truncf %54 : vector<256x32xf32> to vector<256x32xbf16>
    %c0_62 = arith.constant 0 : index
    %c0_63 = arith.constant 0 : index
    %56 = vector.load %arg10[%c0_62, %c0_63] : memref<256x288xbf16, #tpu.memory_space<vmem>>, vector<256x32xbf16>
    tpu.vector_store %arg10[%c0_62, %c0_63], %55 {strides = array<i32>} : memref<256x288xbf16, #tpu.memory_space<vmem>>, vector<256x32xbf16>,
    %c0_64 = arith.constant 0 : index
    %c1_65 = arith.constant 1 : index
    %c0_66 = arith.constant 0 : index
    %57 = vector.load %arg8[%c0_64, %c1_65, %c0_66] : memref<18x18x32xf32, #tpu.memory_space<vmem>>, vector<16x16x32xf32>
    %58 = vector.shape_cast %57 : vector<16x16x32xf32> to vector<256x32xf32>
    %59 = arith.truncf %58 : vector<256x32xf32> to vector<256x32xbf16>
    %c0_67 = arith.constant 0 : index
    %c32 = arith.constant 32 : index
    %60 = vector.load %arg10[%c0_67, %c32] : memref<256x288xbf16, #tpu.memory_space<vmem>>, vector<256x32xbf16>
    tpu.vector_store %arg10[%c0_67, %c32], %59 {strides = array<i32>} : memref<256x288xbf16, #tpu.memory_space<vmem>>, vector<256x32xbf16>,
    %c0_68 = arith.constant 0 : index
    %c2_69 = arith.constant 2 : index
    %c0_70 = arith.constant 0 : index
    %61 = vector.load %arg8[%c0_68, %c2_69, %c0_70] : memref<18x18x32xf32, #tpu.memory_space<vmem>>, vector<16x16x32xf32>
    %62 = vector.shape_cast %61 : vector<16x16x32xf32> to vector<256x32xf32>
    %63 = arith.truncf %62 : vector<256x32xf32> to vector<256x32xbf16>
    %c0_71 = arith.constant 0 : index
    %c64 = arith.constant 64 : index
    %64 = vector.load %arg10[%c0_71, %c64] : memref<256x288xbf16, #tpu.memory_space<vmem>>, vector<256x32xbf16>
    tpu.vector_store %arg10[%c0_71, %c64], %63 {strides = array<i32>} : memref<256x288xbf16, #tpu.memory_space<vmem>>, vector<256x32xbf16>,
    %c1_72 = arith.constant 1 : index
    %c0_73 = arith.constant 0 : index
    %c0_74 = arith.constant 0 : index
    %65 = vector.load %arg8[%c1_72, %c0_73, %c0_74] : memref<18x18x32xf32, #tpu.memory_space<vmem>>, vector<16x16x32xf32>
    %66 = vector.shape_cast %65 : vector<16x16x32xf32> to vector<256x32xf32>
    %67 = arith.truncf %66 : vector<256x32xf32> to vector<256x32xbf16>
    %c0_75 = arith.constant 0 : index
    %c96 = arith.constant 96 : index
    %68 = vector.load %arg10[%c0_75, %c96] : memref<256x288xbf16, #tpu.memory_space<vmem>>, vector<256x32xbf16>
    tpu.vector_store %arg10[%c0_75, %c96], %67 {strides = array<i32>} : memref<256x288xbf16, #tpu.memory_space<vmem>>, vector<256x32xbf16>,
    %c1_76 = arith.constant 1 : index
    %c1_77 = arith.constant 1 : index
    %c0_78 = arith.constant 0 : index
    %69 = vector.load %arg8[%c1_76, %c1_77, %c0_78] : memref<18x18x32xf32, #tpu.memory_space<vmem>>, vector<16x16x32xf32>
    %70 = vector.shape_cast %69 : vector<16x16x32xf32> to vector<256x32xf32>
    %71 = arith.truncf %70 : vector<256x32xf32> to vector<256x32xbf16>
    %c0_79 = arith.constant 0 : index
    %c128 = arith.constant 128 : index
    %72 = vector.load %arg10[%c0_79, %c128] : memref<256x288xbf16, #tpu.memory_space<vmem>>, vector<256x32xbf16>
    tpu.vector_store %arg10[%c0_79, %c128], %71 {strides = array<i32>} : memref<256x288xbf16, #tpu.memory_space<vmem>>, vector<256x32xbf16>,
    %c1_80 = arith.constant 1 : index
    %c2_81 = arith.constant 2 : index
    %c0_82 = arith.constant 0 : index
    %73 = vector.load %arg8[%c1_80, %c2_81, %c0_82] : memref<18x18x32xf32, #tpu.memory_space<vmem>>, vector<16x16x32xf32>
    %74 = vector.shape_cast %73 : vector<16x16x32xf32> to vector<256x32xf32>
    %75 = arith.truncf %74 : vector<256x32xf32> to vector<256x32xbf16>
    %c0_83 = arith.constant 0 : index
    %c160 = arith.constant 160 : index
    %76 = vector.load %arg10[%c0_83, %c160] : memref<256x288xbf16, #tpu.memory_space<vmem>>, vector<256x32xbf16>
    tpu.vector_store %arg10[%c0_83, %c160], %75 {strides = array<i32>} : memref<256x288xbf16, #tpu.memory_space<vmem>>, vector<256x32xbf16>,
    %c2_84 = arith.constant 2 : index
    %c0_85 = arith.constant 0 : index
    %c0_86 = arith.constant 0 : index
    %77 = vector.load %arg8[%c2_84, %c0_85, %c0_86] : memref<18x18x32xf32, #tpu.memory_space<vmem>>, vector<16x16x32xf32>
    %78 = vector.shape_cast %77 : vector<16x16x32xf32> to vector<256x32xf32>
    %79 = arith.truncf %78 : vector<256x32xf32> to vector<256x32xbf16>
    %c0_87 = arith.constant 0 : index
    %c192 = arith.constant 192 : index
    %80 = vector.load %arg10[%c0_87, %c192] : memref<256x288xbf16, #tpu.memory_space<vmem>>, vector<256x32xbf16>
    tpu.vector_store %arg10[%c0_87, %c192], %79 {strides = array<i32>} : memref<256x288xbf16, #tpu.memory_space<vmem>>, vector<256x32xbf16>,
    %c2_88 = arith.constant 2 : index
    %c1_89 = arith.constant 1 : index
    %c0_90 = arith.constant 0 : index
    %81 = vector.load %arg8[%c2_88, %c1_89, %c0_90] : memref<18x18x32xf32, #tpu.memory_space<vmem>>, vector<16x16x32xf32>
    %82 = vector.shape_cast %81 : vector<16x16x32xf32> to vector<256x32xf32>
    %83 = arith.truncf %82 : vector<256x32xf32> to vector<256x32xbf16>
    %c0_91 = arith.constant 0 : index
    %c224 = arith.constant 224 : index
    %84 = vector.load %arg10[%c0_91, %c224] : memref<256x288xbf16, #tpu.memory_space<vmem>>, vector<256x32xbf16>
    tpu.vector_store %arg10[%c0_91, %c224], %83 {strides = array<i32>} : memref<256x288xbf16, #tpu.memory_space<vmem>>, vector<256x32xbf16>,
    %c2_92 = arith.constant 2 : index
    %c2_93 = arith.constant 2 : index
    %c0_94 = arith.constant 0 : index
    %85 = vector.load %arg8[%c2_92, %c2_93, %c0_94] : memref<18x18x32xf32, #tpu.memory_space<vmem>>, vector<16x16x32xf32>
    %86 = vector.shape_cast %85 : vector<16x16x32xf32> to vector<256x32xf32>
    %87 = arith.truncf %86 : vector<256x32xf32> to vector<256x32xbf16>
    %c0_95 = arith.constant 0 : index
    %c256 = arith.constant 256 : index
    %88 = vector.load %arg10[%c0_95, %c256] : memref<256x288xbf16, #tpu.memory_space<vmem>>, vector<256x32xbf16>
    tpu.vector_store %arg10[%c0_95, %c256], %87 {strides = array<i32>} : memref<256x288xbf16, #tpu.memory_space<vmem>>, vector<256x32xbf16>,
    %c0_96 = arith.constant 0 : index
    %c0_97 = arith.constant 0 : index
    %89 = vector.load %arg10[%c0_96, %c0_97] : memref<256x288xbf16, #tpu.memory_space<vmem>>, vector<256x288xbf16>
    %c0_98 = arith.constant 0 : index
    %c0_99 = arith.constant 0 : index
    %90 = vector.load %arg4[%c0_98, %c0_99] : memref<288x128xbf16, #tpu.memory_space<vmem>>, vector<288x128xbf16>
    %cst_100 = arith.constant dense<0.000000e+00> : vector<256x128xf32>
    %91 = tpu.matmul %89, %90, %cst_100 {dimension_numbers = #tpu.dot_dimension_numbers<[1], [0], [0], [1], [0, 0, 1, 1], [], []>} : vector<256x288xbf16>, vector<288x128xbf16>, vector<256x128xf32> -> vector<256x128xf32>
    %c0_101 = arith.constant 0 : index
    %c0_102 = arith.constant 0 : index
    %92 = vector.load %arg5[%c0_101, %c0_102] : memref<1x128xf32, #tpu.memory_space<vmem>>, vector<1x128xf32>
    %93 = vector.broadcast %92 : vector<1x128xf32> to vector<256x128xf32>
    %94 = arith.addf %91, %93 : vector<256x128xf32>
    %cst_103 = arith.constant 0.000000e+00 : f32
    %95 = vector.broadcast %cst_103 : f32 to vector<256x128xf32>
    %96 = arith.maximumf %94, %95 : vector<256x128xf32>
    %c0_104 = arith.constant 0 : index
    %c0_105 = arith.constant 0 : index
    %c0_106 = arith.constant 0 : index
    %97 = vector.load %arg6[%c0_104, %c0_105, %c0_106] : memref<1x256x128xf32, #tpu.memory_space<vmem>>, vector<1x256x128xf32>
    %98 = vector.shape_cast %97 : vector<1x256x128xf32> to vector<256x128xf32>
    %99 = vector.shape_cast %96 : vector<256x128xf32> to vector<1x256x128xf32>
    tpu.vector_store %arg6[%c0_104, %c0_105, %c0_106], %99 {strides = array<i32>} : memref<1x256x128xf32, #tpu.memory_space<vmem>>, vector<1x256x128xf32>,
    return
  }
  func.func @transform_0(%arg0: i32) -> (i32, i32, i32, i32) {
    %c0_i32 = arith.constant 0 : i32
    %c0_i32_0 = arith.constant 0 : i32
    %c0_i32_1 = arith.constant 0 : i32
    %c0_i32_2 = arith.constant 0 : i32
    return %arg0, %c0_i32, %c0_i32_0, %c0_i32_1 : i32, i32, i32, i32
  }
  func.func @transform_1(%arg0: i32) -> (i32, i32) {
    %c0_i32 = arith.constant 0 : i32
    %c0_i32_0 = arith.constant 0 : i32
    %c0_i32_1 = arith.constant 0 : i32
    return %c0_i32, %c0_i32_0 : i32, i32
  }
  func.func @transform_2(%arg0: i32) -> (i32, i32) {
    %c0_i32 = arith.constant 0 : i32
    %c0_i32_0 = arith.constant 0 : i32
    %c0_i32_1 = arith.constant 0 : i32
    return %c0_i32, %c0_i32_0 : i32, i32
  }
  func.func @transform_3(%arg0: i32) -> (i32, i32) {
    %c0_i32 = arith.constant 0 : i32
    %c0_i32_0 = arith.constant 0 : i32
    %c0_i32_1 = arith.constant 0 : i32
    return %c0_i32, %c0_i32_0 : i32, i32
  }
  func.func @transform_4(%arg0: i32) -> (i32, i32) {
    %c0_i32 = arith.constant 0 : i32
    %c0_i32_0 = arith.constant 0 : i32
    %c0_i32_1 = arith.constant 0 : i32
    return %c0_i32, %c0_i32_0 : i32, i32
  }
  func.func @transform_5(%arg0: i32) -> (i32, i32, i32) {
    %c0_i32 = arith.constant 0 : i32
    %c0_i32_0 = arith.constant 0 : i32
    %c0_i32_1 = arith.constant 0 : i32
    return %arg0, %c0_i32, %c0_i32_0 : i32, i32, i32
  }
}

</mosaic_0001>

<bundles_post_ra>
// kernel: tpu_custom_call.1
= control target key start
LH: loop header
LB: loop body
LE: loop exit
PB: predicated region body
PF: predicated region fallthrough
CT: control target
= control target key end

     0   :  { %10 = vsyncpa [#allocation7], 0  ;;  %s10291_s0 = inlined_call_operand.vmem [shape: f32[2,16,16,9], index: 0, kind: input, shape index: {}]   ;;  %s10292_s1 = inlined_call_operand.vmem [shape: bf16[81,32], index: 1, kind: input, shape index: {}]   ;;  %s10293_s2 = inlined_call_operand.vmem [shape: f32[1,32], index: 2, kind: input, shape index: {}]   ;;  %s10294_s3 = inlined_call_operand.vmem [shape: bf16[288,128], index: 3, kind: input, shape index: {}]   ;;  %s10295_s4 = inlined_call_operand.vmem [shape: f32[1,128], index: 4, kind: input, shape index: {}]   ;;  %s10296_s5 = inlined_call_operand.hbm [shape: f32[2,256,128], index: 5, kind: output, shape index: {}]  }
   0x1   :  { %12 = vsyncpa [#allocation7 + $0x1], 0  ;;  %s7950_s18 = smov 0   ;;  %s7952_s19 = smov 0  }
   0x2   :  { %s7954_s20 = smov 0   ;;  %s7956_s21 = smov 0  }
   0x3 LB: > { %s7971_s22 = sadd.s32 4294967295, %s7902_s21   ;;  %s6177_s23 = sadd.s32 4294967294, %s7902_s21   ;;  %s7902_s21 = sphi %s7956_s21, %s10302_s21   ;;  %s7898_s20 = sphi %s7954_s20, %s10301_s20   ;;  %s7894_s19 = sphi %s7952_s19, %s10300_s19   ;;  %s7890_s18 = sphi %s7950_s18, %s10299_s18  }
   0x4   : > { %s7975_s24 = sadd.s32 1, %s7902_s21   ;;  %s135_s25 = sadd.s32 1, %s7898_s20 }
   0x5   : > { %s132_s26 = ssub.s32 %s7902_s21, %s7975_s24  ;;  %p145_p0 = scmp.ne.s32.totalorder %s7898_s20, %s7894_s19 }
   0x6   : > { %p133_p1 = scmp.eq.s32.totalorder %s132_s26, 0  ;;  %p146_p2 = scmp.eq.s32.totalorder %s7971_s22, 1 }
   0x7   : > { %p151_p3 = scmp.ne.s32.totalorder %s7894_s19, %s7890_s18  ;;  %p152_p4 = scmp.eq.s32.totalorder %s6177_s23, 1 }
   0x8   : > { %s7986_s27 = scalar_select %p133_p1, %s7898_s20, %s135_s25  }
   0x9   : > { %p7988_p5 = por %p146_p2, %p145_p0  ;;  %p7992_p6 = por %p152_p4, %p151_p3 }
   0xa   : > { %p6180_p7 = scmp.ge.s32.totalorder %s7902_s21, 1  ;;  %p190_p8 = scmp.lt.s32.totalorder %s7902_s21, 3 }
   0xc   : > { %p191_p9 = pnand %p6180_p7, %p190_p8 }
   0xd   : > { %p218_p10 = scmp.lt.s32.totalorder (!%p191_p9), %s7971_s22, 1  ;;  %s7905_s10 = smov (!%p191_p9), 9  }
   0xe   : > { %194 = sbr.rel (%p191_p9) target bundleno = 1356 (0x54c), region = 40  ;;  %s7906_s11 = smov (!%p191_p9), 18  }
   0xf   : > { %s7907_s12 = smov (!%p191_p9), 27   ;;  %s7908_s13 = smov (!%p191_p9), 36  }
  0x10   : > { %s7909_s14 = smov (!%p191_p9), 45   ;;  %s7911_s17 = smov (!%p191_p9), 54  }
  0x11   : > { %s7914_s16 = smov (!%p191_p9), 32   ;;  %s7916_s8 = smov (!%p191_p9), 96  }
  0x13   : > { %vm224_vm0 = vcmask 72704   ;;  %vm227_vm1 = vcmask 66560   ;;  %v7904_v0 = vmov 0.0   ;;  %s219_s30 = scalar_select %p218_p10, %s7971_s22, 1  ;;  %vm505_vm2 = vcmask 68608  }
  0x14   : > { %225 = vst.msk [vmem:[#allocation2] sm:$0xff] %vm224_vm0, %v7904_v0  ;;  %226 = vst.msk [vmem:[#allocation2 + $0x8] sm:$0xff] %vm224_vm0, %v7904_v0  ;;  %vm762_vm3 = vcmask 142408   ;;  %vm1019_vm4 = vcmask 216208   ;;  %vm2807_vm5 = vcmask 1040384   ;;  %vm1276_vm6 = vcmask 290008  }
  0x15   : > { %229 = vst.msk [vmem:[#allocation2 + $0x18] sm:$0xff] %vm224_vm0, %v7904_v0  ;;  %230 = vst.msk [vmem:[#allocation2 + $0x20] sm:$0xff] %vm224_vm0, %v7904_v0  ;;  %s6887_s6 = sshll.u32 %s219_s30, 8  ;;  %vm1533_vm7 = vcmask 363808   ;;  %vm1790_vm8 = vcmask 437608   ;;  %vm2048_vm9 = vcmask 511408  }
  0x16   : > { %232 = vst.msk [vmem:[#allocation2 + $0x30] sm:$0xff] %vm224_vm0, %v7904_v0  ;;  %233 = vst.msk [vmem:[#allocation2 + $0x38] sm:$0xff] %vm224_vm0, %v7904_v0  ;;  %s8113_s9 = scalar_lea.vmem %s10291_s0, %s6887_s6  ;;  %s7912_s6 = smov 63   ;;  %vm2305_vm10 = vcmask 585208   ;;  %vm2562_vm11 = vcmask 659008   ;;  %vm2758_vm12 = vcmask 662528  }
  0x17   : > { %235 = vst.msk [vmem:[#allocation2 + $0x48] sm:$0xff] %vm224_vm0, %v7904_v0  ;;  %236 = vst.msk [vmem:[#allocation2 + $0x50] sm:$0xff] %vm224_vm0, %v7904_v0  ;;  %v280_v1 = vld [vmem:[%s8113_s9] sm:$0xff]  ;;  %v281_v2 = vld [vmem:[%s8113_s9 + $0x8] sm:$0xff]  ;;  %vm3006_vm13 = vcmask 261120   ;;  %vm3009_vm14 = vcmask 254976  }
  0x18   : > { %238 = vst.msk [vmem:[#allocation2 + $0x60] sm:$0xff] %vm224_vm0, %v7904_v0  ;;  %239 = vst.msk [vmem:[#allocation2 + $0x68] sm:$0xff] %vm224_vm0, %v7904_v0  ;;  %v282_v3 = vld [vmem:[%s8113_s9 + $0x10] sm:$0xff]  ;;  %v283_v4 = vld [vmem:[%s8113_s9 + $0x18] sm:$0xff]  ;;  %vm3255_vm15 = vcmask 257024  }
  0x19   : > { %241 = vst.msk [vmem:[#allocation2 + $0x78] sm:$0xff] %vm224_vm0, %v7904_v0  ;;  %242 = vst.msk [vmem:[#allocation2 + $0x80] sm:$0xff] %vm224_vm0, %v7904_v0  ;;  %v284_v5 = vld [vmem:[%s8113_s9 + $0x20] sm:$0xff]  ;;  %v285_v6 = vld [vmem:[%s8113_s9 + $0x28] sm:$0xff] }
  0x1a   : > { %244 = vst.msk [vmem:[#allocation2 + $0x90] sm:$0xff] %vm224_vm0, %v7904_v0  ;;  %245 = vst.msk [vmem:[#allocation2 + $0x98] sm:$0xff] %vm224_vm0, %v7904_v0  ;;  %v286_v9 = vld [vmem:[%s8113_s9 + $0x30] sm:$0xff]  ;;  %v287_v11 = vld [vmem:[%s8113_s9 + $0x38] sm:$0xff] }
  0x1b   : > { %247 = vst.msk [vmem:[#allocation2 + $0xa8] sm:$0xff] %vm224_vm0, %v7904_v0  ;;  %248 = vst.msk [vmem:[#allocation2 + $0xb0] sm:$0xff] %vm224_vm0, %v7904_v0  ;;  %v538_v7 = vld [vmem:[#allocation2 + $0x1] sm:$0xff]  ;;  %v290_v14 = vld [vmem:[%s8113_s9 + $0x50] sm:$0xff] }
  0x1c   : > { %250 = vst.msk [vmem:[#allocation2 + $0xc0] sm:$0xff] %vm224_vm0, %v7904_v0  ;;  %251 = vst.msk [vmem:[#allocation2 + $0xc8] sm:$0xff] %vm224_vm0, %v7904_v0  ;;  %v6920_v10 = vpack.c.bf16 %v538_v7, %v538_v7  ;;  %v288_v12 = vld [vmem:[%s8113_s9 + $0x40] sm:$0xff]  ;;  %v289_v13 = vld [vmem:[%s8113_s9 + $0x48] sm:$0xff] }
  0x1d   : > { %253 = vst.msk [vmem:[#allocation2 + $0xd8] sm:$0xff] %vm224_vm0, %v7904_v0  ;;  %254 = vst.msk [vmem:[#allocation2 + $0xe0] sm:$0xff] %vm224_vm0, %v7904_v0  ;;  %v291_v15 = vld [vmem:[%s8113_s9 + $0x58] sm:$0xff]  ;;  %v292_v16 = vld [vmem:[%s8113_s9 + $0x60] sm:$0xff] }
  0x1e   : > { %256 = vst.msk [vmem:[#allocation2 + $0xf0] sm:$0xff] %vm224_vm0, %v7904_v0  ;;  %257 = vst.msk [vmem:[#allocation2 + $0xf8] sm:$0xff] %vm224_vm0, %v7904_v0  ;;  %666 = vrot.lane.b32.xlu0 %v6920_v10, %s7905_s10  ;;  %v293_v18 = vld [vmem:[%s8113_s9 + $0x68] sm:$0xff]  ;;  %v294_v19 = vld [vmem:[%s8113_s9 + $0x70] sm:$0xff] }
  0x1f   : > { %259 = vst.msk [vmem:[#allocation2 + $0x108] sm:$0xff] %vm224_vm0, %v7904_v0  ;;  %260 = vst.msk [vmem:[#allocation2 + $0x110] sm:$0xff] %vm224_vm0, %v7904_v0  ;;  %v295_v20 = vld [vmem:[%s8113_s9 + $0x78] sm:$0xff]  ;;  %v296_v21 = vld [vmem:[%s8113_s9 + $0x80] sm:$0xff] }
  0x20   : > { %262 = vst.msk [vmem:[#allocation2 + $0x120] sm:$0xff] %vm224_vm0, %v7904_v0  ;;  %263 = vst.msk [vmem:[#allocation2 + $0x128] sm:$0xff] %vm224_vm0, %v7904_v0  ;;  %v297_v22 = vld [vmem:[%s8113_s9 + $0x88] sm:$0xff]  ;;  %v298_v23 = vld [vmem:[%s8113_s9 + $0x90] sm:$0xff] }
  0x21   : > { %265 = vst.msk [vmem:[#allocation2 + $0x138] sm:$0xff] %vm224_vm0, %v7904_v0  ;;  %266 = vst.msk [vmem:[#allocation2 + $0x140] sm:$0xff] %vm224_vm0, %v7904_v0  ;;  %v299_v24 = vld [vmem:[%s8113_s9 + $0x98] sm:$0xff]  ;;  %v300_v25 = vld [vmem:[%s8113_s9 + $0xa0] sm:$0xff] }
  0x22   : > { %268 = vst.msk [vmem:[#allocation2 + $0x150] sm:$0xff] %vm224_vm0, %v7904_v0  ;;  %269 = vst.msk [vmem:[#allocation2 + $0x158] sm:$0xff] %vm224_vm0, %v7904_v0  ;;  %v301_v26 = vld [vmem:[%s8113_s9 + $0xa8] sm:$0xff]  ;;  %v302_v33 = vld [vmem:[%s8113_s9 + $0xb0] sm:$0xff] }
  0x23   : > { %271 = vst.msk [vmem:[#allocation2 + $0x168] sm:$0xff] %vm224_vm0, %v7904_v0  ;;  %272 = vst.msk [vmem:[#allocation2 + $0x170] sm:$0xff] %vm224_vm0, %v7904_v0  ;;  %v303_v34 = vld [vmem:[%s8113_s9 + $0xb8] sm:$0xff]  ;;  %v304_v41 = vld [vmem:[%s8113_s9 + $0xc0] sm:$0xff] }
  0x24   : > { %274 = vst.msk [vmem:[#allocation2 + $0x180] sm:$0xff] %vm224_vm0, %v7904_v0  ;;  %275 = vst.msk [vmem:[#allocation2 + $0x188] sm:$0xff] %vm224_vm0, %v7904_v0  ;;  %v305_v42 = vld [vmem:[%s8113_s9 + $0xc8] sm:$0xff]  ;;  %v306_v43 = vld [vmem:[%s8113_s9 + $0xd0] sm:$0xff] }
  0x25   : > { %277 = vst.msk [vmem:[#allocation2 + $0x198] sm:$0xff] %vm224_vm0, %v7904_v0  ;;  %278 = vst.msk [vmem:[#allocation2 + $0x1a0] sm:$0xff] %vm224_vm0, %v7904_v0  ;;  %v307_v45 = vld [vmem:[%s8113_s9 + $0xd8] sm:$0xff]  ;;  %v308_v46 = vld [vmem:[%s8113_s9 + $0xe0] sm:$0xff] }
  0x26   : > { %228 = vst.msk [vmem:[#allocation2 + $0x10] sm:$0x3] %vm227_vm1, %v7904_v0  ;;  %231 = vst.msk [vmem:[#allocation2 + $0x28] sm:$0x3] %vm227_vm1, %v7904_v0  ;;  %v309_v47 = vld [vmem:[%s8113_s9 + $0xe8] sm:$0xff]  ;;  %v345_v60 = vld [vmem:[#allocation2] sm:$0xff] }
  0x27   : > { %234 = vst.msk [vmem:[#allocation2 + $0x40] sm:$0x3] %vm227_vm1, %v7904_v0  ;;  %237 = vst.msk [vmem:[#allocation2 + $0x58] sm:$0x3] %vm227_vm1, %v7904_v0  ;;  %v6888_v63 = vpack.c.bf16 %v345_v60, %v345_v60 }
  0x28   : > { %240 = vst.msk [vmem:[#allocation2 + $0x70] sm:$0x3] %vm227_vm1, %v7904_v0  ;;  %243 = vst.msk [vmem:[#allocation2 + $0x88] sm:$0x3] %vm227_vm1, %v7904_v0 }
  0x29   : > { %246 = vst.msk [vmem:[#allocation2 + $0xa0] sm:$0x3] %vm227_vm1, %v7904_v0  ;;  %249 = vst.msk [vmem:[#allocation2 + $0xb8] sm:$0x3] %vm227_vm1, %v7904_v0 }
  0x2a   : > { %252 = vst.msk [vmem:[#allocation2 + $0xd0] sm:$0x3] %vm227_vm1, %v7904_v0  ;;  %255 = vst.msk [vmem:[#allocation2 + $0xe8] sm:$0x3] %vm227_vm1, %v7904_v0 }
  0x2b   : > { %258 = vst.msk [vmem:[#allocation2 + $0x100] sm:$0x3] %vm227_vm1, %v7904_v0  ;;  %261 = vst.msk [vmem:[#allocation2 + $0x118] sm:$0x3] %vm227_vm1, %v7904_v0 }
  0x2c   : > { %264 = vst.msk [vmem:[#allocation2 + $0x130] sm:$0x3] %vm227_vm1, %v7904_v0  ;;  %267 = vst.msk [vmem:[#allocation2 + $0x148] sm:$0x3] %vm227_vm1, %v7904_v0 }
  0x2d   : > { %270 = vst.msk [vmem:[#allocation2 + $0x160] sm:$0x3] %vm227_vm1, %v7904_v0  ;;  %273 = vst.msk [vmem:[#allocation2 + $0x178] sm:$0x3] %vm227_vm1, %v7904_v0  ;;  %v539_v8 = vld [vmem:[#allocation2 + $0x9] sm:$0xff] }
  0x2e   : > { %276 = vst.msk [vmem:[#allocation2 + $0x190] sm:$0x3] %vm227_vm1, %v7904_v0  ;;  %279 = vst.msk [vmem:[#allocation2 + $0x1a8] sm:$0x3] %vm227_vm1, %v7904_v0  ;;  %v6921_v17 = vpack.c.bf16 %v539_v8, %v539_v8  ;;  %vm3769_vm1 = vcmask 781824  }
  0x2f   : > { %313 = vst.msk [vmem:[#allocation2 + $0x19] sm:$0xff] %vm224_vm0, %v280_v1  ;;  %314 = vst.msk [vmem:[#allocation2 + $0x21] sm:$0xff] %vm224_vm0, %v281_v2  ;;  %v346_v2 = vld [vmem:[#allocation2 + $0x8] sm:$0xff] }
  0x30   : > { %315 = vst.msk [vmem:[#allocation2 + $0x31] sm:$0xff] %vm224_vm0, %v282_v3  ;;  %316 = vst.msk [vmem:[#allocation2 + $0x39] sm:$0xff] %vm224_vm0, %v283_v4  ;;  %668 = vrot.lane.b32.xlu0 %v6921_v17, %s7905_s10  ;;  %v6889_v4 = vpack.c.bf16 %v346_v2, %v346_v2 }
  0x31   : > { %317 = vst.msk [vmem:[#allocation2 + $0x49] sm:$0xff] %vm224_vm0, %v284_v5  ;;  %318 = vst.msk [vmem:[#allocation2 + $0x51] sm:$0xff] %vm224_vm0, %v285_v6 }
  0x32   : > { %319 = vst.msk [vmem:[#allocation2 + $0x61] sm:$0xff] %vm224_vm0, %v286_v9  ;;  %320 = vst.msk [vmem:[#allocation2 + $0x69] sm:$0xff] %vm224_vm0, %v287_v11 }
  0x33   : > { %321 = vst.msk [vmem:[#allocation2 + $0x79] sm:$0xff] %vm224_vm0, %v288_v12  ;;  %322 = vst.msk [vmem:[#allocation2 + $0x81] sm:$0xff] %vm224_vm0, %v289_v13 }
  0x34   : > { %323 = vst.msk [vmem:[#allocation2 + $0x91] sm:$0xff] %vm224_vm0, %v290_v14  ;;  %324 = vst.msk [vmem:[#allocation2 + $0x99] sm:$0xff] %vm224_vm0, %v291_v15 }
  0x35   : > { %325 = vst.msk [vmem:[#allocation2 + $0xa9] sm:$0xff] %vm224_vm0, %v292_v16  ;;  %326 = vst.msk [vmem:[#allocation2 + $0xb1] sm:$0xff] %vm224_vm0, %v293_v18 }
  0x36   : > { %327 = vst.msk [vmem:[#allocation2 + $0xc1] sm:$0xff] %vm224_vm0, %v294_v19  ;;  %328 = vst.msk [vmem:[#allocation2 + $0xc9] sm:$0xff] %vm224_vm0, %v295_v20  ;;  %v540_v27 = vld [vmem:[#allocation2 + $0x19] sm:$0xff]  ;;  %v541_v28 = vld [vmem:[#allocation2 + $0x21] sm:$0xff] }
  0x37   : > { %329 = vst.msk [vmem:[#allocation2 + $0xd9] sm:$0xff] %vm224_vm0, %v296_v21  ;;  %330 = vst.msk [vmem:[#allocation2 + $0xe1] sm:$0xff] %vm224_vm0, %v297_v22  ;;  %v542_v29 = vld [vmem:[#allocation2 + $0x31] sm:$0xff]  ;;  %v6922_v30 = vpack.c.bf16 %v540_v27, %v540_v27  ;;  %v6923_v35 = vpack.c.bf16 %v541_v28, %v541_v28  ;;  %v543_v36 = vld [vmem:[#allocation2 + $0x39] sm:$0xff] }
  0x38   : > { %331 = vst.msk [vmem:[#allocation2 + $0xf1] sm:$0xff] %vm224_vm0, %v298_v23  ;;  %332 = vst.msk [vmem:[#allocation2 + $0xf9] sm:$0xff] %vm224_vm0, %v299_v24  ;;  %v6924_v31 = vpack.c.bf16 %v542_v29, %v542_v29  ;;  %v544_v32 = vld [vmem:[#allocation2 + $0x49] sm:$0xff]  ;;  %v6925_v39 = vpack.c.bf16 %v543_v36, %v543_v36  ;;  %v545_v40 = vld [vmem:[#allocation2 + $0x51] sm:$0xff] }
  0x39   : > { %333 = vst.msk [vmem:[#allocation2 + $0x109] sm:$0xff] %vm224_vm0, %v300_v25  ;;  %334 = vst.msk [vmem:[#allocation2 + $0x111] sm:$0xff] %vm224_vm0, %v301_v26  ;;  %670 = vrot.lane.b32.xlu1 %v6922_v30, %s7905_s10  ;;  %v6926_v37 = vpack.c.bf16 %v544_v32, %v544_v32  ;;  %v546_v38 = vld [vmem:[#allocation2 + $0x61] sm:$0xff]  ;;  %v6927_v49 = vpack.c.bf16 %v545_v40, %v545_v40  ;;  %v547_v50 = vld [vmem:[#allocation2 + $0x69] sm:$0xff] }
  0x3a   : > { %335 = vst.msk [vmem:[#allocation2 + $0x121] sm:$0xff] %vm224_vm0, %v302_v33  ;;  %336 = vst.msk [vmem:[#allocation2 + $0x129] sm:$0xff] %vm224_vm0, %v303_v34  ;;  %674 = vrot.lane.b32.xlu0 %v6924_v31, %s7905_s10  ;;  %v6928_v44 = vpack.c.bf16 %v546_v38, %v546_v38  ;;  %v548_v48 = vld [vmem:[#allocation2 + $0x79] sm:$0xff]  ;;  %v6929_v53 = vpack.c.bf16 %v547_v50, %v547_v50  ;;  %v549_v54 = vld [vmem:[#allocation2 + $0x81] sm:$0xff] }
  0x3b   : > { %337 = vst.msk [vmem:[#allocation2 + $0x139] sm:$0xff] %vm224_vm0, %v304_v41  ;;  %338 = vst.msk [vmem:[#allocation2 + $0x141] sm:$0xff] %vm224_vm0, %v305_v42  ;;  %v6930_v51 = vpack.c.bf16 %v548_v48, %v548_v48  ;;  %v550_v52 = vld [vmem:[#allocation2 + $0x91] sm:$0xff]  ;;  %v6931_v57 = vpack.c.bf16 %v549_v54, %v549_v54  ;;  %v551_v58 = vld [vmem:[#allocation2 + $0x99] sm:$0xff] }
  0x3c   : > { %339 = vst.msk [vmem:[#allocation2 + $0x151] sm:$0xff] %vm224_vm0, %v306_v43  ;;  %340 = vst.msk [vmem:[#allocation2 + $0x159] sm:$0xff] %vm224_vm0, %v307_v45  ;;  %v6932_v55 = vpack.c.bf16 %v550_v52, %v550_v52  ;;  %v552_v56 = vld [vmem:[#allocation2 + $0xa9] sm:$0xff]  ;;  %v347_v61 = vld [vmem:[#allocation2 + $0x18] sm:$0xff]  ;;  %v6933_v3 = vpack.c.bf16 %v551_v58, %v551_v58 }
  0x3d   : > { %672 = vrot.lane.b32.xlu1 %v6923_v35, %s7905_s10  ;;  %341 = vst.msk [vmem:[#allocation2 + $0x169] sm:$0xff] %vm224_vm0, %v308_v46  ;;  %342 = vst.msk [vmem:[#allocation2 + $0x171] sm:$0xff] %vm224_vm0, %v309_v47  ;;  %v6934_v59 = vpack.c.bf16 %v552_v56, %v552_v56  ;;  %v554_v62 = vld [vmem:[#allocation2 + $0xc1] sm:$0xff]  ;;  %v8187_v1 = vpack.c.bf16 %v347_v61, %v347_v61  ;;  %v553_v6 = vld [vmem:[#allocation2 + $0xb1] sm:$0xff] }
  0x3e   : > { %678 = vrot.lane.b32.xlu0 %v6926_v37, %s7905_s10  ;;  %v348_v5 = vld [vmem:[#allocation2 + $0x20] sm:$0xff]  ;;  %506 = vst.msk [vmem:[#allocation4] sm:$0xf] %vm505_vm2, %v6888_v63  ;;  %v349_v8 = vld [vmem:[#allocation2 + $0x30] sm:$0xff]  ;;  %v350_v9 = vld [vmem:[#allocation2 + $0x38] sm:$0xff]  ;;  %v6936_v10 = vpack.c.bf16 %v554_v62, %v554_v62  ;;  %v6935_v22 = vpack.c.bf16 %v553_v6, %v553_v6 }
  0x3f   : > { %508 = vst.msk [vmem:[#allocation4 + $0x8] sm:$0xf] %vm505_vm2, %v8187_v1  ;;  %v8193_v7 = vpack.c.bf16 %v348_v5, %v348_v5  ;;  %v8196_v11 = vld [vmem:[#allocation2 + $0xd9] sm:$0xff]  ;;  %507 = vst.msk [vmem:[#allocation4 + $0x4] sm:$0xf] %vm505_vm2, %v6889_v4  ;;  %v8199_v12 = vpack.c.bf16 %v349_v8, %v349_v8  ;;  %v8201_v13 = vpack.c.bf16 %v350_v9, %v350_v9  ;;  %v351_v14 = vld [vmem:[#allocation2 + $0x48] sm:$0xff] }
  0x40   : > { %v352_v15 = vld [vmem:[#allocation2 + $0x50] sm:$0xff]  ;;  %v8207_v17 = vpack.c.bf16 %v351_v14, %v351_v14  ;;  %v353_v19 = vld [vmem:[#allocation2 + $0x60] sm:$0xff]  ;;  %v354_v20 = vld [vmem:[#allocation2 + $0x68] sm:$0xff]  ;;  %v6938_v36 = vpack.c.bf16 %v8196_v11, %v8196_v11  ;;  %3014 = vst.msk [vmem:[#allocation3 + $0x30] sm:$0xff] %vm3006_vm13, %v7904_v0 }
  0x41   : > { %676 = vrot.lane.b32.xlu1 %v6925_v39, %s7905_s10  ;;  %v8203_v16 = vld [vmem:[#allocation2 + $0xc9] sm:$0xff]  ;;  %509 = vst.msk [vmem:[#allocation4 + $0xc] sm:$0xf] %vm505_vm2, %v8193_v7  ;;  %v8209_v18 = vpack.c.bf16 %v352_v15, %v352_v15  ;;  %v355_v21 = vld [vmem:[#allocation2 + $0x78] sm:$0xff]  ;;  %510 = vst.msk [vmem:[#allocation4 + $0x10] sm:$0xf] %vm505_vm2, %v8199_v12  ;;  %v8216_v23 = vpack.c.bf16 %v353_v19, %v353_v19  ;;  %v8218_v24 = vpack.c.bf16 %v354_v20, %v354_v20 }
  0x42   : > { %682 = vrot.lane.b32.xlu0 %v6928_v44, %s7905_s10  ;;  %511 = vst.msk [vmem:[#allocation4 + $0x14] sm:$0xf] %vm505_vm2, %v8201_v13  ;;  %v8220_v25 = vpack.c.bf16 %v355_v21, %v355_v21  ;;  %v356_v26 = vld [vmem:[#allocation2 + $0x80] sm:$0xff]  ;;  %v357_v27 = vld [vmem:[#allocation2 + $0x90] sm:$0xff]  ;;  %v358_v28 = vld [vmem:[#allocation2 + $0x98] sm:$0xff]  ;;  %v6937_v50 = vpack.c.bf16 %v8203_v16, %v8203_v16 }
  0x43   : > { %v558_v29 = vld [vmem:[#allocation2 + $0xf1] sm:$0xff]  ;;  %512 = vst.msk [vmem:[#allocation4 + $0x18] sm:$0xf] %vm505_vm2, %v8207_v17  ;;  %513 = vst.msk [vmem:[#allocation4 + $0x1c] sm:$0xf] %vm505_vm2, %v8209_v18  ;;  %v8226_v30 = vpack.c.bf16 %v356_v26, %v356_v26  ;;  %v8228_v31 = vpack.c.bf16 %v357_v27, %v357_v27  ;;  %v8230_v32 = vpack.c.bf16 %v358_v28, %v358_v28  ;;  %v359_v33 = vld [vmem:[#allocation2 + $0xa8] sm:$0xff] }
  0x44   : > { %v360_v34 = vld [vmem:[#allocation2 + $0xb0] sm:$0xff]  ;;  %v361_v35 = vld [vmem:[#allocation2 + $0xc0] sm:$0xff]  ;;  %514 = vst.msk [vmem:[#allocation4 + $0x20] sm:$0xf] %vm505_vm2, %v8216_v23  ;;  %515 = vst.msk [vmem:[#allocation4 + $0x24] sm:$0xf] %vm505_vm2, %v8218_v24  ;;  %v8241_v37 = vpack.c.bf16 %v359_v33, %v359_v33 }
  0x45   : > { %680 = vrot.lane.b32.xlu1 %v6927_v49, %s7905_s10  ;;  %516 = vst.msk [vmem:[#allocation4 + $0x28] sm:$0xf] %vm505_vm2, %v8220_v25  ;;  %v8243_v38 = vpack.c.bf16 %v360_v34, %v360_v34  ;;  %v8245_v39 = vpack.c.bf16 %v361_v35, %v361_v35  ;;  %v362_v40 = vld [vmem:[#allocation2 + $0xc8] sm:$0xff]  ;;  %v363_v41 = vld [vmem:[#allocation2 + $0xd8] sm:$0xff]  ;;  %v364_v42 = vld [vmem:[#allocation2 + $0xe0] sm:$0xff] }
  0x46   : > { %686 = vrot.lane.b32.xlu0 %v6930_v51, %s7905_s10  ;;  %v557_v43 = vld [vmem:[#allocation2 + $0xe1] sm:$0xff]  ;;  %517 = vst.msk [vmem:[#allocation4 + $0x2c] sm:$0xf] %vm505_vm2, %v8226_v30  ;;  %518 = vst.msk [vmem:[#allocation4 + $0x30] sm:$0xf] %vm505_vm2, %v8228_v31  ;;  %v8253_v44 = vpack.c.bf16 %v362_v40, %v362_v40  ;;  %v8255_v45 = vpack.c.bf16 %v363_v41, %v363_v41  ;;  %v8257_v46 = vpack.c.bf16 %v364_v42, %v364_v42  ;;  %v365_v47 = vld [vmem:[#allocation2 + $0xf0] sm:$0xff] }
  0x47   : > { %519 = vst.msk [vmem:[#allocation4 + $0x34] sm:$0xf] %vm505_vm2, %v8230_v32  ;;  %v366_v48 = vld [vmem:[#allocation2 + $0xf8] sm:$0xff]  ;;  %v367_v49 = vld [vmem:[#allocation2 + $0x108] sm:$0xff]  ;;  %520 = vst.msk [vmem:[#allocation4 + $0x38] sm:$0xf] %vm505_vm2, %v8241_v37  ;;  %v8268_v51 = vpack.c.bf16 %v365_v47, %v365_v47  ;;  %v6939_v61 = vpack.c.bf16 %v557_v43, %v557_v43 }
  0x48   : > { %521 = vst.msk [vmem:[#allocation4 + $0x3c] sm:$0xf] %vm505_vm2, %v8243_v38  ;;  %522 = vst.msk [vmem:[#allocation4 + $0x40] sm:$0xf] %vm505_vm2, %v8245_v39  ;;  %v8270_v52 = vpack.c.bf16 %v366_v48, %v366_v48  ;;  %v368_v54 = vld [vmem:[#allocation2 + $0x110] sm:$0xff]  ;;  %v559_v58 = vld [vmem:[#allocation2 + $0xf9] sm:$0xff] }
  0x49   : > { %684 = vrot.lane.b32.xlu1 %v6929_v53, %s7905_s10  ;;  %v8272_v53 = vpack.c.bf16 %v367_v49, %v367_v49  ;;  %523 = vst.msk [vmem:[#allocation4 + $0x44] sm:$0xf] %vm505_vm2, %v8253_v44  ;;  %524 = vst.msk [vmem:[#allocation4 + $0x48] sm:$0xf] %vm505_vm2, %v8255_v45  ;;  %v8280_v56 = vpack.c.bf16 %v368_v54, %v368_v54  ;;  %v370_v60 = vld [vmem:[#allocation2 + $0x128] sm:$0xff]  ;;  %v561_v4 = vld [vmem:[#allocation2 + $0x111] sm:$0xff]  ;;  %v6941_v8 = vpack.c.bf16 %v559_v58, %v559_v58 }
  0x4a   : > { %690 = vrot.lane.b32.xlu0 %v6932_v55, %s7905_s10  ;;  %v560_v55 = vld [vmem:[#allocation2 + $0x109] sm:$0xff]  ;;  %525 = vst.msk [vmem:[#allocation4 + $0x4c] sm:$0xf] %vm505_vm2, %v8257_v46  ;;  %526 = vst.msk [vmem:[#allocation4 + $0x50] sm:$0xf] %vm505_vm2, %v8268_v51  ;;  %v8294_v63 = vpack.c.bf16 %v370_v60, %v370_v60  ;;  %v562_v2 = vld [vmem:[#allocation2 + $0x121] sm:$0xff]  ;;  %v6943_v20 = vpack.c.bf16 %v561_v4, %v561_v4 }
  0x4b   : > { %527 = vst.msk [vmem:[#allocation4 + $0x54] sm:$0xf] %vm505_vm2, %v8270_v52  ;;  %528 = vst.msk [vmem:[#allocation4 + $0x58] sm:$0xf] %vm505_vm2, %v8272_v53  ;;  %v371_v5 = vld [vmem:[#allocation2 + $0x138] sm:$0xff]  ;;  %v372_v6 = vld [vmem:[#allocation2 + $0x140] sm:$0xff]  ;;  %v6944_v14 = vpack.c.bf16 %v562_v2, %v562_v2 }
  0x4c   : > { %529 = vst.msk [vmem:[#allocation4 + $0x5c] sm:$0xf] %vm505_vm2, %v8280_v56  ;;  %531 = vst.msk [vmem:[#allocation4 + $0x64] sm:$0xf] %vm505_vm2, %v8294_v63  ;;  %v8302_v9 = vpack.c.bf16 %v371_v5, %v371_v5  ;;  %v564_v11 = vld [vmem:[#allocation2 + $0x139] sm:$0xff]  ;;  %v563_v15 = vld [vmem:[#allocation2 + $0x129] sm:$0xff] }
  0x4d   : > { %688 = vrot.lane.b32.xlu1 %v6931_v57, %s7905_s10  ;;  %v6940_v57 = vpack.c.bf16 %v558_v29, %v558_v29  ;;  %v373_v16 = vld [vmem:[#allocation2 + $0x150] sm:$0xff]  ;;  %v374_v19 = vld [vmem:[#allocation2 + $0x158] sm:$0xff]  ;;  %v6946_v26 = vpack.c.bf16 %v564_v11, %v564_v11  ;;  %v375_v28 = vld [vmem:[#allocation2 + $0x168] sm:$0xff]  ;;  %v6945_v33 = vpack.c.bf16 %v563_v15, %v563_v15  ;;  %3015 = vst.msk [vmem:[#allocation3 + $0x38] sm:$0xff] %vm3006_vm13, %v7904_v0 }
  0x4e   : > { %694 = vrot.lane.b32.xlu0 %v6934_v59, %s7905_s10  ;;  %v369_v59 = vld [vmem:[#allocation2 + $0x120] sm:$0xff]  ;;  %532 = vst.msk [vmem:[#allocation4 + $0x68] sm:$0xf] %vm505_vm2, %v8302_v9  ;;  %v8312_v21 = vpack.c.bf16 %v373_v16, %v373_v16  ;;  %v566_v27 = vld [vmem:[#allocation2 + $0x151] sm:$0xff]  ;;  %v8322_v34 = vpack.c.bf16 %v375_v28, %v375_v28  ;;  %v568_v41 = vld [vmem:[#allocation2 + $0x169] sm:$0xff] }
  0x4f   : > { %v8292_v62 = vpack.c.bf16 %v369_v59, %v369_v59  ;;  %v376_v29 = vld [vmem:[#allocation2 + $0x170] sm:$0xff]  ;;  %v6948_v40 = vpack.c.bf16 %v566_v27, %v566_v27  ;;  %v567_v43 = vld [vmem:[#allocation2 + $0x159] sm:$0xff]  ;;  %v6950_v49 = vpack.c.bf16 %v568_v41, %v568_v41  ;;  %v798_v4 = vld [vmem:[#allocation2 + $0x22] sm:$0xff]  ;;  %3007 = vst.msk [vmem:[#allocation3] sm:$0xff] %vm3006_vm13, %v7904_v0 }
  0x50   : > { %534 = vst.msk [vmem:[#allocation4 + $0x70] sm:$0xf] %vm505_vm2, %v8312_v21  ;;  %v8324_v35 = vpack.c.bf16 %v376_v29, %v376_v29  ;;  %536 = vst.msk [vmem:[#allocation4 + $0x78] sm:$0xf] %vm505_vm2, %v8322_v34  ;;  %v310_v47 = vld [vmem:[%s8113_s9 + $0xf0] sm:$0xff]  ;;  %v311_v48 = vld [vmem:[%s8113_s9 + $0xf8] sm:$0xff]  ;;  %v6949_v54 = vpack.c.bf16 %v567_v43, %v567_v43 }
  0x51   : > { %692 = vrot.lane.b32.xlu1 %v6933_v3, %s7905_s10  ;;  %v6942_v3 = vpack.c.bf16 %v560_v55, %v560_v55  ;;  %530 = vst.msk [vmem:[#allocation4 + $0x60] sm:$0xf] %vm505_vm2, %v8292_v62  ;;  %v569_v55 = vld [vmem:[#allocation2 + $0x171] sm:$0xff]  ;;  %v797_v58 = vld [vmem:[#allocation2 + $0x1a] sm:$0xff]  ;;  %v803_v15 = vld [vmem:[#allocation2 + $0x62] sm:$0xff] }
  0x52   : > { %698 = vrot.lane.b32.xlu0 %v6936_v10, %s7905_s10  ;;  %v8304_v10 = vpack.c.bf16 %v372_v6, %v372_v6  ;;  %537 = vst.msk [vmem:[#allocation4 + $0x7c] sm:$0xf] %vm505_vm2, %v8324_v35  ;;  %v6951_v59 = vpack.c.bf16 %v569_v55, %v569_v55  ;;  %v796_v60 = vld [vmem:[#allocation2 + $0xa] sm:$0xff]  ;;  %v799_v2 = vld [vmem:[#allocation2 + $0x32] sm:$0xff]  ;;  %v800_v11 = vld [vmem:[#allocation2 + $0x3a] sm:$0xff] }
  0x53   : > { %343 = vst.msk [vmem:[#allocation2 + $0x181] sm:$0xff] %vm224_vm0, %v310_v47  ;;  %344 = vst.msk [vmem:[#allocation2 + $0x189] sm:$0xff] %vm224_vm0, %v311_v48  ;;  %v8346_v5 = vpack.c.bf16 %v799_v2, %v799_v2  ;;  %v801_v6 = vld [vmem:[#allocation2 + $0x4a] sm:$0xff]  ;;  %v8357_v16 = vpack.c.bf16 %v800_v11, %v800_v11  ;;  %v808_v47 = vld [vmem:[#allocation2 + $0x9a] sm:$0xff]  ;;  %vm3512_vm0 = vcmask 519424  }
  0x54   : > { %533 = vst.msk [vmem:[#allocation4 + $0x6c] sm:$0xf] %vm505_vm2, %v8304_v10  ;;  %v804_v28 = vld [vmem:[#allocation2 + $0x6a] sm:$0xff]  ;;  %v815_v2 = vld [vmem:[#allocation2 + $0xf2] sm:$0xff] }
  0x55   : > { %696 = vrot.lane.b32.xlu1 %v6935_v22, %s7905_s10  ;;  %v8314_v22 = vpack.c.bf16 %v374_v19, %v374_v19  ;;  %v802_v19 = vld [vmem:[#allocation2 + $0x52] sm:$0xff]  ;;  %v817_v11 = vld [vmem:[#allocation2 + $0x10a] sm:$0xff]  ;;  %3008 = vst.msk [vmem:[#allocation3 + $0x8] sm:$0xff] %vm3006_vm13, %v7904_v0  ;;  %3011 = vst.msk [vmem:[#allocation3 + $0x18] sm:$0xff] %vm3006_vm13, %v7904_v0 }
  0x56   : > { %702 = vrot.lane.b32.xlu0 %v6938_v36, %s7905_s10  ;;  %v565_v36 = vld [vmem:[#allocation2 + $0x141] sm:$0xff]  ;;  %v8365_v27 = vpack.c.bf16 %v802_v19, %v802_v19  ;;  %3012 = vst.msk [vmem:[#allocation3 + $0x20] sm:$0xff] %vm3006_vm13, %v7904_v0  ;;  %3017 = vst.msk [vmem:[#allocation3 + $0x48] sm:$0xff] %vm3006_vm13, %v7904_v0 }
  0x57   : > { %535 = vst.msk [vmem:[#allocation4 + $0x74] sm:$0xf] %vm505_vm2, %v8314_v22  ;;  %v6947_v42 = vpack.c.bf16 %v565_v36, %v565_v36  ;;  %v8371_v36 = vpack.c.bf16 %v804_v28, %v804_v28  ;;  %v816_v19 = vld [vmem:[#allocation2 + $0xfa] sm:$0xff]  ;;  %v819_v28 = vld [vmem:[#allocation2 + $0x122] sm:$0xff]  ;;  %vm4026_vm2 = vcmask 1044224  }
  0x58   : > { %3018 = vst.msk [vmem:[#allocation3 + $0x50] sm:$0xff] %vm3006_vm13, %v7904_v0  ;;  %3020 = vst.msk [vmem:[#allocation3 + $0x60] sm:$0xff] %vm3006_vm13, %v7904_v0 }
  0x59   : > { %700 = vrot.lane.b32.xlu1 %v6937_v50, %s7905_s10  ;;  %v795_v50 = vld [vmem:[#allocation2 + $0x2] sm:$0xff]  ;;  %3021 = vst.msk [vmem:[#allocation3 + $0x68] sm:$0xff] %vm3006_vm13, %v7904_v0  ;;  %3023 = vst.msk [vmem:[#allocation3 + $0x78] sm:$0xff] %vm3006_vm13, %v7904_v0 }
  0x5a   : > { %706 = vrot.lane.b32.xlu0 %v6940_v57, %s7905_s10  ;;  %v6952_v57 = vpack.c.bf16 %v795_v50, %v795_v50  ;;  %v6965_v50 = vpack.c.bf16 %v808_v47, %v808_v47  ;;  %3024 = vst.msk [vmem:[#allocation3 + $0x80] sm:$0xff] %vm3006_vm13, %v7904_v0  ;;  %3026 = vst.msk [vmem:[#allocation3 + $0x90] sm:$0xff] %vm3006_vm13, %v7904_v0 }
  0x5b   : > { %3027 = vst.msk [vmem:[#allocation3 + $0x98] sm:$0xff] %vm3006_vm13, %v7904_v0  ;;  %3029 = vst.msk [vmem:[#allocation3 + $0xa8] sm:$0xff] %vm3006_vm13, %v7904_v0 }
  0x5c   : > { %3030 = vst.msk [vmem:[#allocation3 + $0xb0] sm:$0xff] %vm3006_vm13, %v7904_v0  ;;  %3032 = vst.msk [vmem:[#allocation3 + $0xc0] sm:$0xff] %vm3006_vm13, %v7904_v0 }
  0x5d   : > { %704 = vrot.lane.b32.xlu1 %v6939_v61, %s7905_s10  ;;  %v8341_v61 = vpack.c.bf16 %v797_v58, %v797_v58  ;;  %3033 = vst.msk [vmem:[#allocation3 + $0xc8] sm:$0xff] %vm3006_vm13, %v7904_v0  ;;  %3035 = vst.msk [vmem:[#allocation3 + $0xd8] sm:$0xff] %vm3006_vm13, %v7904_v0 }
  0x5e   : > { %710 = vrot.lane.b32.xlu0 %v6942_v3, %s7905_s10  ;;  %v6953_v3 = vpack.c.bf16 %v796_v60, %v796_v60  ;;  %3036 = vst.msk [vmem:[#allocation3 + $0xe0] sm:$0xff] %vm3006_vm13, %v7904_v0  ;;  %3038 = vst.msk [vmem:[#allocation3 + $0xf0] sm:$0xff] %vm3006_vm13, %v7904_v0 }
  0x5f   : > { %3039 = vst.msk [vmem:[#allocation3 + $0xf8] sm:$0xff] %vm3006_vm13, %v7904_v0  ;;  %3041 = vst.msk [vmem:[#allocation3 + $0x108] sm:$0xff] %vm3006_vm13, %v7904_v0 }
  0x60   : > { %3042 = vst.msk [vmem:[#allocation3 + $0x110] sm:$0xff] %vm3006_vm13, %v7904_v0  ;;  %3044 = vst.msk [vmem:[#allocation3 + $0x120] sm:$0xff] %vm3006_vm13, %v7904_v0 }
  0x61   : > { %708 = vrot.lane.b32.xlu1 %v6941_v8, %s7905_s10  ;;  %v8349_v8 = vpack.c.bf16 %v798_v4, %v798_v4  ;;  %v814_v4 = vld [vmem:[#allocation2 + $0xe2] sm:$0xff]  ;;  %3045 = vst.msk [vmem:[#allocation3 + $0x128] sm:$0xff] %vm3006_vm13, %v7904_v0  ;;  %3047 = vst.msk [vmem:[#allocation3 + $0x138] sm:$0xff] %vm3006_vm13, %v7904_v0 }
  0x62   : > { %714 = vrot.lane.b32.xlu0 %v6944_v14, %s7905_s10  ;;  %v8353_v14 = vpack.c.bf16 %v801_v6, %v801_v6  ;;  %v6972_v6 = vpack.c.bf16 %v815_v2, %v815_v2  ;;  %3048 = vst.msk [vmem:[#allocation3 + $0x140] sm:$0xff] %vm3006_vm13, %v7904_v0  ;;  %3050 = vst.msk [vmem:[#allocation3 + $0x150] sm:$0xff] %vm3006_vm13, %v7904_v0 }
  0x63   : > { %3051 = vst.msk [vmem:[#allocation3 + $0x158] sm:$0xff] %vm3006_vm13, %v7904_v0  ;;  %3053 = vst.msk [vmem:[#allocation3 + $0x168] sm:$0xff] %vm3006_vm13, %v7904_v0 }
  0x64   : > { %3054 = vst.msk [vmem:[#allocation3 + $0x170] sm:$0xff] %vm3006_vm13, %v7904_v0  ;;  %3056 = vst.msk [vmem:[#allocation3 + $0x180] sm:$0xff] %vm3006_vm13, %v7904_v0 }
  0x65   : > { %712 = vrot.lane.b32.xlu1 %v6943_v20, %s7905_s10  ;;  %v8361_v20 = vpack.c.bf16 %v803_v15, %v803_v15  ;;  %v6971_v15 = vpack.c.bf16 %v814_v4, %v814_v4  ;;  %3057 = vst.msk [vmem:[#allocation3 + $0x188] sm:$0xff] %vm3006_vm13, %v7904_v0  ;;  %3059 = vst.msk [vmem:[#allocation3 + $0x198] sm:$0xff] %vm3006_vm13, %v7904_v0 }
  0x66   : > { %718 = vrot.lane.b32.xlu0 %v6946_v26, %s7905_s10  ;;  %v805_v26 = vld [vmem:[#allocation2 + $0x7a] sm:$0xff]  ;;  %3060 = vst.msk [vmem:[#allocation3 + $0x1a0] sm:$0xff] %vm3006_vm13, %v7904_v0 }
  0x67   : > { %v6962_v29 = vpack.c.bf16 %v805_v26, %v805_v26  ;;  %v6974_v26 = vpack.c.bf16 %v817_v11, %v817_v11  ;;  %v826_v11 = vld [vmem:[#allocation2 + $0x172] sm:$0xff]  ;;  %3016 = vst.msk [vmem:[#allocation3 + $0x40] sm:$0x3] %vm3009_vm14, %v7904_v0  ;;  %3010 = vst.msk [vmem:[#allocation3 + $0x10] sm:$0x3] %vm3009_vm14, %v7904_v0 }
  0x68   : > { %3013 = vst.msk [vmem:[#allocation3 + $0x28] sm:$0x3] %vm3009_vm14, %v7904_v0  ;;  %3019 = vst.msk [vmem:[#allocation3 + $0x58] sm:$0x3] %vm3009_vm14, %v7904_v0 }
  0x69   : > { %716 = vrot.lane.b32.xlu1 %v6945_v33, %s7905_s10  ;;  %v807_v33 = vld [vmem:[#allocation2 + $0x92] sm:$0xff]  ;;  %3022 = vst.msk [vmem:[#allocation3 + $0x70] sm:$0x3] %vm3009_vm14, %v7904_v0  ;;  %3025 = vst.msk [vmem:[#allocation3 + $0x88] sm:$0x3] %vm3009_vm14, %v7904_v0 }
  0x6a   : > { %722 = vrot.lane.b32.xlu0 %v6948_v40, %s7905_s10  ;;  %v806_v40 = vld [vmem:[#allocation2 + $0x82] sm:$0xff]  ;;  %v6964_v41 = vpack.c.bf16 %v807_v33, %v807_v33  ;;  %v818_v33 = vld [vmem:[#allocation2 + $0x112] sm:$0xff]  ;;  %3028 = vst.msk [vmem:[#allocation3 + $0xa0] sm:$0x3] %vm3009_vm14, %v7904_v0  ;;  %3031 = vst.msk [vmem:[#allocation3 + $0xb8] sm:$0x3] %vm3009_vm14, %v7904_v0 }
  0x6b   : > { %v6963_v43 = vpack.c.bf16 %v806_v40, %v806_v40  ;;  %v6976_v40 = vpack.c.bf16 %v819_v28, %v819_v28  ;;  %3034 = vst.msk [vmem:[#allocation3 + $0xd0] sm:$0x3] %vm3009_vm14, %v7904_v0  ;;  %3037 = vst.msk [vmem:[#allocation3 + $0xe8] sm:$0x3] %vm3009_vm14, %v7904_v0 }
  0x6c   : > { %3040 = vst.msk [vmem:[#allocation3 + $0x100] sm:$0x3] %vm3009_vm14, %v7904_v0  ;;  %3043 = vst.msk [vmem:[#allocation3 + $0x118] sm:$0x3] %vm3009_vm14, %v7904_v0 }
  0x6d   : > { %720 = vrot.lane.b32.xlu1 %v6947_v42, %s7905_s10  ;;  %v809_v42 = vld [vmem:[#allocation2 + $0xaa] sm:$0xff]  ;;  %3046 = vst.msk [vmem:[#allocation3 + $0x130] sm:$0x3] %vm3009_vm14, %v7904_v0  ;;  %3049 = vst.msk [vmem:[#allocation3 + $0x148] sm:$0x3] %vm3009_vm14, %v7904_v0 }
  0x6e   : > { %726 = vrot.lane.b32.xlu0 %v6950_v49, %s7905_s10  ;;  %v6966_v48 = vpack.c.bf16 %v809_v42, %v809_v42  ;;  %v811_v49 = vld [vmem:[#allocation2 + $0xc2] sm:$0xff]  ;;  %v6975_v42 = vpack.c.bf16 %v818_v33, %v818_v33  ;;  %3052 = vst.msk [vmem:[#allocation3 + $0x160] sm:$0x3] %vm3009_vm14, %v7904_v0  ;;  %3055 = vst.msk [vmem:[#allocation3 + $0x178] sm:$0x3] %vm3009_vm14, %v7904_v0 }
  0x6f   : > { %v6968_v55 = vpack.c.bf16 %v811_v49, %v811_v49  ;;  %3058 = vst.msk [vmem:[#allocation3 + $0x190] sm:$0x3] %vm3009_vm14, %v7904_v0  ;;  %3061 = vst.msk [vmem:[#allocation3 + $0x1a8] sm:$0x3] %vm3009_vm14, %v7904_v0 }
  0x71   : > { %724 = vrot.lane.b32.xlu1 %v6949_v54, %s7905_s10  ;;  %v810_v54 = vld [vmem:[#allocation2 + $0xb2] sm:$0xff] }
  0x72   : > { %923 = vrot.lane.b32.xlu0 %v6952_v57, %s7906_s11  ;;  %v813_v57 = vld [vmem:[#allocation2 + $0xda] sm:$0xff]  ;;  %v6967_v58 = vpack.c.bf16 %v810_v54, %v810_v54  ;;  %v822_v54 = vld [vmem:[#allocation2 + $0x142] sm:$0xff] }
  0x73   : > { %v6970_v60 = vpack.c.bf16 %v813_v57, %v813_v57  ;;  %v825_v57 = vld [vmem:[#allocation2 + $0x16a] sm:$0xff] }
  0x75   : > { %728 = vrot.lane.b32.xlu1 %v6951_v59, %s7905_s10  ;;  %v812_v59 = vld [vmem:[#allocation2 + $0xca] sm:$0xff] }
  0x76   : > { %927 = vrot.lane.b32.xlu0 %v8341_v61, %s7906_s11 }
  0x79   : > { %925 = vrot.lane.b32.xlu1 %v6953_v3, %s7906_s11  ;;  %v6969_v3 = vpack.c.bf16 %v812_v59, %v812_v59 }
  0x7a   : > { %931 = vrot.lane.b32.xlu0 %v8346_v5, %s7906_s11 }
  0x7d   : > { %929 = vrot.lane.b32.xlu1 %v8349_v8, %s7906_s11 }
  0x7e   : > { %935 = vrot.lane.b32.xlu0 %v8353_v14, %s7906_s11 }
  0x81   : > { %933 = vrot.lane.b32.xlu1 %v8357_v16, %s7906_s11 }
  0x82   : > { %939 = vrot.lane.b32.xlu0 %v8361_v20, %s7906_s11 }
  0x85   : > { %937 = vrot.lane.b32.xlu1 %v8365_v27, %s7906_s11 }
  0x86   : > { %943 = vrot.lane.b32.xlu0 %v6962_v29, %s7906_s11  ;;  %v6973_v29 = vpack.c.bf16 %v816_v19, %v816_v19  ;;  %v6983_v19 = vpack.c.bf16 %v826_v11, %v826_v11  ;;  %v1083_v11 = vld [vmem:[#allocation2 + $0x188] sm:$0xff] }
  0x89   : > { %941 = vrot.lane.b32.xlu1 %v8371_v36, %s7906_s11 }
  0x8a   : > { %947 = vrot.lane.b32.xlu0 %v6964_v41, %s7906_s11  ;;  %v821_v41 = vld [vmem:[#allocation2 + $0x13a] sm:$0xff] }
  0x8b   : > { %v6978_v47 = vpack.c.bf16 %v821_v41, %v821_v41 }
  0x8d   : > { %945 = vrot.lane.b32.xlu1 %v6963_v43, %s7906_s11  ;;  %v820_v43 = vld [vmem:[#allocation2 + $0x12a] sm:$0xff] }
  0x8e   : > { %951 = vrot.lane.b32.xlu0 %v6966_v48, %s7906_s11  ;;  %v823_v48 = vld [vmem:[#allocation2 + $0x152] sm:$0xff]  ;;  %v6977_v49 = vpack.c.bf16 %v820_v43, %v820_v43 }
  0x91   : > { %949 = vrot.lane.b32.xlu1 %v6965_v50, %s7906_s11  ;;  %v667_v50 = vpop.permute.xlu0 %666 }
  0x92   : > { %955 = vrot.lane.b32.xlu0 %v6968_v55, %s7906_s11  ;;  %763 = vst.msk [vmem:[#allocation4] sm:$0xf] %vm762_vm3, %v667_v50  ;;  %v6980_v55 = vpack.c.bf16 %v823_v48, %v823_v48 }
  0x95   : > { %953 = vrot.lane.b32.xlu1 %v6967_v58, %s7906_s11  ;;  %v6979_v58 = vpack.c.bf16 %v822_v54, %v822_v54 }
  0x96   : > { %959 = vrot.lane.b32.xlu0 %v6970_v60, %s7906_s11  ;;  %v824_v60 = vld [vmem:[#allocation2 + $0x15a] sm:$0xff] }
  0x97   : > { %v6981_v4 = vpack.c.bf16 %v824_v60, %v824_v60 }
  0x99   : > { %957 = vrot.lane.b32.xlu1 %v6969_v3, %s7906_s11  ;;  %v6982_v3 = vpack.c.bf16 %v825_v57, %v825_v57 }
  0x9a   : > { %963 = vrot.lane.b32.xlu0 %v6972_v6, %s7906_s11 }
  0x9d   : > { %961 = vrot.lane.b32.xlu1 %v6971_v15, %s7906_s11 }
  0x9e   : > { %967 = vrot.lane.b32.xlu0 %v6974_v26, %s7906_s11 }
  0xa1   : > { %965 = vrot.lane.b32.xlu1 %v6973_v29, %s7906_s11 }
  0xa2   : > { %971 = vrot.lane.b32.xlu0 %v6976_v40, %s7906_s11  ;;  %v669_v59 = vpop.permute.xlu0 %668 }
  0xa3   : > { %764 = vst.msk [vmem:[#allocation4 + $0x4] sm:$0xf] %vm762_vm3, %v669_v59 }
  0xa5   : > { %969 = vrot.lane.b32.xlu1 %v6975_v42, %s7906_s11 }
  0xa6   : > { %975 = vrot.lane.b32.xlu0 %v6978_v47, %s7906_s11 }
  0xa9   : > { %973 = vrot.lane.b32.xlu1 %v6977_v49, %s7906_s11 }
  0xaa   : > { %979 = vrot.lane.b32.xlu0 %v6980_v55, %s7906_s11 }
  0xab   : > { %v671_v2 = vpop.permute.xlu1 %670 }
  0xac   : > { %765 = vst.msk [vmem:[#allocation4 + $0x8] sm:$0xf] %vm762_vm3, %v671_v2  ;;  %v675_v6 = vpop.permute.xlu0 %674 }
  0xad   : > { %977 = vrot.lane.b32.xlu1 %v6979_v58, %s7906_s11  ;;  %767 = vst.msk [vmem:[#allocation4 + $0x10] sm:$0xf] %vm762_vm3, %v675_v6  ;;  %v1309_v6 = vld [vmem:[#allocation2 + $0x19] sm:$0xff] }
  0xae   : > { %983 = vrot.lane.b32.xlu0 %v6982_v3, %s7906_s11 }
  0xaf   : > { %v673_v15 = vpop.permute.xlu1 %672 }
  0xb0   : > { %766 = vst.msk [vmem:[#allocation4 + $0xc] sm:$0xf] %vm762_vm3, %v673_v15  ;;  %v679_v26 = vpop.permute.xlu0 %678 }
  0xb1   : > { %981 = vrot.lane.b32.xlu1 %v6981_v4, %s7906_s11  ;;  %769 = vst.msk [vmem:[#allocation4 + $0x18] sm:$0xf] %vm762_vm3, %v679_v26 }
  0xb2   : > { %1180 = vrot.lane.b32.xlu0 %v8187_v1, %s7907_s12 }
  0xb3   : > { %v677_v28 = vpop.permute.xlu1 %676 }
  0xb4   : > { %768 = vst.msk [vmem:[#allocation4 + $0x14] sm:$0xf] %vm762_vm3, %v677_v28  ;;  %v683_v29 = vpop.permute.xlu0 %682  ;;  %v1310_v28 = vld [vmem:[#allocation2 + $0x21] sm:$0xff] }
  0xb5   : > { %985 = vrot.lane.b32.xlu1 %v6983_v19, %s7906_s11  ;;  %771 = vst.msk [vmem:[#allocation4 + $0x20] sm:$0xf] %vm762_vm3, %v683_v29  ;;  %v1311_v19 = vld [vmem:[#allocation2 + $0x31] sm:$0xff]  ;;  %s7913_s11 = smov 72  }
  0xb6   : > { %1184 = vrot.lane.b32.xlu0 %v8199_v12, %s7907_s12  ;;  %v8497_v29 = vpack.c.bf16 %v1311_v19, %v1311_v19 }
  0xb7   : > { %v681_v33 = vpop.permute.xlu1 %680 }
  0xb8   : > { %770 = vst.msk [vmem:[#allocation4 + $0x1c] sm:$0xf] %vm762_vm3, %v681_v33  ;;  %v687_v40 = vpop.permute.xlu0 %686  ;;  %v1313_v33 = vld [vmem:[#allocation2 + $0x49] sm:$0xff] }
  0xb9   : > { %1182 = vrot.lane.b32.xlu1 %v8193_v7, %s7907_s12  ;;  %773 = vst.msk [vmem:[#allocation4 + $0x28] sm:$0xf] %vm762_vm3, %v687_v40  ;;  %v7017_v40 = vpack.c.bf16 %v1310_v28, %v1310_v28 }
  0xba   : > { %1188 = vrot.lane.b32.xlu0 %v8207_v17, %s7907_s12 }
  0xbb   : > { %v685_v1 = vpop.permute.xlu1 %684 }
  0xbc   : > { %772 = vst.msk [vmem:[#allocation4 + $0x24] sm:$0xf] %vm762_vm3, %v685_v1  ;;  %v691_v41 = vpop.permute.xlu0 %690 }
  0xbd   : > { %1186 = vrot.lane.b32.xlu1 %v8201_v13, %s7907_s12  ;;  %775 = vst.msk [vmem:[#allocation4 + $0x30] sm:$0xf] %vm762_vm3, %v691_v41 }
  0xbe   : > { %1192 = vrot.lane.b32.xlu0 %v8216_v23, %s7907_s12 }
  0xbf   : > { %v689_v42 = vpop.permute.xlu1 %688 }
  0xc0   : > { %774 = vst.msk [vmem:[#allocation4 + $0x2c] sm:$0xf] %vm762_vm3, %v689_v42  ;;  %v695_v7 = vpop.permute.xlu0 %694  ;;  %v8504_v42 = vpack.c.bf16 %v1313_v33, %v1313_v33 }
  0xc1   : > { %1190 = vrot.lane.b32.xlu1 %v8209_v18, %s7907_s12  ;;  %777 = vst.msk [vmem:[#allocation4 + $0x38] sm:$0xf] %vm762_vm3, %v695_v7  ;;  %v1315_v7 = vld [vmem:[#allocation2 + $0x61] sm:$0xff] }
  0xc2   : > { %1196 = vrot.lane.b32.xlu0 %v8220_v25, %s7907_s12 }
  0xc3   : > { %v693_v43 = vpop.permute.xlu1 %692 }
  0xc4   : > { %776 = vst.msk [vmem:[#allocation4 + $0x34] sm:$0xf] %vm762_vm3, %v693_v43  ;;  %v699_v47 = vpop.permute.xlu0 %698 }
  0xc5   : > { %1194 = vrot.lane.b32.xlu1 %v8218_v24, %s7907_s12  ;;  %779 = vst.msk [vmem:[#allocation4 + $0x40] sm:$0xf] %vm762_vm3, %v699_v47 }
  0xc6   : > { %1200 = vrot.lane.b32.xlu0 %v8228_v31, %s7907_s12 }
  0xc7   : > { %v697_v48 = vpop.permute.xlu1 %696 }
  0xc8   : > { %778 = vst.msk [vmem:[#allocation4 + $0x3c] sm:$0xf] %vm762_vm3, %v697_v48  ;;  %v703_v49 = vpop.permute.xlu0 %702  ;;  %v1314_v48 = vld [vmem:[#allocation2 + $0x51] sm:$0xff] }
  0xc9   : > { %1198 = vrot.lane.b32.xlu1 %v8226_v30, %s7907_s12  ;;  %781 = vst.msk [vmem:[#allocation4 + $0x48] sm:$0xf] %vm762_vm3, %v703_v49 }
  0xca   : > { %1204 = vrot.lane.b32.xlu0 %v8241_v37, %s7907_s12 }
  0xcb   : > { %v701_v50 = vpop.permute.xlu1 %700 }
  0xcc   : > { %780 = vst.msk [vmem:[#allocation4 + $0x44] sm:$0xf] %vm762_vm3, %v701_v50  ;;  %v707_v54 = vpop.permute.xlu0 %706  ;;  %v8513_v50 = vpack.c.bf16 %v1315_v7, %v1315_v7  ;;  %v2344_v7 = vld [vmem:[#allocation2 + $0x7a] sm:$0xff] }
  0xcd   : > { %1202 = vrot.lane.b32.xlu1 %v8230_v32, %s7907_s12  ;;  %783 = vst.msk [vmem:[#allocation4 + $0x50] sm:$0xf] %vm762_vm3, %v707_v54  ;;  %v1317_v54 = vld [vmem:[#allocation2 + $0x79] sm:$0xff] }
  0xce   : > { %1208 = vrot.lane.b32.xlu0 %v8245_v39, %s7907_s12 }
  0xcf   : > { %v705_v55 = vpop.permute.xlu1 %704 }
  0xd0   : > { %782 = vst.msk [vmem:[#allocation4 + $0x4c] sm:$0xf] %vm762_vm3, %v705_v55  ;;  %v711_v57 = vpop.permute.xlu0 %710  ;;  %v8518_v55 = vpack.c.bf16 %v1314_v48, %v1314_v48 }
  0xd1   : > { %1206 = vrot.lane.b32.xlu1 %v8243_v38, %s7907_s12  ;;  %785 = vst.msk [vmem:[#allocation4 + $0x58] sm:$0xf] %vm762_vm3, %v711_v57 }
  0xd2   : > { %1212 = vrot.lane.b32.xlu0 %v8255_v45, %s7907_s12 }
  0xd3   : > { %v709_v58 = vpop.permute.xlu1 %708 }
  0xd4   : > { %784 = vst.msk [vmem:[#allocation4 + $0x54] sm:$0xf] %vm762_vm3, %v709_v58  ;;  %v715_v59 = vpop.permute.xlu0 %714  ;;  %v1316_v58 = vld [vmem:[#allocation2 + $0x69] sm:$0xff] }
  0xd5   : > { %1210 = vrot.lane.b32.xlu1 %v8253_v44, %s7907_s12  ;;  %787 = vst.msk [vmem:[#allocation4 + $0x60] sm:$0xf] %vm762_vm3, %v715_v59 }
  0xd6   : > { %1216 = vrot.lane.b32.xlu0 %v8268_v51, %s7907_s12 }
  0xd7   : > { %v713_v39 = vpop.permute.xlu1 %712 }
  0xd8   : > { %786 = vst.msk [vmem:[#allocation4 + $0x5c] sm:$0xf] %vm762_vm3, %v713_v39  ;;  %v719_v60 = vpop.permute.xlu0 %718  ;;  %v8523_v39 = vpack.c.bf16 %v1317_v54, %v1317_v54 }
  0xd9   : > { %1214 = vrot.lane.b32.xlu1 %v8257_v46, %s7907_s12  ;;  %789 = vst.msk [vmem:[#allocation4 + $0x68] sm:$0xf] %vm762_vm3, %v719_v60  ;;  %v8528_v60 = vpack.c.bf16 %v1316_v58, %v1316_v58 }
  0xda   : > { %1220 = vrot.lane.b32.xlu0 %v8272_v53, %s7907_s12 }
  0xdb   : > { %v717_v2 = vpop.permute.xlu1 %716 }
  0xdc   : > { %788 = vst.msk [vmem:[#allocation4 + $0x64] sm:$0xf] %vm762_vm3, %v717_v2  ;;  %v723_v44 = vpop.permute.xlu0 %722 }
  0xdd   : > { %1218 = vrot.lane.b32.xlu1 %v8270_v52, %s7907_s12  ;;  %791 = vst.msk [vmem:[#allocation4 + $0x70] sm:$0xf] %vm762_vm3, %v723_v44  ;;  %v1318_v44 = vld [vmem:[#allocation2 + $0x81] sm:$0xff] }
  0xde   : > { %1224 = vrot.lane.b32.xlu0 %v8292_v62, %s7907_s12 }
  0xdf   : > { %v721_v51 = vpop.permute.xlu1 %720 }
  0xe0   : > { %790 = vst.msk [vmem:[#allocation4 + $0x6c] sm:$0xf] %vm762_vm3, %v721_v51  ;;  %v727_v3 = vpop.permute.xlu0 %726 }
  0xe1   : > { %1222 = vrot.lane.b32.xlu1 %v8280_v56, %s7907_s12  ;;  %793 = vst.msk [vmem:[#allocation4 + $0x78] sm:$0xf] %vm762_vm3, %v727_v3  ;;  %v1082_v56 = vld [vmem:[#allocation2 + $0x180] sm:$0xff]  ;;  %v8536_v3 = vpack.c.bf16 %v1318_v44, %v1318_v44  ;;  %v1576_v44 = vld [vmem:[#allocation2 + $0x92] sm:$0xff] }
  0xe2   : > { %1228 = vrot.lane.b32.xlu0 %v8302_v9, %s7907_s12 }
  0xe3   : > { %v725_v53 = vpop.permute.xlu1 %724 }
  0xe4   : > { %792 = vst.msk [vmem:[#allocation4 + $0x74] sm:$0xf] %vm762_vm3, %v725_v53  ;;  %v924_v52 = vpop.permute.xlu0 %923 }
  0xe5   : > { %1226 = vrot.lane.b32.xlu1 %v8294_v63, %s7907_s12  ;;  %1020 = vst.msk [vmem:[#allocation4] sm:$0xf] %vm1019_vm4, %v924_v52  ;;  %v7014_v63 = vpack.c.bf16 %v1082_v56, %v1082_v56  ;;  %v7751_v56 = vld [vmem:[%s10292_s1 + $0x28] ss:$0 sps:$4 sm:$0x11]  }
  0xe6   : > { %1232 = vrot.lane.b32.xlu0 %v8312_v21, %s7907_s12 }
  0xe7   : > { %v729_v62 = vpop.permute.xlu1 %728 }
  0xe8   : > { %794 = vst.msk [vmem:[#allocation4 + $0x7c] sm:$0xf] %vm762_vm3, %v729_v62  ;;  %v928_v9 = vpop.permute.xlu0 %927 }
  0xe9   : > { %1230 = vrot.lane.b32.xlu1 %v8304_v10, %s7907_s12  ;;  %1022 = vst.msk [vmem:[#allocation4 + $0x8] sm:$0xf] %vm1019_vm4, %v928_v9  ;;  %v7016_v10 = vpack.c.bf16 %v1309_v6, %v1309_v6  ;;  %v7910_v9 = vmov 0  }
  0xea   : > { %1236 = vrot.lane.b32.xlu0 %v8322_v34, %s7907_s12  ;;  %v7015_v34 = vpack.c.bf16 %v1083_v11, %v1083_v11  ;;  %v7752_v11 = vld [vmem:[%s10292_s1 + $0x20] sm:$0xff]  }
  0xeb   : > { %v926_v4 = vpop.permute.xlu1 %925 }
  0xec   : > { %1021 = vst.msk [vmem:[#allocation4 + $0x4] sm:$0xf] %vm1019_vm4, %v926_v4  ;;  %v932_v21 = vpop.permute.xlu0 %931  ;;  %v2809_v4 = vsel %vm2807_vm5, 65535, %v7910_v9 }
  0xed   : > { %1234 = vrot.lane.b32.xlu1 %v8314_v22, %s7907_s12  ;;  %1024 = vst.msk [vmem:[#allocation4 + $0x10] sm:$0xf] %vm1019_vm4, %v932_v21 }
  0xee   : > { %1240 = vrot.lane.b32.xlu0 %v7014_v63, %s7907_s12 }
  0xef   : > { %v930_v15 = vpop.permute.xlu1 %929 }
  0xf0   : > { %1023 = vst.msk [vmem:[#allocation4 + $0xc] sm:$0xf] %vm1019_vm4, %v930_v15  ;;  %v936_v26 = vpop.permute.xlu0 %935 }
  0xf1   : > { %1238 = vrot.lane.b32.xlu1 %v8324_v35, %s7907_s12  ;;  %1026 = vst.msk [vmem:[#allocation4 + $0x18] sm:$0xf] %vm1019_vm4, %v936_v26  ;;  %v1312_v35 = vld [vmem:[#allocation2 + $0x39] sm:$0xff]  ;;  %v7755_v26 = vld [vmem:[%s10292_s1 + $0x8] sm:$0xff]  }
  0xf2   : > { %1437 = vrot.lane.b32.xlu0 %v7016_v10, %s7908_s13  ;;  %v8508_v43 = vpack.c.bf16 %v1312_v35, %v1312_v35 }
  0xf3   : > { %v934_v22 = vpop.permute.xlu1 %933 }
  0xf4   : > { %1025 = vst.msk [vmem:[#allocation4 + $0x14] sm:$0xf] %vm1019_vm4, %v934_v22  ;;  %v940_v1 = vpop.permute.xlu0 %939  ;;  %v7756_v22 = vld [vmem:[%s10292_s1] sm:$0xff]  }
  0xf5   : > { %1242 = vrot.lane.b32.xlu1 %v7015_v34, %s7907_s12  ;;  %1028 = vst.msk [vmem:[#allocation4 + $0x20] sm:$0xf] %vm1019_vm4, %v940_v1 }
  0xf6   : > { %1441 = vrot.lane.b32.xlu0 %v8497_v29, %s7908_s13 }
  0xf7   : > { %v938_v41 = vpop.permute.xlu1 %937 }
  0xf8   : > { %1027 = vst.msk [vmem:[#allocation4 + $0x1c] sm:$0xf] %vm1019_vm4, %v938_v41  ;;  %v944_v47 = vpop.permute.xlu0 %943 }
  0xf9   : > { %1439 = vrot.lane.b32.xlu1 %v7017_v40, %s7908_s13  ;;  %1030 = vst.msk [vmem:[#allocation4 + $0x28] sm:$0xf] %vm1019_vm4, %v944_v47  ;;  %v2343_v47 = vld [vmem:[#allocation2 + $0x6a] sm:$0xff] }
  0xfa   : > { %1445 = vrot.lane.b32.xlu0 %v8504_v42, %s7908_s13 }
  0xfb   : > { %v942_v49 = vpop.permute.xlu1 %941 }
  0xfc   : > { %1029 = vst.msk [vmem:[#allocation4 + $0x24] sm:$0xf] %vm1019_vm4, %v942_v49  ;;  %v948_v57 = vpop.permute.xlu0 %947  ;;  %v1319_v49 = vld [vmem:[#allocation2 + $0x91] sm:$0xff] }
  0xfd   : > { %1443 = vrot.lane.b32.xlu1 %v8508_v43, %s7908_s13  ;;  %1032 = vst.msk [vmem:[#allocation4 + $0x30] sm:$0xf] %vm1019_vm4, %v948_v57  ;;  %v7026_v58 = vpack.c.bf16 %v1319_v49, %v1319_v49 }
  0xfe   : > { %1449 = vrot.lane.b32.xlu0 %v8513_v50, %s7908_s13 }
  0xff   : > { %v946_v59 = vpop.permute.xlu1 %945 }
 0x100   : > { %1031 = vst.msk [vmem:[#allocation4 + $0x2c] sm:$0xf] %vm1019_vm4, %v946_v59  ;;  %v952_v2 = vpop.permute.xlu0 %951 }
 0x101   : > { %1447 = vrot.lane.b32.xlu1 %v8518_v55, %s7908_s13  ;;  %1034 = vst.msk [vmem:[#allocation4 + $0x38] sm:$0xf] %vm1019_vm4, %v952_v2 }
 0x102   : > { %1453 = vrot.lane.b32.xlu0 %v8523_v39, %s7908_s13 }
 0x103   : > { %v950_v51 = vpop.permute.xlu1 %949 }
 0x104   : > { %1033 = vst.msk [vmem:[#allocation4 + $0x34] sm:$0xf] %vm1019_vm4, %v950_v51  ;;  %v956_v53 = vpop.permute.xlu0 %955 }
 0x105   : > { %1451 = vrot.lane.b32.xlu1 %v8528_v60, %s7908_s13  ;;  %1036 = vst.msk [vmem:[#allocation4 + $0x40] sm:$0xf] %vm1019_vm4, %v956_v53 }
 0x106   : > { %1694 = vrot.lane.b32.xlu0 %v8341_v61, %s7909_s14  ;;  %v2811_v61 = vand.u32 %v7751_v56, %v2809_v4  ;;  %v1577_v56 = vld [vmem:[#allocation2 + $0x9a] sm:$0xff] }
 0x107   : > { %v954_v52 = vpop.permute.xlu1 %953  ;;  %v7059_v4 = vpack.c.bf16 %v1577_v56, %v1577_v56 }
 0x108   : > { %1035 = vst.msk [vmem:[#allocation4 + $0x3c] sm:$0xf] %vm1019_vm4, %v954_v52  ;;  %v960_v62 = vpop.permute.xlu0 %959  ;;  %7617 = vmatprep.subr.bf16.mxu0 %v2811_v61  ;;  %v7058_v52 = vpack.c.bf16 %v1576_v44, %v1576_v44 }
 0x109   : > { %1455 = vrot.lane.b32.xlu1 %v8536_v3, %s7908_s13  ;;  %1038 = vst.msk [vmem:[#allocation4 + $0x48] sm:$0xf] %vm1019_vm4, %v960_v62  ;;  %7618 = vmatpush3.bf16.msra.mxu0 %v2811_v61 }
 0x10a   : > { %1698 = vrot.lane.b32.xlu0 %v8346_v5, %s7909_s14  ;;  %7619 = vmatprep.subr.bf16.mxu0 %v7752_v11 }
 0x10b   : > { %v958_v63 = vpop.permute.xlu1 %957 }
 0x10c   : > { %1037 = vst.msk [vmem:[#allocation4 + $0x44] sm:$0xf] %vm1019_vm4, %v958_v63  ;;  %v964_v6 = vpop.permute.xlu0 %963 }
 0x10d   : > { %1696 = vrot.lane.b32.xlu1 %v8349_v8, %s7909_s14  ;;  %1040 = vst.msk [vmem:[#allocation4 + $0x50] sm:$0xf] %vm1019_vm4, %v964_v6  ;;  %7620 = vmatpush3.bf16.msra.mxu0 %v7752_v11  ;;  %v2091_v11 = vld [vmem:[#allocation2 + $0xa9] sm:$0xff] }
 0x10e   : > { %1952 = vrot.lane.b32.xlu0 %v8199_v12, %s7911_s17  ;;  %v7753_v12 = vld [vmem:[%s10292_s1 + $0x18] sm:$0xff]  }
 0x10f   : > { %v962_v21 = vpop.permute.xlu1 %961  ;;  %7621 = vmatprep.subr.bf16.mxu0 %v7753_v12 }
 0x110   : > { %1039 = vst.msk [vmem:[#allocation4 + $0x4c] sm:$0xf] %vm1019_vm4, %v962_v21  ;;  %v968_v8 = vpop.permute.xlu0 %967 }
 0x111   : > { %1700 = vrot.lane.b32.xlu1 %v8357_v16, %s7909_s14  ;;  %1042 = vst.msk [vmem:[#allocation4 + $0x58] sm:$0xf] %vm1019_vm4, %v968_v8  ;;  %7622 = vmatpush3.bf16.msra.mxu0 %v7753_v12 }
 0x112   : > { %1956 = vrot.lane.b32.xlu0 %v8207_v17, %s7911_s17  ;;  %v7754_v17 = vld [vmem:[%s10292_s1 + $0x10] sm:$0xff]  }
 0x113   : > { %v966_v15 = vpop.permute.xlu1 %965  ;;  %7623 = vmatprep.subr.bf16.mxu0 %v7754_v17 }
 0x114   : > { %1041 = vst.msk [vmem:[#allocation4 + $0x54] sm:$0xf] %vm1019_vm4, %v966_v15  ;;  %v972_v10 = vpop.permute.xlu0 %971  ;;  %v7122_v15 = vpack.c.bf16 %v2091_v11, %v2091_v11  ;;  %v1584_v11 = vld [vmem:[#allocation2 + $0xf2] sm:$0xff] }
 0x115   : > { %1954 = vrot.lane.b32.xlu1 %v8201_v13, %s7911_s17  ;;  %1044 = vst.msk [vmem:[#allocation4 + $0x60] sm:$0xf] %vm1019_vm4, %v972_v10  ;;  %7624 = vmatpush3.bf16.msra.mxu0 %v7754_v17 }
 0x116   : > { %2209 = vrot.lane.b32.xlu0 %v8497_v29, %s7912_s6  ;;  %7625 = vmatprep.subr.bf16.mxu0 %v7755_v26 }
 0x117   : > { %v970_v19 = vpop.permute.xlu1 %969 }
 0x118   : > { %1043 = vst.msk [vmem:[#allocation4 + $0x5c] sm:$0xf] %vm1019_vm4, %v970_v19  ;;  %v976_v13 = vpop.permute.xlu0 %975 }
 0x119   : > { %1958 = vrot.lane.b32.xlu1 %v8209_v18, %s7911_s17  ;;  %1046 = vst.msk [vmem:[#allocation4 + $0x68] sm:$0xf] %vm1019_vm4, %v976_v13  ;;  %7626 = vmatpush3.bf16.msra.mxu0 %v7755_v26  ;;  %v2349_v26 = vld [vmem:[#allocation2 + $0xb2] sm:$0xff] }
 0x11a   : > { %2213 = vrot.lane.b32.xlu0 %v8504_v42, %s7912_s6  ;;  %7627 = vmatprep.subr.bf16.mxu0 %v7756_v22 }
 0x11b   : > { %v974_v34 = vpop.permute.xlu1 %973 }
 0x11c   : > { %1045 = vst.msk [vmem:[#allocation4 + $0x64] sm:$0xf] %vm1019_vm4, %v974_v34  ;;  %v980_v28 = vpop.permute.xlu0 %979 }
 0x11d   : > { %2211 = vrot.lane.b32.xlu1 %v8508_v43, %s7912_s6  ;;  %1048 = vst.msk [vmem:[#allocation4 + $0x70] sm:$0xf] %vm1019_vm4, %v980_v28  ;;  %7628 = vmatpush3.bf16.msra.mxu0 %v7756_v22  ;;  %v7155_v22 = vpack.c.bf16 %v2349_v26, %v2349_v26 }
 0x11e   : > { %2466 = vrot.lane.b32.xlu0 %v8346_v5, %s7913_s11 }
 0x11f   : > { %v978_v18 = vpop.permute.xlu1 %977 }
 0x120   : > { %1047 = vst.msk [vmem:[#allocation4 + $0x6c] sm:$0xf] %vm1019_vm4, %v978_v18  ;;  %v984_v29 = vpop.permute.xlu0 %983  ;;  %v1323_v18 = vld [vmem:[#allocation2 + $0xc1] sm:$0xff] }
 0x121   : > { %2215 = vrot.lane.b32.xlu1 %v8518_v55, %s7912_s6  ;;  %1050 = vst.msk [vmem:[#allocation4 + $0x78] sm:$0xf] %vm1019_vm4, %v984_v29  ;;  %v2345_v55 = vld [vmem:[#allocation2 + $0x82] sm:$0xff] }
 0x122   : > { %2470 = vrot.lane.b32.xlu0 %v8353_v14, %s7913_s11  ;;  %v7151_v59 = vpack.c.bf16 %v2345_v55, %v2345_v55 }
 0x123   : > { %v982_v33 = vpop.permute.xlu1 %981 }
 0x124   : > { %1049 = vst.msk [vmem:[#allocation4 + $0x74] sm:$0xf] %vm1019_vm4, %v982_v33  ;;  %v1181_v5 = vpop.permute.xlu0 %1180 }
 0x125   : > { %2468 = vrot.lane.b32.xlu1 %v8357_v16, %s7913_s11  ;;  %1277 = vst.msk [vmem:[#allocation4] sm:$0xf] %vm1276_vm6, %v1181_v5  ;;  %v7030_v5 = vpack.c.bf16 %v1323_v18, %v1323_v18 }
 0x126   : > { %1702 = vrot.lane.b32.xlu0 %v8353_v14, %s7909_s14 }
 0x127   : > { %v986_v40 = vpop.permute.xlu1 %985 }
 0x128   : > { %1051 = vst.msk [vmem:[#allocation4 + $0x7c] sm:$0xf] %vm1019_vm4, %v986_v40  ;;  %v1185_v1 = vpop.permute.xlu0 %1184 }
 0x129   : > { %2472 = vrot.lane.b32.xlu1 %v8365_v27, %s7913_s11  ;;  %1279 = vst.msk [vmem:[#allocation4 + $0x8] sm:$0xf] %vm1276_vm6, %v1185_v1  ;;  %v1324_v1 = vld [vmem:[#allocation2 + $0xc9] sm:$0xff] }
 0x12a   : > { %1706 = vrot.lane.b32.xlu0 %v8361_v20, %s7909_s14 }
 0x12b   : > { %v1183_v35 = vpop.permute.xlu1 %1182 }
 0x12c   : > { %1278 = vst.msk [vmem:[#allocation4 + $0x4] sm:$0xf] %vm1276_vm6, %v1183_v35  ;;  %v1189_v16 = vpop.permute.xlu0 %1188 }
 0x12d   : > { %1704 = vrot.lane.b32.xlu1 %v8365_v27, %s7909_s14  ;;  %1281 = vst.msk [vmem:[#allocation4 + $0x10] sm:$0xf] %vm1276_vm6, %v1189_v16  ;;  %v1580_v16 = vld [vmem:[#allocation2 + $0xc2] sm:$0xff] }
 0x12e   : > { %1960 = vrot.lane.b32.xlu0 %v8216_v23, %s7911_s17 }
 0x12f   : > { %v1187_v14 = vpop.permute.xlu1 %1186 }
 0x130   : > { %1280 = vst.msk [vmem:[#allocation4 + $0xc] sm:$0xf] %vm1276_vm6, %v1187_v14  ;;  %v1193_v41 = vpop.permute.xlu0 %1192  ;;  %v7031_v14 = vpack.c.bf16 %v1324_v1, %v1324_v1 }
 0x131   : > { %1708 = vrot.lane.b32.xlu1 %v8371_v36, %s7909_s14  ;;  %1283 = vst.msk [vmem:[#allocation4 + $0x18] sm:$0xf] %vm1276_vm6, %v1193_v41  ;;  %v2342_v36 = vld [vmem:[#allocation2 + $0x62] sm:$0xff] }
 0x132   : > { %1964 = vrot.lane.b32.xlu0 %v8220_v25, %s7911_s17 }
 0x133   : > { %v1191_v20 = vpop.permute.xlu1 %1190 }
 0x134   : > { %1282 = vst.msk [vmem:[#allocation4 + $0x14] sm:$0xf] %vm1276_vm6, %v1191_v20  ;;  %v1197_v27 = vpop.permute.xlu0 %1196 }
 0x135   : > { %1962 = vrot.lane.b32.xlu1 %v8218_v24, %s7911_s17  ;;  %1285 = vst.msk [vmem:[#allocation4 + $0x20] sm:$0xf] %vm1276_vm6, %v1197_v27  ;;  %v7148_v24 = vpack.c.bf16 %v2342_v36, %v2342_v36  ;;  %v7062_v27 = vpack.c.bf16 %v1580_v16, %v1580_v16 }
 0x136   : > { %2217 = vrot.lane.b32.xlu0 %v8513_v50, %s7912_s6  ;;  %v7149_v50 = vpack.c.bf16 %v2343_v47, %v2343_v47  ;;  %v1837_v47 = vld [vmem:[#allocation2 + $0xc8] sm:$0xff] }
 0x137   : > { %v1195_v23 = vpop.permute.xlu1 %1194 }
 0x138   : > { %1284 = vst.msk [vmem:[#allocation4 + $0x1c] sm:$0xf] %vm1276_vm6, %v1195_v23  ;;  %v1201_v42 = vpop.permute.xlu0 %1200  ;;  %v1836_v23 = vld [vmem:[#allocation2 + $0xc0] sm:$0xff] }
 0x139   : > { %1966 = vrot.lane.b32.xlu1 %v8226_v30, %s7911_s17  ;;  %1287 = vst.msk [vmem:[#allocation4 + $0x28] sm:$0xf] %vm1276_vm6, %v1201_v42  ;;  %v7150_v30 = vpack.c.bf16 %v2344_v7, %v2344_v7  ;;  %v1581_v42 = vld [vmem:[#allocation2 + $0xca] sm:$0xff] }
 0x13a   : > { %2221 = vrot.lane.b32.xlu0 %v8523_v39, %s7912_s6  ;;  %v7063_v7 = vpack.c.bf16 %v1581_v42, %v1581_v42  ;;  %v2356_v42 = vld [vmem:[#allocation2 + $0x10a] sm:$0xff] }
 0x13b   : > { %v1199_v25 = vpop.permute.xlu1 %1198 }
 0x13c   : > { %1286 = vst.msk [vmem:[#allocation4 + $0x24] sm:$0xf] %vm1276_vm6, %v1199_v25  ;;  %v1205_v43 = vpop.permute.xlu0 %1204 }
 0x13d   : > { %2219 = vrot.lane.b32.xlu1 %v8528_v60, %s7912_s6  ;;  %1289 = vst.msk [vmem:[#allocation4 + $0x30] sm:$0xf] %vm1276_vm6, %v1205_v43  ;;  %v1320_v60 = vld [vmem:[#allocation2 + $0x99] sm:$0xff] }
 0x13e   : > { %2474 = vrot.lane.b32.xlu0 %v7148_v24, %s7913_s11  ;;  %v7027_v51 = vpack.c.bf16 %v1320_v60, %v1320_v60  ;;  %v7092_v24 = vpack.c.bf16 %v1836_v23, %v1836_v23  ;;  %v2352_v60 = vld [vmem:[#allocation2 + $0xda] sm:$0xff]  ;;  %v2100_v23 = vld [vmem:[#allocation2 + $0x111] sm:$0xff] }
 0x13f   : > { %v1203_v48 = vpop.permute.xlu1 %1202 }
 0x140   : > { %1288 = vst.msk [vmem:[#allocation4 + $0x2c] sm:$0xf] %vm1276_vm6, %v1203_v48  ;;  %v1209_v54 = vpop.permute.xlu0 %1208 }
 0x141   : > { %2223 = vrot.lane.b32.xlu1 %v8536_v3, %s7912_s6  ;;  %1291 = vst.msk [vmem:[#allocation4 + $0x38] sm:$0xf] %vm1276_vm6, %v1209_v54  ;;  %v2095_v54 = vld [vmem:[#allocation2 + $0xd9] sm:$0xff] }
 0x142   : > { %2478 = vrot.lane.b32.xlu0 %v7150_v30, %s7913_s11 }
 0x143   : > { %v1207_v57 = vpop.permute.xlu1 %1206 }
 0x144   : > { %1290 = vst.msk [vmem:[#allocation4 + $0x34] sm:$0xf] %vm1276_vm6, %v1207_v57  ;;  %v1213_v39 = vpop.permute.xlu0 %1212 }
 0x145   : > { %2476 = vrot.lane.b32.xlu1 %v7149_v50, %s7913_s11  ;;  %1293 = vst.msk [vmem:[#allocation4 + $0x40] sm:$0xf] %vm1276_vm6, %v1213_v39 }
 0x146   : > { %1457 = vrot.lane.b32.xlu0 %v7026_v58, %s7908_s13 }
 0x147   : > { %v1211_v2 = vpop.permute.xlu1 %1210 }
 0x148   : > { %1292 = vst.msk [vmem:[#allocation4 + $0x3c] sm:$0xf] %vm1276_vm6, %v1211_v2  ;;  %v1217_v3 = vpop.permute.xlu0 %1216 }
 0x149   : > { %2480 = vrot.lane.b32.xlu1 %v7151_v59, %s7913_s11  ;;  %1295 = vst.msk [vmem:[#allocation4 + $0x48] sm:$0xf] %vm1276_vm6, %v1217_v3 }
 0x14a   : > { %1710 = vrot.lane.b32.xlu0 %v7150_v30, %s7909_s14  ;;  %v7093_v30 = vpack.c.bf16 %v1837_v47, %v1837_v47 }
 0x14b   : > { %v1215_v53 = vpop.permute.xlu1 %1214 }
 0x14c   : > { %1294 = vst.msk [vmem:[#allocation4 + $0x44] sm:$0xf] %vm1276_vm6, %v1215_v53  ;;  %v1221_v62 = vpop.permute.xlu0 %1220  ;;  %v2353_v53 = vld [vmem:[#allocation2 + $0xe2] sm:$0xff] }
 0x14d   : > { %1459 = vrot.lane.b32.xlu1 %v7027_v51, %s7908_s13  ;;  %1297 = vst.msk [vmem:[#allocation4 + $0x50] sm:$0xf] %vm1276_vm6, %v1221_v62  ;;  %v1327_v62 = vld [vmem:[#allocation2 + $0xf1] sm:$0xff]  ;;  %v7159_v56 = vpack.c.bf16 %v2353_v53, %v2353_v53  ;;  %v1844_v53 = vld [vmem:[#allocation2 + $0x120] sm:$0xff] }
 0x14e   : > { %1714 = vrot.lane.b32.xlu0 %v7058_v52, %s7909_s14 }
 0x14f   : > { %v1219_v9 = vpop.permute.xlu1 %1218 }
 0x150   : > { %1296 = vst.msk [vmem:[#allocation4 + $0x4c] sm:$0xf] %vm1276_vm6, %v1219_v9  ;;  %v1225_v63 = vpop.permute.xlu0 %1224 }
 0x151   : > { %1712 = vrot.lane.b32.xlu1 %v7151_v59, %s7909_s14  ;;  %1299 = vst.msk [vmem:[#allocation4 + $0x58] sm:$0xf] %vm1276_vm6, %v1225_v63  ;;  %v7034_v63 = vpack.c.bf16 %v1327_v62, %v1327_v62  ;;  %v1589_v62 = vld [vmem:[#allocation2 + $0x12a] sm:$0xff] }
 0x152   : > { %1968 = vrot.lane.b32.xlu0 %v8228_v31, %s7911_s17 }
 0x153   : > { %v1223_v61 = vpop.permute.xlu1 %1222 }
 0x154   : > { %1298 = vst.msk [vmem:[#allocation4 + $0x54] sm:$0xf] %vm1276_vm6, %v1223_v61  ;;  %v1229_v6 = vpop.permute.xlu0 %1228 }
 0x155   : > { %1716 = vrot.lane.b32.xlu1 %v7059_v4, %s7909_s14  ;;  %1301 = vst.msk [vmem:[#allocation4 + $0x60] sm:$0xf] %vm1276_vm6, %v1229_v6  ;;  %v1328_v6 = vld [vmem:[#allocation2 + $0xf9] sm:$0xff] }
 0x156   : > { %1972 = vrot.lane.b32.xlu0 %v8241_v37, %s7911_s17  ;;  %v2092_v37 = vld [vmem:[#allocation2 + $0xb1] sm:$0xff] }
 0x157   : > { %v1227_v21 = vpop.permute.xlu1 %1226  ;;  %v7123_v19 = vpack.c.bf16 %v2092_v37, %v2092_v37  ;;  %v1840_v37 = vld [vmem:[#allocation2 + $0xf0] sm:$0xff] }
 0x158   : > { %1300 = vst.msk [vmem:[#allocation4 + $0x5c] sm:$0xf] %vm1276_vm6, %v1227_v21  ;;  %v1233_v8 = vpop.permute.xlu0 %1232 }
 0x159   : > { %1970 = vrot.lane.b32.xlu1 %v8230_v32, %s7911_s17  ;;  %1303 = vst.msk [vmem:[#allocation4 + $0x68] sm:$0xf] %vm1276_vm6, %v1233_v8  ;;  %v2348_v32 = vld [vmem:[#allocation2 + $0xaa] sm:$0xff]  ;;  %v7035_v8 = vpack.c.bf16 %v1328_v6, %v1328_v6 }
 0x15a   : > { %2225 = vrot.lane.b32.xlu0 %v7026_v58, %s7912_s6  ;;  %v7126_v58 = vpack.c.bf16 %v2095_v54, %v2095_v54  ;;  %v1845_v6 = vld [vmem:[#allocation2 + $0x128] sm:$0xff] }
 0x15b   : > { %v1231_v31 = vpop.permute.xlu1 %1230 }
 0x15c   : > { %1302 = vst.msk [vmem:[#allocation4 + $0x64] sm:$0xf] %vm1276_vm6, %v1231_v31  ;;  %v1237_v12 = vpop.permute.xlu0 %1236 }
 0x15d   : > { %1974 = vrot.lane.b32.xlu1 %v8243_v38, %s7911_s17  ;;  %1305 = vst.msk [vmem:[#allocation4 + $0x70] sm:$0xf] %vm1276_vm6, %v1237_v12  ;;  %v7154_v38 = vpack.c.bf16 %v2348_v32, %v2348_v32  ;;  %v7066_v12 = vpack.c.bf16 %v1584_v11, %v1584_v11  ;;  %v1585_v32 = vld [vmem:[#allocation2 + $0xfa] sm:$0xff] }
 0x15e   : > { %2229 = vrot.lane.b32.xlu0 %v7122_v15, %s7912_s6 }
 0x15f   : > { %v1235_v10 = vpop.permute.xlu1 %1234 }
 0x160   : > { %1304 = vst.msk [vmem:[#allocation4 + $0x6c] sm:$0xf] %vm1276_vm6, %v1235_v10  ;;  %v1241_v17 = vpop.permute.xlu0 %1240 }
 0x161   : > { %2227 = vrot.lane.b32.xlu1 %v7027_v51, %s7912_s6  ;;  %1307 = vst.msk [vmem:[#allocation4 + $0x78] sm:$0xf] %vm1276_vm6, %v1241_v17 }
 0x162   : > { %2482 = vrot.lane.b32.xlu0 %v7058_v52, %s7913_s11 }
 0x163   : > { %v1239_v13 = vpop.permute.xlu1 %1238 }
 0x164   : > { %1306 = vst.msk [vmem:[#allocation4 + $0x74] sm:$0xf] %vm1276_vm6, %v1239_v13  ;;  %v1438_v34 = vpop.permute.xlu0 %1437  ;;  %v7096_v13 = vpack.c.bf16 %v1840_v37, %v1840_v37  ;;  %v2103_v37 = vld [vmem:[#allocation2 + $0x139] sm:$0xff] }
 0x165   : > { %2231 = vrot.lane.b32.xlu1 %v7123_v19, %s7912_s6  ;;  %1534 = vst.msk [vmem:[#allocation4] sm:$0xf] %vm1533_vm7, %v1438_v34  ;;  %v7067_v34 = vpack.c.bf16 %v1585_v32, %v1585_v32 }
 0x166   : > { %2486 = vrot.lane.b32.xlu0 %v7154_v38, %s7913_s11 }
 0x167   : > { %v1243_v28 = vpop.permute.xlu1 %1242 }
 0x168   : > { %1308 = vst.msk [vmem:[#allocation4 + $0x7c] sm:$0xf] %vm1276_vm6, %v1243_v28  ;;  %v1442_v29 = vpop.permute.xlu0 %1441  ;;  %v1841_v28 = vld [vmem:[#allocation2 + $0xf8] sm:$0xff] }
 0x169   : > { %2484 = vrot.lane.b32.xlu1 %v7059_v4, %s7913_s11  ;;  %1536 = vst.msk [vmem:[#allocation4 + $0x8] sm:$0xf] %vm1533_vm7, %v1442_v29 }
 0x16a   : > { %1461 = vrot.lane.b32.xlu0 %v7122_v15, %s7908_s13 }
 0x16b   : > { %v1440_v33 = vpop.permute.xlu1 %1439 }
 0x16c   : > { %1535 = vst.msk [vmem:[#allocation4 + $0x4] sm:$0xf] %vm1533_vm7, %v1440_v33  ;;  %v1446_v40 = vpop.permute.xlu0 %1445  ;;  %v7097_v33 = vpack.c.bf16 %v1841_v28, %v1841_v28 }
 0x16d   : > { %2488 = vrot.lane.b32.xlu1 %v7155_v22, %s7913_s11  ;;  %1538 = vst.msk [vmem:[#allocation4 + $0x10] sm:$0xf] %vm1533_vm7, %v1446_v40  ;;  %v1843_v40 = vld [vmem:[#allocation2 + $0x110] sm:$0xff] }
 0x16e   : > { %1465 = vrot.lane.b32.xlu0 %v7030_v5, %s7908_s13  ;;  %v7099_v16 = vpack.c.bf16 %v1843_v40, %v1843_v40 }
 0x16f   : > { %v1444_v35 = vpop.permute.xlu1 %1443 }
 0x170   : > { %1537 = vst.msk [vmem:[#allocation4 + $0xc] sm:$0xf] %vm1533_vm7, %v1444_v35  ;;  %v1450_v41 = vpop.permute.xlu0 %1449  ;;  %v2099_v35 = vld [vmem:[#allocation2 + $0x109] sm:$0xff] }
 0x171   : > { %1463 = vrot.lane.b32.xlu1 %v7123_v19, %s7908_s13  ;;  %1540 = vst.msk [vmem:[#allocation4 + $0x18] sm:$0xf] %vm1533_vm7, %v1450_v41 }
 0x172   : > { %1718 = vrot.lane.b32.xlu0 %v7154_v38, %s7909_s14  ;;  %v1842_v38 = vld [vmem:[#allocation2 + $0x108] sm:$0xff] }
 0x173   : > { %v1448_v20 = vpop.permute.xlu1 %1447  ;;  %v7098_v29 = vpack.c.bf16 %v1842_v38, %v1842_v38  ;;  %v2104_v38 = vld [vmem:[#allocation2 + $0x141] sm:$0xff] }
 0x174   : > { %1539 = vst.msk [vmem:[#allocation4 + $0x14] sm:$0xf] %vm1533_vm7, %v1448_v20  ;;  %v1454_v36 = vpop.permute.xlu0 %1453  ;;  %v7130_v20 = vpack.c.bf16 %v2099_v35, %v2099_v35  ;;  %v7135_v28 = vpack.c.bf16 %v2104_v38, %v2104_v38 }
 0x175   : > { %1467 = vrot.lane.b32.xlu1 %v7031_v14, %s7908_s13  ;;  %1542 = vst.msk [vmem:[#allocation4 + $0x20] sm:$0xf] %vm1533_vm7, %v1454_v36 }
 0x176   : > { %1722 = vrot.lane.b32.xlu0 %v7062_v27, %s7909_s14 }
 0x177   : > { %v1452_v25 = vpop.permute.xlu1 %1451 }
 0x178   : > { %1541 = vst.msk [vmem:[#allocation4 + $0x1c] sm:$0xf] %vm1533_vm7, %v1452_v25  ;;  %v1695_v43 = vpop.permute.xlu0 %1694  ;;  %v7131_v25 = vpack.c.bf16 %v2100_v23, %v2100_v23  ;;  %v1336_v23 = vld [vmem:[#allocation2 + $0x159] sm:$0xff] }
 0x179   : > { %1720 = vrot.lane.b32.xlu1 %v7155_v22, %s7909_s14  ;;  %1791 = vst.msk [vmem:[#allocation4] sm:$0xf] %vm1790_vm8, %v1695_v43  ;;  %v7162_v43 = vpack.c.bf16 %v2356_v42, %v2356_v42 }
 0x17a   : > { %1976 = vrot.lane.b32.xlu0 %v7092_v24, %s7911_s17 }
 0x17b   : > { %v1456_v48 = vpop.permute.xlu1 %1455 }
 0x17c   : > { %1543 = vst.msk [vmem:[#allocation4 + $0x24] sm:$0xf] %vm1533_vm7, %v1456_v48  ;;  %v1699_v49 = vpop.permute.xlu0 %1698  ;;  %v2357_v48 = vld [vmem:[#allocation2 + $0x112] sm:$0xff] }
 0x17d   : > { %1724 = vrot.lane.b32.xlu1 %v7063_v7, %s7909_s14  ;;  %1793 = vst.msk [vmem:[#allocation4 + $0x8] sm:$0xf] %vm1790_vm8, %v1699_v49  ;;  %v1331_v49 = vld [vmem:[#allocation2 + $0x121] sm:$0xff] }
 0x17e   : > { %1980 = vrot.lane.b32.xlu0 %v8255_v45, %s7911_s17  ;;  %v2096_v45 = vld [vmem:[#allocation2 + $0xe1] sm:$0xff] }
 0x17f   : > { %v1697_v50 = vpop.permute.xlu1 %1696  ;;  %v7127_v2 = vpack.c.bf16 %v2096_v45, %v2096_v45 }
 0x180   : > { %1792 = vst.msk [vmem:[#allocation4 + $0x4] sm:$0xf] %vm1790_vm8, %v1697_v50  ;;  %v1953_v55 = vpop.permute.xlu0 %1952  ;;  %v7163_v50 = vpack.c.bf16 %v2357_v48, %v2357_v48  ;;  %v1848_v48 = vld [vmem:[#allocation2 + $0x150] sm:$0xff] }
 0x181   : > { %1978 = vrot.lane.b32.xlu1 %v7093_v30, %s7911_s17  ;;  %2049 = vst.msk [vmem:[#allocation4] sm:$0xf] %vm2048_vm9, %v1953_v55 }
 0x182   : > { %2233 = vrot.lane.b32.xlu0 %v7030_v5, %s7912_s6 }
 0x183   : > { %v1701_v57 = vpop.permute.xlu1 %1700 }
 0x184   : > { %1794 = vst.msk [vmem:[#allocation4 + $0xc] sm:$0xf] %vm1790_vm8, %v1701_v57  ;;  %v1957_v59 = vpop.permute.xlu0 %1956  ;;  %v7038_v57 = vpack.c.bf16 %v1331_v49, %v1331_v49  ;;  %v1593_v49 = vld [vmem:[#allocation2 + $0x15a] sm:$0xff] }
 0x185   : > { %1982 = vrot.lane.b32.xlu1 %v8257_v46, %s7911_s17  ;;  %2051 = vst.msk [vmem:[#allocation4 + $0x8] sm:$0xf] %vm2048_vm9, %v1957_v59  ;;  %v7158_v46 = vpack.c.bf16 %v2352_v60, %v2352_v60  ;;  %v1332_v59 = vld [vmem:[#allocation2 + $0x129] sm:$0xff] }
 0x186   : > { %2237 = vrot.lane.b32.xlu0 %v7126_v58, %s7912_s6  ;;  %v1588_v60 = vld [vmem:[#allocation2 + $0x122] sm:$0xff] }
 0x187   : > { %v1955_v39 = vpop.permute.xlu1 %1954 }
 0x188   : > { %2050 = vst.msk [vmem:[#allocation4 + $0x4] sm:$0xf] %vm2048_vm9, %v1955_v39  ;;  %v2210_v44 = vpop.permute.xlu0 %2209 }
 0x189   : > { %2235 = vrot.lane.b32.xlu1 %v7031_v14, %s7912_s6  ;;  %2306 = vst.msk [vmem:[#allocation4] sm:$0xf] %vm2305_vm10, %v2210_v44 }
 0x18a   : > { %2490 = vrot.lane.b32.xlu0 %v7062_v27, %s7913_s11 }
 0x18b   : > { %v1959_v51 = vpop.permute.xlu1 %1958 }
 0x18c   : > { %2052 = vst.msk [vmem:[#allocation4 + $0xc] sm:$0xf] %vm2048_vm9, %v1959_v51  ;;  %v2214_v3 = vpop.permute.xlu0 %2213 }
 0x18d   : > { %2239 = vrot.lane.b32.xlu1 %v7127_v2, %s7912_s6  ;;  %2308 = vst.msk [vmem:[#allocation4 + $0x8] sm:$0xf] %vm2305_vm10, %v2214_v3  ;;  %v7070_v3 = vpack.c.bf16 %v1588_v60, %v1588_v60 }
 0x18e   : > { %2494 = vrot.lane.b32.xlu0 %v7158_v46, %s7913_s11 }
 0x18f   : > { %v2212_v52 = vpop.permute.xlu1 %2211 }
 0x190   : > { %2307 = vst.msk [vmem:[#allocation4 + $0x4] sm:$0xf] %vm2305_vm10, %v2212_v52  ;;  %v2467_v9 = vpop.permute.xlu0 %2466 }
 0x191   : > { %2492 = vrot.lane.b32.xlu1 %v7063_v7, %s7913_s11  ;;  %2563 = vst.msk [vmem:[#allocation4] sm:$0xf] %vm2562_vm11, %v2467_v9  ;;  %v7100_v9 = vpack.c.bf16 %v1844_v53, %v1844_v53 }
 0x192   : > { %1469 = vrot.lane.b32.xlu0 %v7126_v58, %s7908_s13 }
 0x193   : > { %v2216_v4 = vpop.permute.xlu1 %2215 }
 0x194   : > { %2309 = vst.msk [vmem:[#allocation4 + $0xc] sm:$0xf] %vm2305_vm10, %v2216_v4  ;;  %v2471_v61 = vpop.permute.xlu0 %2470  ;;  %v1846_v4 = vld [vmem:[#allocation2 + $0x138] sm:$0xff] }
 0x195   : > { %2496 = vrot.lane.b32.xlu1 %v7159_v56, %s7913_s11  ;;  %2565 = vst.msk [vmem:[#allocation4 + $0x8] sm:$0xf] %vm2562_vm11, %v2471_v61  ;;  %v7102_v11 = vpack.c.bf16 %v1846_v4, %v1846_v4  ;;  %v2364_v4 = vld [vmem:[#allocation2 + $0x16a] sm:$0xff] }
 0x196   : > { %1473 = vrot.lane.b32.xlu0 %v7034_v63, %s7908_s13 }
 0x197   : > { %v2469_v21 = vpop.permute.xlu1 %2468 }
 0x198   : > { %2564 = vst.msk [vmem:[#allocation4 + $0x4] sm:$0xf] %vm2562_vm11, %v2469_v21  ;;  %v1703_v31 = vpop.permute.xlu0 %1702 }
 0x199   : > { %1471 = vrot.lane.b32.xlu1 %v7127_v2, %s7908_s13  ;;  %1795 = vst.msk [vmem:[#allocation4 + $0x10] sm:$0xf] %vm1790_vm8, %v1703_v31  ;;  %v7039_v2 = vpack.c.bf16 %v1332_v59, %v1332_v59 }
 0x19a   : > { %1726 = vrot.lane.b32.xlu0 %v7158_v46, %s7909_s14 }
 0x19b   : > { %v2473_v15 = vpop.permute.xlu1 %2472 }
 0x19c   : > { %2566 = vst.msk [vmem:[#allocation4 + $0xc] sm:$0xf] %vm2562_vm11, %v2473_v15  ;;  %v1707_v10 = vpop.permute.xlu0 %1706  ;;  %v1847_v15 = vld [vmem:[#allocation2 + $0x140] sm:$0xff] }
 0x19d   : > { %1475 = vrot.lane.b32.xlu1 %v7035_v8, %s7908_s13  ;;  %1797 = vst.msk [vmem:[#allocation4 + $0x18] sm:$0xf] %vm1790_vm8, %v1707_v10  ;;  %v7103_v10 = vpack.c.bf16 %v1847_v15, %v1847_v15  ;;  %v1339_v15 = vld [vmem:[#allocation2 + $0x181] sm:$0xff] }
 0x19e   : > { %1730 = vrot.lane.b32.xlu0 %v7066_v12, %s7909_s14 }
 0x19f   : > { %v1705_v19 = vpop.permute.xlu1 %1704  ;;  %v7757_v17 = vld [vmem:[#allocation4] sm:$0xff]  }
 0x1a0   : > { %1796 = vst.msk [vmem:[#allocation4 + $0x14] sm:$0xf] %vm1790_vm8, %v1705_v19  ;;  %7629 = vmatprep.mubr.msk.bf16.mxu0 %vm2758_vm12, %v7757_v17  ;;  %v1961_v26 = vpop.permute.xlu0 %1960  ;;  %v7134_v17 = vpack.c.bf16 %v2103_v37, %v2103_v37 }
 0x1a1   : > { %1728 = vrot.lane.b32.xlu1 %v7159_v56, %s7909_s14  ;;  %2053 = vst.msk [vmem:[#allocation4 + $0x10] sm:$0xf] %vm2048_vm9, %v1961_v26  ;;  %v2360_v26 = vld [vmem:[#allocation2 + $0x13a] sm:$0xff] }
 0x1a2   : > { %1984 = vrot.lane.b32.xlu0 %v7096_v13, %s7911_s17 }
 0x1a3   : > { %v1709_v18 = vpop.permute.xlu1 %1708  ;;  %v7758_v22 = vld [vmem:[#allocation4 + $0x8] sm:$0xff]  }
 0x1a4   : > { %1798 = vst.msk [vmem:[#allocation4 + $0x1c] sm:$0xf] %vm1790_vm8, %v1709_v18  ;;  %7630 = vmatmul.mubr.msk.bf16.vlgmr.msra.gmra.mxu0 %vm2758_vm12, %v7758_v22  ;;  %v1965_v5 = vpop.permute.xlu0 %1964 }
 0x1a5   : > { %1732 = vrot.lane.b32.xlu1 %v7067_v34, %s7909_s14  ;;  %2055 = vst.msk [vmem:[#allocation4 + $0x18] sm:$0xf] %vm2048_vm9, %v1965_v5  ;;  %v2361_v5 = vld [vmem:[#allocation2 + $0x142] sm:$0xff] }
 0x1a6   : > { %1988 = vrot.lane.b32.xlu0 %v7098_v29, %s7911_s17  ;;  %v8809_v29 = vpack.c.bf16 %v2360_v26, %v2360_v26  ;;  %v8818_v35 = vpack.c.bf16 %v2361_v5, %v2361_v5  ;;  %v1596_v26 = vld [vmem:[#allocation2 + $0x182] sm:$0xff] }
 0x1a7   : > { %v1963_v1 = vpop.permute.xlu1 %1962 }
 0x1a8   : > { %2054 = vst.msk [vmem:[#allocation4 + $0x14] sm:$0xf] %vm2048_vm9, %v1963_v1  ;;  %v2218_v14 = vpop.permute.xlu0 %2217  ;;  %v1335_v1 = vld [vmem:[#allocation2 + $0x151] sm:$0xff] }
 0x1a9   : > { %1986 = vrot.lane.b32.xlu1 %v7097_v33, %s7911_s17  ;;  %2310 = vst.msk [vmem:[#allocation4 + $0x10] sm:$0xf] %vm2305_vm10, %v2218_v14 }
 0x1aa   : > { %2241 = vrot.lane.b32.xlu0 %v7034_v63, %s7912_s6  ;;  %v7071_v63 = vpack.c.bf16 %v1589_v62, %v1589_v62 }
 0x1ab   : > { %v1967_v41 = vpop.permute.xlu1 %1966 }
 0x1ac   : > { %2056 = vst.msk [vmem:[#allocation4 + $0x1c] sm:$0xf] %vm2048_vm9, %v1967_v41  ;;  %v2222_v27 = vpop.permute.xlu0 %2221 }
 0x1ad   : > { %1990 = vrot.lane.b32.xlu1 %v7099_v16, %s7911_s17  ;;  %2312 = vst.msk [vmem:[#allocation4 + $0x18] sm:$0xf] %vm2305_vm10, %v2222_v27 }
 0x1ae   : > { %2245 = vrot.lane.b32.xlu0 %v7130_v20, %s7912_s6 }
 0x1af   : > { %v2220_v36 = vpop.permute.xlu1 %2219 }
 0x1b0   : > { %2311 = vst.msk [vmem:[#allocation4 + $0x14] sm:$0xf] %vm2305_vm10, %v2220_v36  ;;  %v2475_v24 = vpop.permute.xlu0 %2474 }
 0x1b1   : > { %2243 = vrot.lane.b32.xlu1 %v7035_v8, %s7912_s6  ;;  %2567 = vst.msk [vmem:[#allocation4 + $0x10] sm:$0xf] %vm2562_vm11, %v2475_v24  ;;  %v7101_v8 = vpack.c.bf16 %v1845_v6, %v1845_v6  ;;  %v8834_v24 = vpack.c.bf16 %v1336_v23, %v1336_v23 }
 0x1b2   : > { %2498 = vrot.lane.b32.xlu0 %v7066_v12, %s7913_s11 }
 0x1b3   : > { %v2224_v7 = vpop.permute.xlu1 %2223 }
 0x1b4   : > { %2313 = vst.msk [vmem:[#allocation4 + $0x1c] sm:$0xf] %vm2305_vm10, %v2224_v7  ;;  %v2479_v47 = vpop.permute.xlu0 %2478 }
 0x1b5   : > { %2247 = vrot.lane.b32.xlu1 %v7131_v25, %s7912_s6  ;;  %2569 = vst.msk [vmem:[#allocation4 + $0x18] sm:$0xf] %vm2562_vm11, %v2479_v47 }
 0x1b6   : > { %2502 = vrot.lane.b32.xlu0 %v7162_v43, %s7913_s11 }
 0x1b7   : > { %v2477_v30 = vpop.permute.xlu1 %2476 }
 0x1b8   : > { %2568 = vst.msk [vmem:[#allocation4 + $0x14] sm:$0xf] %vm2562_vm11, %v2477_v30  ;;  %v1458_v54 = vpop.permute.xlu0 %1457 }
 0x1b9   : > { %2500 = vrot.lane.b32.xlu1 %v7067_v34, %s7913_s11  ;;  %1544 = vst.msk [vmem:[#allocation4 + $0x28] sm:$0xf] %vm1533_vm7, %v1458_v54  ;;  %v7104_v54 = vpack.c.bf16 %v1848_v48, %v1848_v48 }
 0x1ba   : > { %1477 = vrot.lane.b32.xlu0 %v7130_v20, %s7908_s13  ;;  %v8822_v20 = vpack.c.bf16 %v1335_v1, %v1335_v1 }
 0x1bb   : > { %v2481_v55 = vpop.permute.xlu1 %2480 }
 0x1bc   : > { %2570 = vst.msk [vmem:[#allocation4 + $0x1c] sm:$0xf] %vm2562_vm11, %v2481_v55  ;;  %v1711_v58 = vpop.permute.xlu0 %1710  ;;  %v1850_v55 = vld [vmem:[#allocation2 + $0x168] sm:$0xff] }
 0x1bd   : > { %2504 = vrot.lane.b32.xlu1 %v7163_v50, %s7913_s11  ;;  %1799 = vst.msk [vmem:[#allocation4 + $0x20] sm:$0xf] %vm1790_vm8, %v1711_v58  ;;  %v1849_v58 = vld [vmem:[#allocation2 + $0x158] sm:$0xff] }
 0x1be   : > { %1481 = vrot.lane.b32.xlu0 %v7038_v57, %s7908_s13 }
 0x1bf   : > { %v1460_v45 = vpop.permute.xlu1 %1459  ;;  %v7759_v39 = vld [vmem:[#allocation4 + $0x10] sm:$0xff]  }
 0x1c0   : > { %1545 = vst.msk [vmem:[#allocation4 + $0x2c] sm:$0xf] %vm1533_vm7, %v1460_v45  ;;  %7633 = vmatprep.mubr.msk.bf16.mxu0 %vm2758_vm12, %v7759_v39  ;;  %v1715_v44 = vpop.permute.xlu0 %1714  ;;  %v7106_v45 = vpack.c.bf16 %v1850_v55, %v1850_v55  ;;  %v7105_v39 = vpack.c.bf16 %v1849_v58, %v1849_v58  ;;  %v2368_v55 = vld [vmem:[#allocation2 + $0x19a] sm:$0xff] }
 0x1c1   : > { %1479 = vrot.lane.b32.xlu1 %v7131_v25, %s7908_s13  ;;  %1801 = vst.msk [vmem:[#allocation4 + $0x28] sm:$0xf] %vm1790_vm8, %v1715_v44  ;;  %v1592_v25 = vld [vmem:[#allocation2 + $0x152] sm:$0xff] }
 0x1c2   : > { %1734 = vrot.lane.b32.xlu0 %v7162_v43, %s7909_s14  ;;  %v8911_v47 = vpack.c.bf16 %v1592_v25, %v1592_v25  ;;  %v1855_v25 = vld [vmem:[#allocation2 + $0x1a0] sm:$0xff] }
 0x1c3   : > { %v1713_v51 = vpop.permute.xlu1 %1712  ;;  %v7760_v46 = vld [vmem:[#allocation4 + $0x18] sm:$0xff]  }
 0x1c4   : > { %1800 = vst.msk [vmem:[#allocation4 + $0x24] sm:$0xf] %vm1790_vm8, %v1713_v51  ;;  %7634 = vmatmul.mubr.msk.bf16.gmra.mxu0 %vm2758_vm12, %v7760_v46  ;;  %v1969_v52 = vpop.permute.xlu0 %1968  ;;  %v2107_v51 = vld [vmem:[#allocation2 + $0x169] sm:$0xff] }
 0x1c5   : > { %1483 = vrot.lane.b32.xlu1 %v7039_v2, %s7908_s13  ;;  %2057 = vst.msk [vmem:[#allocation4 + $0x20] sm:$0xf] %vm2048_vm9, %v1969_v52  ;;  %v7138_v52 = vpack.c.bf16 %v2107_v51, %v2107_v51  ;;  %v7773_v51 = vld [vmem:[%s10294_s3 + $0x88] sm:$0xff]  }
 0x1c6   : > { %1738 = vrot.lane.b32.xlu0 %v7070_v3, %s7909_s14  ;;  %7661 = vmatprep.subr.bf16.mxu0 %v7773_v51 }
 0x1c7   : > { %v1717_v56 = vpop.permute.xlu1 %1716  ;;  %7662 = vmatpush3.bf16.msra.mxu0 %v7773_v51 }
 0x1c8   : > { %1802 = vst.msk [vmem:[#allocation4 + $0x2c] sm:$0xf] %vm1790_vm8, %v1717_v56  ;;  %v1973_v61 = vpop.permute.xlu0 %1972  ;;  %v2108_v56 = vld [vmem:[#allocation2 + $0x171] sm:$0xff] }
 0x1c9   : > { %1736 = vrot.lane.b32.xlu1 %v7163_v50, %s7909_s14  ;;  %2059 = vst.msk [vmem:[#allocation4 + $0x28] sm:$0xf] %vm2048_vm9, %v1973_v61 }
 0x1ca   : > { %1992 = vrot.lane.b32.xlu0 %v7100_v9, %s7911_s17 }
 0x1cb   : > { %v1971_v21 = vpop.permute.xlu1 %1970 }
 0x1cc   : > { %2058 = vst.msk [vmem:[#allocation4 + $0x24] sm:$0xf] %vm2048_vm9, %v1971_v21  ;;  %v2226_v31 = vpop.permute.xlu0 %2225  ;;  %v7170_v21 = vpack.c.bf16 %v2364_v4, %v2364_v4 }
 0x1cd   : > { %1740 = vrot.lane.b32.xlu1 %v7071_v63, %s7909_s14  ;;  %2314 = vst.msk [vmem:[#allocation4 + $0x20] sm:$0xf] %vm2305_vm10, %v2226_v31 }
 0x1ce   : > { %1996 = vrot.lane.b32.xlu0 %v7102_v11, %s7911_s17 }
 0x1cf   : > { %v1975_v12 = vpop.permute.xlu1 %1974 }
 0x1d0   : > { %2060 = vst.msk [vmem:[#allocation4 + $0x2c] sm:$0xf] %vm2048_vm9, %v1975_v12  ;;  %v2230_v32 = vpop.permute.xlu0 %2229 }
 0x1d1   : > { %1994 = vrot.lane.b32.xlu1 %v7101_v8, %s7911_s17  ;;  %2316 = vst.msk [vmem:[#allocation4 + $0x28] sm:$0xf] %vm2305_vm10, %v2230_v32  ;;  %v2365_v8 = vld [vmem:[#allocation2 + $0x172] sm:$0xff]  ;;  %v7046_v32 = vpack.c.bf16 %v1339_v15, %v1339_v15 }
 0x1d2   : > { %2249 = vrot.lane.b32.xlu0 %v7038_v57, %s7912_s6  ;;  %v7075_v57 = vpack.c.bf16 %v1593_v49, %v1593_v49  ;;  %v7171_v12 = vpack.c.bf16 %v2365_v8, %v2365_v8 }
 0x1d3   : > { %v2228_v19 = vpop.permute.xlu1 %2227 }
 0x1d4   : > { %2315 = vst.msk [vmem:[#allocation4 + $0x24] sm:$0xf] %vm2305_vm10, %v2228_v19  ;;  %v2483_v13 = vpop.permute.xlu0 %2482 }
 0x1d5   : > { %1998 = vrot.lane.b32.xlu1 %v7103_v10, %s7911_s17  ;;  %2571 = vst.msk [vmem:[#allocation4 + $0x20] sm:$0xf] %vm2562_vm11, %v2483_v13  ;;  %v1340_v13 = vld [vmem:[#allocation2 + $0x189] sm:$0xff] }
 0x1d6   : > { %2253 = vrot.lane.b32.xlu0 %v7134_v17, %s7912_s6 }
 0x1d7   : > { %v2232_v34 = vpop.permute.xlu1 %2231 }
 0x1d8   : > { %2317 = vst.msk [vmem:[#allocation4 + $0x2c] sm:$0xf] %vm2305_vm10, %v2232_v34  ;;  %v2487_v18 = vpop.permute.xlu0 %2486 }
 0x1d9   : > { %2251 = vrot.lane.b32.xlu1 %v7039_v2, %s7912_s6  ;;  %2573 = vst.msk [vmem:[#allocation4 + $0x28] sm:$0xf] %vm2562_vm11, %v2487_v18  ;;  %v1851_v2 = vld [vmem:[#allocation2 + $0x170] sm:$0xff] }
 0x1da   : > { %2506 = vrot.lane.b32.xlu0 %v7070_v3, %s7913_s11  ;;  %v7107_v46 = vpack.c.bf16 %v1851_v2, %v1851_v2 }
 0x1db   : > { %v2485_v22 = vpop.permute.xlu1 %2484 }
 0x1dc   : > { %2572 = vst.msk [vmem:[#allocation4 + $0x24] sm:$0xf] %vm2562_vm11, %v2485_v22  ;;  %v1462_v33 = vpop.permute.xlu0 %1461 }
 0x1dd   : > { %2255 = vrot.lane.b32.xlu1 %v7135_v28, %s7912_s6  ;;  %1546 = vst.msk [vmem:[#allocation4 + $0x30] sm:$0xf] %vm1533_vm7, %v1462_v33  ;;  %v1852_v33 = vld [vmem:[#allocation2 + $0x180] sm:$0xff] }
 0x1de   : > { %2510 = vrot.lane.b32.xlu0 %v8809_v29, %s7913_s11 }
 0x1df   : > { %v2489_v40 = vpop.permute.xlu1 %2488 }
 0x1e0   : > { %2574 = vst.msk [vmem:[#allocation4 + $0x2c] sm:$0xf] %vm2562_vm11, %v2489_v40  ;;  %v1466_v16 = vpop.permute.xlu0 %1465  ;;  %v1597_v40 = vld [vmem:[#allocation2 + $0x18a] sm:$0xff] }
 0x1e1   : > { %2508 = vrot.lane.b32.xlu1 %v7071_v63, %s7913_s11  ;;  %1548 = vst.msk [vmem:[#allocation4 + $0x38] sm:$0xf] %vm1533_vm7, %v1466_v16  ;;  %v7139_v63 = vpack.c.bf16 %v2108_v56, %v2108_v56  ;;  %v1854_v16 = vld [vmem:[#allocation2 + $0x198] sm:$0xff]  ;;  %v7775_v56 = vld [vmem:[%s10294_s3 + $0x80] sm:$0xff]  }
 0x1e2   : > { %1485 = vrot.lane.b32.xlu0 %v7134_v17, %s7908_s13  ;;  %v7110_v23 = vpack.c.bf16 %v1854_v16, %v1854_v16  ;;  %7663 = vmatprep.subr.bf16.mxu0 %v7775_v56 }
 0x1e3   : > { %v1464_v14 = vpop.permute.xlu1 %1463  ;;  %v7761_v41 = vld [vmem:[#allocation4 + $0x20] sm:$0xff]   ;;  %7664 = vmatpush3.bf16.msra.mxu0 %v7775_v56 }
 0x1e4   : > { %1547 = vst.msk [vmem:[#allocation4 + $0x34] sm:$0xf] %vm1533_vm7, %v1464_v14  ;;  %7637 = vmatprep.mubr.msk.bf16.mxu0 %vm2758_vm12, %v7761_v41  ;;  %v1719_v27 = vpop.permute.xlu0 %1718  ;;  %v7079_v14 = vpack.c.bf16 %v1597_v40, %v1597_v40 }
 0x1e5   : > { %2512 = vrot.lane.b32.xlu1 %v8818_v35, %s7913_s11  ;;  %1803 = vst.msk [vmem:[#allocation4 + $0x30] sm:$0xf] %vm1790_vm8, %v1719_v27 }
 0x1e6   : > { %1489 = vrot.lane.b32.xlu0 %v8822_v20, %s7908_s13 }
 0x1e7   : > { %v1468_v36 = vpop.permute.xlu1 %1467  ;;  %v7762_v42 = vld [vmem:[#allocation4 + $0x28] sm:$0xff]  }
 0x1e8   : > { %1549 = vst.msk [vmem:[#allocation4 + $0x3c] sm:$0xf] %vm1533_vm7, %v1468_v36  ;;  %7638 = vmatmul.mubr.msk.bf16.gmra.mxu0 %vm2758_vm12, %v7762_v42  ;;  %v1723_v7 = vpop.permute.xlu0 %1722 }
 0x1e9   : > { %1487 = vrot.lane.b32.xlu1 %v7135_v28, %s7908_s13  ;;  %1805 = vst.msk [vmem:[#allocation4 + $0x38] sm:$0xf] %vm1790_vm8, %v1723_v7  ;;  %v7047_v28 = vpack.c.bf16 %v1340_v13, %v1340_v13  ;;  %v2111_v7 = vld [vmem:[#allocation2 + $0x199] sm:$0xff] }
 0x1ea   : > { %1742 = vrot.lane.b32.xlu0 %v8809_v29, %s7909_s14  ;;  %v7078_v29 = vpack.c.bf16 %v1596_v26, %v1596_v26 }
 0x1eb   : > { %v1721_v43 = vpop.permute.xlu1 %1720 }
 0x1ec   : > { %1804 = vst.msk [vmem:[#allocation4 + $0x34] sm:$0xf] %vm1790_vm8, %v1721_v43  ;;  %v1977_v30 = vpop.permute.xlu0 %1976  ;;  %v7111_v43 = vpack.c.bf16 %v1855_v25, %v1855_v25 }
 0x1ed   : > { %1491 = vrot.lane.b32.xlu1 %v8834_v24, %s7908_s13  ;;  %2061 = vst.msk [vmem:[#allocation4 + $0x30] sm:$0xf] %vm2048_vm9, %v1977_v30  ;;  %v7142_v30 = vpack.c.bf16 %v2111_v7, %v2111_v7  ;;  %v7781_v7 = vld [vmem:[%s10294_s3 + $0x38] sm:$0xff]  }
 0x1ee   : > { %1746 = vrot.lane.b32.xlu0 %v8911_v47, %s7909_s14 }
 0x1ef   : > { %v1725_v50 = vpop.permute.xlu1 %1724 }
 0x1f0   : > { %1806 = vst.msk [vmem:[#allocation4 + $0x3c] sm:$0xf] %vm1790_vm8, %v1725_v50  ;;  %v1981_v0 = vpop.permute.xlu0 %1980  ;;  %v2112_v50 = vld [vmem:[#allocation2 + $0x1a1] sm:$0xff] }
 0x1f1   : > { %1744 = vrot.lane.b32.xlu1 %v8818_v35, %s7909_s14  ;;  %2063 = vst.msk [vmem:[#allocation4 + $0x38] sm:$0xf] %vm2048_vm9, %v1981_v0  ;;  %v7108_v35 = vpack.c.bf16 %v1852_v33, %v1852_v33 }
 0x1f2   : > { %2000 = vrot.lane.b32.xlu0 %v7104_v54, %s7911_s17 }
 0x1f3   : > { %v1979_v59 = vpop.permute.xlu1 %1978 }
 0x1f4   : > { %2062 = vst.msk [vmem:[#allocation4 + $0x34] sm:$0xf] %vm2048_vm9, %v1979_v59  ;;  %v2234_v60 = vpop.permute.xlu0 %2233  ;;  %v7174_v59 = vpack.c.bf16 %v2368_v55, %v2368_v55 }
 0x1f5   : > { %1748 = vrot.lane.b32.xlu1 %v7075_v57, %s7909_s14  ;;  %2318 = vst.msk [vmem:[#allocation4 + $0x30] sm:$0xf] %vm2305_vm10, %v2234_v60  ;;  %v2369_v60 = vld [vmem:[#allocation2 + $0x1a2] sm:$0xff] }
 0x1f6   : > { %2004 = vrot.lane.b32.xlu0 %v7106_v45, %s7911_s17  ;;  %v3288_v45 = vld [vmem:[#allocation3 + $0x1] sm:$0xff] }
 0x1f7   : > { %v1983_v44 = vpop.permute.xlu1 %1982 }
 0x1f8   : > { %2064 = vst.msk [vmem:[#allocation4 + $0x3c] sm:$0xf] %vm2048_vm9, %v1983_v44  ;;  %v2238_v3 = vpop.permute.xlu0 %2237  ;;  %v7208_v44 = vpack.c.bf16 %v3288_v45, %v3288_v45 }
 0x1f9   : > { %2002 = vrot.lane.b32.xlu1 %v7105_v39, %s7911_s17  ;;  %2320 = vst.msk [vmem:[#allocation4 + $0x38] sm:$0xf] %vm2305_vm10, %v2238_v3 }
 0x1fa   : > { %2257 = vrot.lane.b32.xlu0 %v8822_v20, %s7912_s6  ;;  %v1853_v20 = vld [vmem:[#allocation2 + $0x188] sm:$0xff] }
 0x1fb   : > { %v2236_v53 = vpop.permute.xlu1 %2235  ;;  %v7109_v36 = vpack.c.bf16 %v1853_v20, %v1853_v20  ;;  %v7780_v20 = vld [vmem:[%s10294_s3 + $0x78] sm:$0xff]  }
 0x1fc   : > { %2319 = vst.msk [vmem:[#allocation4 + $0x34] sm:$0xf] %vm2305_vm10, %v2236_v53  ;;  %v2491_v62 = vpop.permute.xlu0 %2490  ;;  %v3289_v53 = vld [vmem:[#allocation3 + $0x9] sm:$0xff]  ;;  %7487 = vmatprep.subr.bf16.mxu1 %v7780_v20 }
 0x1fd   : > { %2006 = vrot.lane.b32.xlu1 %v7107_v46, %s7911_s17  ;;  %2575 = vst.msk [vmem:[#allocation4 + $0x30] sm:$0xf] %vm2562_vm11, %v2491_v62  ;;  %v7175_v46 = vpack.c.bf16 %v2369_v60, %v2369_v60  ;;  %v7209_v4 = vpack.c.bf16 %v3289_v53, %v3289_v53  ;;  %7488 = vmatpush3.bf16.msra.mxu1 %v7781_v7  ;;  %v7784_v60 = vld [vmem:[%s10294_s3 + $0x68] sm:$0xff]  }
 0x1fe   : > { %2261 = vrot.lane.b32.xlu0 %v7138_v52, %s7912_s6 }
 0x1ff   : > { %v2240_v9 = vpop.permute.xlu1 %2239 }
 0x200   : > { %2321 = vst.msk [vmem:[#allocation4 + $0x3c] sm:$0xf] %vm2305_vm10, %v2240_v9  ;;  %v2495_v61 = vpop.permute.xlu0 %2494 }
 0x201   : > { %2259 = vrot.lane.b32.xlu1 %v8834_v24, %s7912_s6  ;;  %2577 = vst.msk [vmem:[#allocation4 + $0x38] sm:$0xf] %vm2562_vm11, %v2495_v61 }
 0x202   : > { %2514 = vrot.lane.b32.xlu0 %v8911_v47, %s7913_s11 }
 0x203   : > { %v2493_v6 = vpop.permute.xlu1 %2492 }
 0x204   : > { %2576 = vst.msk [vmem:[#allocation4 + $0x34] sm:$0xf] %vm2562_vm11, %v2493_v6  ;;  %v1470_v11 = vpop.permute.xlu0 %1469 }
 0x205   : > { %2263 = vrot.lane.b32.xlu1 %v7139_v63, %s7912_s6  ;;  %1550 = vst.msk [vmem:[#allocation4 + $0x40] sm:$0xf] %vm1533_vm7, %v1470_v11 }
 0x206   : > { %2518 = vrot.lane.b32.xlu0 %v7170_v21, %s7913_s11 }
 0x207   : > { %v2497_v31 = vpop.permute.xlu1 %2496 }
 0x208   : > { %2578 = vst.msk [vmem:[#allocation4 + $0x3c] sm:$0xf] %vm2562_vm11, %v2497_v31  ;;  %v1474_v37 = vpop.permute.xlu0 %1473 }
 0x209   : > { %2516 = vrot.lane.b32.xlu1 %v7075_v57, %s7913_s11  ;;  %1552 = vst.msk [vmem:[#allocation4 + $0x48] sm:$0xf] %vm1533_vm7, %v1474_v37  ;;  %v7143_v57 = vpack.c.bf16 %v2112_v50, %v2112_v50 }
 0x20a   : > { %1493 = vrot.lane.b32.xlu0 %v7138_v52, %s7908_s13 }
 0x20b   : > { %v1472_v10 = vpop.permute.xlu1 %1471  ;;  %v7763_v19 = vld [vmem:[#allocation4 + $0x30] sm:$0xff]  }
 0x20c   : > { %1551 = vst.msk [vmem:[#allocation4 + $0x44] sm:$0xf] %vm1533_vm7, %v1472_v10  ;;  %v1727_v17 = vpop.permute.xlu0 %1726  ;;  %7641 = vmatprep.mubr.msk.bf16.mxu0 %vm2758_vm12, %v7763_v19 }
 0x20d   : > { %2520 = vrot.lane.b32.xlu1 %v7171_v12, %s7913_s11  ;;  %1807 = vst.msk [vmem:[#allocation4 + $0x40] sm:$0xf] %vm1790_vm8, %v1727_v17 }
 0x20e   : > { %1497 = vrot.lane.b32.xlu0 %v7046_v32, %s7908_s13 }
 0x20f   : > { %v1476_v38 = vpop.permute.xlu1 %1475  ;;  %v7764_v34 = vld [vmem:[#allocation4 + $0x38] sm:$0xff]  }
 0x210   : > { %1553 = vst.msk [vmem:[#allocation4 + $0x4c] sm:$0xf] %vm1533_vm7, %v1476_v38  ;;  %v1731_v18 = vpop.permute.xlu0 %1730  ;;  %7642 = vmatmul.mubr.msk.bf16.gmra.mxu0 %vm2758_vm12, %v7764_v34 }
 0x211   : > { %1495 = vrot.lane.b32.xlu1 %v7139_v63, %s7908_s13  ;;  %1809 = vst.msk [vmem:[#allocation4 + $0x48] sm:$0xf] %vm1790_vm8, %v1731_v18 }
 0x212   : > { %1750 = vrot.lane.b32.xlu0 %v7170_v21, %s7909_s14 }
 0x213   : > { %v1729_v22 = vpop.permute.xlu1 %1728 }
 0x214   : > { %1808 = vst.msk [vmem:[#allocation4 + $0x44] sm:$0xf] %vm1790_vm8, %v1729_v22  ;;  %v1985_v5 = vpop.permute.xlu0 %1984 }
 0x215   : > { %1499 = vrot.lane.b32.xlu1 %v7047_v28, %s7908_s13  ;;  %2065 = vst.msk [vmem:[#allocation4 + $0x40] sm:$0xf] %vm2048_vm9, %v1985_v5  ;;  %s7915_s13 = smov 64  }
 0x216   : > { %1754 = vrot.lane.b32.xlu0 %v7078_v29, %s7909_s14 }
 0x217   : > { %v1733_v1 = vpop.permute.xlu1 %1732 }
 0x218   : > { %1810 = vst.msk [vmem:[#allocation4 + $0x4c] sm:$0xf] %vm1790_vm8, %v1733_v1  ;;  %v1989_v41 = vpop.permute.xlu0 %1988 }
 0x219   : > { %1752 = vrot.lane.b32.xlu1 %v7171_v12, %s7909_s14  ;;  %2067 = vst.msk [vmem:[#allocation4 + $0x48] sm:$0xf] %vm2048_vm9, %v1989_v41 }
 0x21a   : > { %2008 = vrot.lane.b32.xlu0 %v7108_v35, %s7911_s17  ;;  %v9068_v35 = vld [vmem:[%s10293_s2] ss:$0 sm:$0xff] }
 0x21b   : > { %v1987_v27 = vpop.permute.xlu1 %1986 }
 0x21c   : > { %2066 = vst.msk [vmem:[#allocation4 + $0x44] sm:$0xf] %vm2048_vm9, %v1987_v27  ;;  %v2242_v42 = vpop.permute.xlu0 %2241  ;;  %v3095_v27 = vld [vmem:[#allocation3] sm:$0xff] }
 0x21d   : > { %1756 = vrot.lane.b32.xlu1 %v7079_v14, %s7909_s14  ;;  %2322 = vst.msk [vmem:[#allocation4 + $0x40] sm:$0xf] %vm2305_vm10, %v2242_v42  ;;  %v7176_v25 = vpack.c.bf16 %v3095_v27, %v3095_v27  ;;  %v7792_v27 = vld [vmem:[%s10294_s3 + $0x10] sm:$0xff]  }
 0x21e   : > { %2012 = vrot.lane.b32.xlu0 %v7110_v23, %s7911_s17  ;;  %v3096_v23 = vld [vmem:[#allocation3 + $0x8] sm:$0xff] }
 0x21f   : > { %v1991_v24 = vpop.permute.xlu1 %1990  ;;  %3256 = vst.msk [vmem:[#allocation5] sm:$0xf] %vm3255_vm15, %v7176_v25  ;;  %v7794_v25 = vld [vmem:[%s10294_s3 + $0x48] sm:$0xff]  }
 0x220   : > { %2068 = vst.msk [vmem:[#allocation4 + $0x4c] sm:$0xf] %vm2048_vm9, %v1991_v24  ;;  %v2246_v47 = vpop.permute.xlu0 %2245  ;;  %v7177_v24 = vpack.c.bf16 %v3096_v23, %v3096_v23 }
 0x221   : > { %2010 = vrot.lane.b32.xlu1 %v7109_v36, %s7911_s17  ;;  %2324 = vst.msk [vmem:[#allocation4 + $0x48] sm:$0xf] %vm2305_vm10, %v2246_v47 }
 0x222   : > { %2265 = vrot.lane.b32.xlu0 %v7046_v32, %s7912_s6  ;;  %3257 = vst.msk [vmem:[#allocation5 + $0xc] sm:$0xf] %vm3255_vm15, %v7177_v24 }
 0x223   : > { %v2244_v48 = vpop.permute.xlu1 %2243 }
 0x224   : > { %2323 = vst.msk [vmem:[#allocation4 + $0x44] sm:$0xf] %vm2305_vm10, %v2244_v48  ;;  %v2499_v49 = vpop.permute.xlu0 %2498 }
 0x225   : > { %2014 = vrot.lane.b32.xlu1 %v7111_v43, %s7911_s17  ;;  %2579 = vst.msk [vmem:[#allocation4 + $0x40] sm:$0xf] %vm2562_vm11, %v2499_v49 }
 0x226   : > { %2269 = vrot.lane.b32.xlu0 %v7142_v30, %s7912_s6 }
 0x227   : > { %v2248_v54 = vpop.permute.xlu1 %2247 }
 0x228   : > { %2325 = vst.msk [vmem:[#allocation4 + $0x4c] sm:$0xf] %vm2305_vm10, %v2248_v54  ;;  %v2503_v0 = vpop.permute.xlu0 %2502  ;;  %v7782_v54 = vld [vmem:[%s10294_s3 + $0x70] sm:$0xff]  }
 0x229   : > { %2267 = vrot.lane.b32.xlu1 %v7047_v28, %s7912_s6  ;;  %2581 = vst.msk [vmem:[#allocation4 + $0x48] sm:$0xf] %vm2562_vm11, %v2503_v0  ;;  %v7783_v0 = vld [vmem:[%s10294_s3 + $0x30] sm:$0xff]   ;;  %7489 = vmatprep.subr.bf16.mxu1 %v7782_v54  ;;  %v7797_v54 = vld [vmem:[%s10294_s3] sm:$0xff]  }
 0x22a   : > { %2522 = vrot.lane.b32.xlu0 %v7078_v29, %s7913_s11  ;;  %7490 = vmatpush3.bf16.msra.mxu1 %v7783_v0 }
 0x22b   : > { %v2501_v58 = vpop.permute.xlu1 %2500  ;;  %7491 = vmatprep.subr.bf16.mxu1 %v7784_v60 }
 0x22c   : > { %2580 = vst.msk [vmem:[#allocation4 + $0x44] sm:$0xf] %vm2562_vm11, %v2501_v58  ;;  %v1478_v39 = vpop.permute.xlu0 %1477 }
 0x22d   : > { %2271 = vrot.lane.b32.xlu1 %v7143_v57, %s7912_s6  ;;  %1554 = vst.msk [vmem:[#allocation4 + $0x50] sm:$0xf] %vm1533_vm7, %v1478_v39 }
 0x22e   : > { %2526 = vrot.lane.b32.xlu0 %v7174_v59, %s7913_s11 }
 0x22f   : > { %v2505_v2 = vpop.permute.xlu1 %2504 }
 0x230   : > { %2582 = vst.msk [vmem:[#allocation4 + $0x4c] sm:$0xf] %vm2562_vm11, %v2505_v2  ;;  %v1482_v3 = vpop.permute.xlu0 %1481 }
 0x231   : > { %2524 = vrot.lane.b32.xlu1 %v7079_v14, %s7913_s11  ;;  %1556 = vst.msk [vmem:[#allocation4 + $0x58] sm:$0xf] %vm1533_vm7, %v1482_v3 }
 0x232   : > { %3416 = vrot.lane.b32.xlu0 %v7208_v44, %s7914_s16  ;;  %v7785_v44 = vld [vmem:[%s10294_s3 + $0x28] sm:$0xff]  }
 0x233   : > { %v1480_v52 = vpop.permute.xlu1 %1479  ;;  %v7765_v62 = vld [vmem:[#allocation4 + $0x40] sm:$0xff]   ;;  %7492 = vmatpush3.bf16.msra.mxu1 %v7785_v44 }
 0x234   : > { %1555 = vst.msk [vmem:[#allocation4 + $0x54] sm:$0xf] %vm1533_vm7, %v1480_v52  ;;  %v1735_v9 = vpop.permute.xlu0 %1734  ;;  %7645 = vmatprep.mubr.msk.bf16.mxu0 %vm2758_vm12, %v7765_v62  ;;  %v7786_v52 = vld [vmem:[%s10294_s3 + $0x60] sm:$0xff]  }
 0x235   : > { %2528 = vrot.lane.b32.xlu1 %v7175_v46, %s7913_s11  ;;  %1811 = vst.msk [vmem:[#allocation4 + $0x50] sm:$0xf] %vm1790_vm8, %v1735_v9  ;;  %7493 = vmatprep.subr.bf16.mxu1 %v7786_v52  ;;  %s215_s11 = sand.u32 1, %s7894_s19  }
 0x236   : > { %s6181_s14 = sshll.u32 %s215_s11, 8  ;;  %s10251_s30 = scalar_lea.sflag [#allocation7], %s215_s11 }
 0x237   : > { %v1484_v63 = vpop.permute.xlu1 %1483  ;;  %v7766_v61 = vld [vmem:[#allocation4 + $0x48] sm:$0xff]   ;;  %s10061_s17 = scalar_lea.vmem [#allocation6], %s6181_s14 }
 0x238   : > { %1557 = vst.msk [vmem:[#allocation4 + $0x5c] sm:$0xf] %vm1533_vm7, %v1484_v63  ;;  %v1739_v6 = vpop.permute.xlu0 %1738  ;;  %7646 = vmatmul.mubr.msk.bf16.gmra.mxu0 %vm2758_vm12, %v7766_v61  ;;  %v7787_v63 = vld [vmem:[%s10294_s3 + $0x20] sm:$0xff]  }
 0x239   : > { %3418 = vrot.lane.b32.xlu1 %v7209_v4, %s7914_s16  ;;  %1813 = vst.msk [vmem:[#allocation4 + $0x58] sm:$0xf] %vm1790_vm8, %v1739_v6  ;;  %7494 = vmatpush3.bf16.msra.mxu1 %v7787_v63 }
 0x23b   : > { %v1737_v21 = vpop.permute.xlu1 %1736 }
 0x23c   : > { %1812 = vst.msk [vmem:[#allocation4 + $0x54] sm:$0xf] %vm1790_vm8, %v1737_v21  ;;  %v1993_v11 = vpop.permute.xlu0 %1992 }
 0x23d   : > { %2069 = vst.msk [vmem:[#allocation4 + $0x50] sm:$0xf] %vm2048_vm9, %v1993_v11 }
 0x23f   : > { %v1741_v8 = vpop.permute.xlu1 %1740 }
 0x240   : > { %1814 = vst.msk [vmem:[#allocation4 + $0x5c] sm:$0xf] %vm1790_vm8, %v1741_v8  ;;  %v1997_v31 = vpop.permute.xlu0 %1996 }
 0x241   : > { %2071 = vst.msk [vmem:[#allocation4 + $0x58] sm:$0xf] %vm2048_vm9, %v1997_v31  ;;  %v3546_v31 = vld [vmem:[#allocation3 + $0xa] sm:$0xff] }
 0x243   : > { %v1995_v15 = vpop.permute.xlu1 %1994 }
 0x244   : > { %2070 = vst.msk [vmem:[#allocation4 + $0x54] sm:$0xf] %vm2048_vm9, %v1995_v15  ;;  %v2250_v12 = vpop.permute.xlu0 %2249  ;;  %v3545_v15 = vld [vmem:[#allocation3 + $0x2] sm:$0xff] }
 0x245   : > { %2326 = vst.msk [vmem:[#allocation4 + $0x50] sm:$0xf] %vm2305_vm10, %v2250_v12 }
 0x247   : > { %v1999_v37 = vpop.permute.xlu1 %1998 }
 0x248   : > { %2072 = vst.msk [vmem:[#allocation4 + $0x5c] sm:$0xf] %vm2048_vm9, %v1999_v37  ;;  %v2254_v10 = vpop.permute.xlu0 %2253 }
 0x249   : > { %2328 = vst.msk [vmem:[#allocation4 + $0x58] sm:$0xf] %vm2305_vm10, %v2254_v10 }
 0x24b   : > { %v2252_v32 = vpop.permute.xlu1 %2251 }
 0x24c   : > { %2327 = vst.msk [vmem:[#allocation4 + $0x54] sm:$0xf] %vm2305_vm10, %v2252_v32  ;;  %v2507_v19 = vpop.permute.xlu0 %2506  ;;  %v7788_v32 = vld [vmem:[%s10294_s3 + $0x58] sm:$0xff]  }
 0x24d   : > { %2583 = vst.msk [vmem:[#allocation4 + $0x50] sm:$0xf] %vm2562_vm11, %v2507_v19  ;;  %7495 = vmatprep.subr.bf16.mxu1 %v7788_v32 }
 0x24f   : > { %v2256_v17 = vpop.permute.xlu1 %2255 }
 0x250   : > { %2329 = vst.msk [vmem:[#allocation4 + $0x5c] sm:$0xf] %vm2305_vm10, %v2256_v17  ;;  %v2511_v13 = vpop.permute.xlu0 %2510 }
 0x251   : > { %2585 = vst.msk [vmem:[#allocation4 + $0x58] sm:$0xf] %vm2562_vm11, %v2511_v13 }
 0x253   : > { %v2509_v38 = vpop.permute.xlu1 %2508 }
 0x254   : > { %2584 = vst.msk [vmem:[#allocation4 + $0x54] sm:$0xf] %vm2562_vm11, %v2509_v38  ;;  %v1486_v34 = vpop.permute.xlu0 %1485 }
 0x255   : > { %1558 = vst.msk [vmem:[#allocation4 + $0x60] sm:$0xf] %vm1533_vm7, %v1486_v34 }
 0x257   : > { %v2513_v26 = vpop.permute.xlu1 %2512 }
 0x258   : > { %2586 = vst.msk [vmem:[#allocation4 + $0x5c] sm:$0xf] %vm2562_vm11, %v2513_v26  ;;  %v1490_v28 = vpop.permute.xlu0 %1489 }
 0x259   : > { %1560 = vst.msk [vmem:[#allocation4 + $0x68] sm:$0xf] %vm1533_vm7, %v1490_v28 }
 0x25b   : > { %v1488_v18 = vpop.permute.xlu1 %1487  ;;  %v7767_v22 = vld [vmem:[#allocation4 + $0x50] sm:$0xff]  }
 0x25c   : > { %1559 = vst.msk [vmem:[#allocation4 + $0x64] sm:$0xf] %vm1533_vm7, %v1488_v18  ;;  %v1743_v29 = vpop.permute.xlu0 %1742  ;;  %7649 = vmatprep.mubr.msk.bf16.mxu0 %vm2758_vm12, %v7767_v22 }
 0x25d   : > { %1815 = vst.msk [vmem:[#allocation4 + $0x60] sm:$0xf] %vm1790_vm8, %v1743_v29 }
 0x25f   : > { %v1492_v33 = vpop.permute.xlu1 %1491  ;;  %v7768_v5 = vld [vmem:[#allocation4 + $0x58] sm:$0xff]  }
 0x260   : > { %1561 = vst.msk [vmem:[#allocation4 + $0x6c] sm:$0xf] %vm1533_vm7, %v1492_v33  ;;  %v1747_v40 = vpop.permute.xlu0 %1746  ;;  %7650 = vmatmul.mubr.msk.bf16.gmra.mxu0 %vm2758_vm12, %v7768_v5  ;;  %v7790_v5 = vld [vmem:[%s10294_s3 + $0x18] sm:$0xff]  }
 0x261   : > { %1817 = vst.msk [vmem:[#allocation4 + $0x68] sm:$0xf] %vm1790_vm8, %v1747_v40  ;;  %7496 = vmatpush3.bf16.msra.mxu1 %v7790_v5 }
 0x263   : > { %v1745_v1 = vpop.permute.xlu1 %1744 }
 0x264   : > { %1816 = vst.msk [vmem:[#allocation4 + $0x64] sm:$0xf] %vm1790_vm8, %v1745_v1  ;;  %v7631_v16 = vpop.f32.mrf.mxu0  ;;  %v2001_v14 = vpop.permute.xlu0 %2000 }
 0x265   : > { %v2856_v41 = vadd.f32 %v7631_v16, %v9068_v35  ;;  %2073 = vst.msk [vmem:[#allocation4 + $0x60] sm:$0xf] %vm2048_vm9, %v2001_v14  ;;  %v7241_v16 = vpack.c.bf16 %v3546_v31, %v3546_v31  ;;  %v7240_v14 = vpack.c.bf16 %v3545_v15, %v3545_v15 }
 0x266   : > { %v2847_v42 = vpop.f32.mrf.mxu0 }
 0x267   : > { %v1749_v36 = vpop.permute.xlu1 %1748  ;;  %v2976_v43 = vmax.f32 %v2856_v41, 0.0  ;;  %v2848_v47 = vadd.f32 %v9068_v35, %v2847_v42  ;;  %v7791_v41 = vld [vmem:[%s10294_s3 + $0x50] sm:$0xff]  }
 0x268   : > { %1818 = vst.msk [vmem:[#allocation4 + $0x6c] sm:$0xf] %vm1790_vm8, %v1749_v36  ;;  %v7632_v48 = vpop.f32.mrf.mxu0  ;;  %v2005_v30 = vpop.permute.xlu0 %2004  ;;  %7497 = vmatprep.subr.bf16.mxu1 %v7791_v41 }
 0x269   : > { %3065 = vst.msk [vmem:[#allocation3 + $0x31] sm:$0xff] %vm3006_vm13, %v2976_v43  ;;  %v2974_v49 = vmax.f32 %v2848_v47, 0.0  ;;  %v2859_v50 = vadd.f32 %v7632_v48, %v9068_v35  ;;  %7498 = vmatpush3.bf16.msra.mxu1 %v7792_v27  ;;  %v7795_v47 = vld [vmem:[%s10294_s3 + $0x8] sm:$0xff]  }
 0x26a   : > { %2075 = vst.msk [vmem:[#allocation4 + $0x68] sm:$0xf] %vm2048_vm9, %v2005_v30  ;;  %v2850_v57 = vpop.f32.mrf.mxu0  ;;  %7499 = vmatprep.subr.bf16.mxu1 %v7794_v25  ;;  %v7796_v30 = vld [vmem:[%s10294_s3 + $0x40] sm:$0xff]  }
 0x26b   : > { %v2003_v55 = vpop.permute.xlu1 %2002  ;;  %3063 = vst.msk [vmem:[#allocation3 + $0x19] sm:$0xff] %vm3006_vm13, %v2974_v49  ;;  %v2977_v58 = vmax.f32 %v2859_v50, 0.0  ;;  %v2851_v59 = vadd.f32 %v9068_v35, %v2850_v57 }
 0x26c   : > { %2074 = vst.msk [vmem:[#allocation4 + $0x64] sm:$0xf] %vm2048_vm9, %v2003_v55  ;;  %v2258_v45 = vpop.permute.xlu0 %2257 }
 0x26d   : > { %3066 = vst.msk [vmem:[#allocation3 + $0x39] sm:$0xff] %vm3006_vm13, %v2977_v58  ;;  %v2975_v39 = vmax.f32 %v2851_v59, 0.0  ;;  %7500 = vmatpush3.bf16.msra.mxu1 %v7795_v47 }
 0x26e   : > { %2330 = vst.msk [vmem:[#allocation4 + $0x60] sm:$0xf] %vm2305_vm10, %v2258_v45  ;;  %7501 = vmatprep.subr.bf16.mxu1 %v7796_v30 }
 0x26f   : > { %v2007_v2 = vpop.permute.xlu1 %2006  ;;  %3064 = vst.msk [vmem:[#allocation3 + $0x21] sm:$0xff] %vm3006_vm13, %v2975_v39 }
 0x270   : > { %2076 = vst.msk [vmem:[#allocation4 + $0x6c] sm:$0xf] %vm2048_vm9, %v2007_v2  ;;  %v2262_v51 = vpop.permute.xlu0 %2261  ;;  %v4764_v46 = vld [vmem:[#allocation3 + $0x31] sm:$0xff] }
 0x271   : > { %v3099_v3 = vld [vmem:[#allocation3 + $0x30] sm:$0xff]  ;;  %2332 = vst.msk [vmem:[#allocation4 + $0x68] sm:$0xf] %vm2305_vm10, %v2262_v51  ;;  %v9106_v53 = vpack.c.bf16 %v4764_v46, %v4764_v46  ;;  %7502 = vmatpush3.bf16.msra.mxu1 %v7797_v54 }
 0x272   : > { %v7180_v62 = vpack.c.bf16 %v3099_v3, %v3099_v3  ;;  %v3802_v9 = vld [vmem:[#allocation3 + $0x18] sm:$0xff]  ;;  %v4508_v42 = vld [vmem:[#allocation3 + $0x30] sm:$0xff] }
 0x273   : > { %v2260_v56 = vpop.permute.xlu1 %2259  ;;  %v3290_v4 = vld [vmem:[#allocation3 + $0x19] sm:$0xff]  ;;  %v9115_v61 = vpack.c.bf16 %v3802_v9, %v3802_v9  ;;  %4221 = vst.msk [vmem:[#allocation5 + $0x1c] sm:$0xf] %vm3255_vm15, %v9106_v53  ;;  %v9177_v43 = vpack.c.bf16 %v4508_v42, %v4508_v42 }
 0x274   : > { %2331 = vst.msk [vmem:[#allocation4 + $0x64] sm:$0xf] %vm2305_vm10, %v2260_v56  ;;  %v9117_v6 = vpack.c.bf16 %v3290_v4, %v3290_v4  ;;  %v5020_v21 = vld [vmem:[#allocation3 + $0x32] sm:$0xff]  ;;  %v5021_v11 = vld [vmem:[#allocation3 + $0x3a] sm:$0xff]  ;;  %v2515_v8 = vpop.permute.xlu0 %2514 }
 0x275   : > { %3260 = vst.msk [vmem:[#allocation5 + $0x30] sm:$0xf] %vm3255_vm15, %v7180_v62  ;;  %v9122_v12 = vpack.c.bf16 %v5020_v21, %v5020_v21  ;;  %v9124_v37 = vpack.c.bf16 %v5021_v11, %v5021_v11  ;;  %v4765_v10 = vld [vmem:[#allocation3 + $0x39] sm:$0xff]  ;;  %3258 = vst.msk [vmem:[#allocation5 + $0x18] sm:$0xf] %vm3255_vm15, %v9115_v61 }
 0x276   : > { %2587 = vst.msk [vmem:[#allocation4 + $0x60] sm:$0xf] %vm2562_vm11, %v2515_v8  ;;  %v3100_v19 = vld [vmem:[#allocation3 + $0x38] sm:$0xff]  ;;  %v4252_v13 = vld [vmem:[#allocation3 + $0x22] sm:$0xff]  ;;  %v9134_v26 = vpack.c.bf16 %v4765_v10, %v4765_v10 }
 0x277   : > { %4219 = vst.msk [vmem:[#allocation5 + $0x4] sm:$0xf] %vm3255_vm15, %v9117_v6  ;;  %v2264_v17 = vpop.permute.xlu1 %2263  ;;  %v4251_v38 = vld [vmem:[#allocation3 + $0x1a] sm:$0xff]  ;;  %v7181_v28 = vpack.c.bf16 %v3100_v19, %v3100_v19  ;;  %v9137_v18 = vpack.c.bf16 %v4252_v13, %v4252_v13  ;;  %5180 = vst.msk [vmem:[#allocation5 + $0x8] sm:$0xf] %vm3255_vm15, %v9122_v12 }
 0x278   : > { %v3803_v34 = vld [vmem:[#allocation3 + $0x20] sm:$0xff]  ;;  %2333 = vst.msk [vmem:[#allocation4 + $0x6c] sm:$0xf] %vm2305_vm10, %v2264_v17  ;;  %v9139_v22 = vpack.c.bf16 %v4251_v38, %v4251_v38  ;;  %v2519_v40 = vpop.permute.xlu0 %2518  ;;  %v4509_v36 = vld [vmem:[#allocation3 + $0x38] sm:$0xff] }
 0x279   : > { %v7273_v29 = vpack.c.bf16 %v3803_v34, %v3803_v34  ;;  %5181 = vst.msk [vmem:[#allocation5 + $0x14] sm:$0xf] %vm3255_vm15, %v9124_v37  ;;  %v3291_v33 = vld [vmem:[#allocation3 + $0x21] sm:$0xff]  ;;  %4222 = vst.msk [vmem:[#allocation5 + $0x28] sm:$0xf] %vm3255_vm15, %v9134_v26  ;;  %4381 = vrot.lane.b32.xlu1 %v9137_v18, %s7914_s16  ;;  %v9175_v7 = vpack.c.bf16 %v4509_v36, %v4509_v36 }
 0x27a   : > { %v9148_v1 = vpack.c.bf16 %v3291_v33, %v3291_v33  ;;  %3261 = vst.msk [vmem:[#allocation5 + $0x3c] sm:$0xf] %vm3255_vm15, %v7181_v28  ;;  %4379 = vrot.lane.b32.xlu0 %v9139_v22, %s7914_s16 }
 0x27b   : > { %2589 = vst.msk [vmem:[#allocation4 + $0x68] sm:$0xf] %vm2562_vm11, %v2519_v40  ;;  %v2517_v20 = vpop.permute.xlu1 %2516 }
 0x27c   : > { %3259 = vst.msk [vmem:[#allocation5 + $0x24] sm:$0xf] %vm3255_vm15, %v7273_v29  ;;  %4220 = vst.msk [vmem:[#allocation5 + $0x10] sm:$0xf] %vm3255_vm15, %v9148_v1  ;;  %v1494_v23 = vpop.permute.xlu0 %1493 }
 0x27d   : > { %2588 = vst.msk [vmem:[#allocation4 + $0x64] sm:$0xf] %vm2562_vm11, %v2517_v20  ;;  %3675 = vrot.lane.b32.xlu1 %v7241_v16, %s7915_s13 }
 0x27e   : > { %3673 = vrot.lane.b32.xlu0 %v7240_v14, %s7915_s13  ;;  %1562 = vst.msk [vmem:[#allocation4 + $0x70] sm:$0xf] %vm1533_vm7, %v1494_v23 }
 0x27f   : > { %v2521_v24 = vpop.permute.xlu1 %2520 }
 0x280   : > { %2590 = vst.msk [vmem:[#allocation4 + $0x6c] sm:$0xf] %vm2562_vm11, %v2521_v24  ;;  %v1498_v48 = vpop.permute.xlu0 %1497 }
 0x281   : > { %4638 = vrot.lane.b32.xlu1 %v9175_v7, %s7915_s13  ;;  %1564 = vst.msk [vmem:[#allocation4 + $0x78] sm:$0xf] %vm1533_vm7, %v1498_v48 }
 0x282   : > { %4636 = vrot.lane.b32.xlu0 %v9177_v43, %s7915_s13 }
 0x283   : > { %v1496_v49 = vpop.permute.xlu1 %1495 }
 0x284   : > { %v7769_v50 = vld [vmem:[#allocation4 + $0x60] sm:$0xff]   ;;  %1563 = vst.msk [vmem:[#allocation4 + $0x74] sm:$0xf] %vm1533_vm7, %v1496_v49  ;;  %v7635_v55 = vpop.f32.mrf.mxu0  ;;  %v1751_v57 = vpop.permute.xlu0 %1750 }
 0x285   : > { %7653 = vmatprep.mubr.msk.bf16.mxu0 %vm2758_vm12, %v7769_v50  ;;  %v2872_v0 = vadd.f32 %v7635_v55, %v9068_v35  ;;  %3932 = vrot.lane.b32.xlu1 %v7273_v29, %s7916_s8  ;;  %1819 = vst.msk [vmem:[#allocation4 + $0x70] sm:$0xf] %vm1790_vm8, %v1751_v57 }
 0x286   : > { %3930 = vrot.lane.b32.xlu0 %v9115_v61, %s7916_s8  ;;  %v2863_v59 = vpop.f32.mrf.mxu0 }
 0x287   : > { %v1500_v58 = vpop.permute.xlu1 %1499  ;;  %v7770_v45 = vld [vmem:[#allocation4 + $0x68] sm:$0xff]   ;;  %v2980_v39 = vmax.f32 %v2872_v0, 0.0  ;;  %v2864_v60 = vadd.f32 %v9068_v35, %v2863_v59 }
 0x288   : > { %1565 = vst.msk [vmem:[#allocation4 + $0x7c] sm:$0xf] %vm1533_vm7, %v1500_v58  ;;  %v7636_v2 = vpop.f32.mrf.mxu0  ;;  %v1755_v44 = vpop.permute.xlu0 %1754  ;;  %7654 = vmatmul.mubr.msk.bf16.gmra.mxu0 %vm2758_vm12, %v7770_v45 }
 0x289   : > { %3069 = vst.msk [vmem:[#allocation3 + $0x61] sm:$0xff] %vm3006_vm13, %v2980_v39  ;;  %v2978_v51 = vmax.f32 %v2864_v60, 0.0  ;;  %v2875_v46 = vadd.f32 %v7636_v2, %v9068_v35  ;;  %4894 = vrot.lane.b32.xlu1 %v9134_v26, %s7916_s8 }
 0x28a   : > { %4892 = vrot.lane.b32.xlu0 %v9106_v53, %s7916_s8  ;;  %1821 = vst.msk [vmem:[#allocation4 + $0x78] sm:$0xf] %vm1790_vm8, %v1755_v44  ;;  %v2866_v52 = vpop.f32.mrf.mxu0 }
 0x28b   : > { %v1753_v3 = vpop.permute.xlu1 %1752  ;;  %3067 = vst.msk [vmem:[#allocation3 + $0x49] sm:$0xff] %vm3006_vm13, %v2978_v51  ;;  %v2981_v62 = vmax.f32 %v2875_v46, 0.0  ;;  %v2867_v56 = vadd.f32 %v9068_v35, %v2866_v52 }
 0x28c   : > { %1820 = vst.msk [vmem:[#allocation4 + $0x74] sm:$0xf] %vm1790_vm8, %v1753_v3  ;;  %v2009_v9 = vpop.permute.xlu0 %2008 }
 0x28d   : > { %3070 = vst.msk [vmem:[#allocation3 + $0x69] sm:$0xff] %vm3006_vm13, %v2981_v62  ;;  %v2979_v4 = vmax.f32 %v2867_v56, 0.0  ;;  %3422 = vrot.lane.b32.xlu1 %v9148_v1, %s7914_s16  ;;  %v7774_v62 = vld [vmem:[#allocation5 + $0x8] ss:$12 sps:$4 sm:$0xff]  }
 0x28e   : > { %3420 = vrot.lane.b32.xlu0 %v9117_v6, %s7914_s16  ;;  %2077 = vst.msk [vmem:[#allocation4 + $0x70] sm:$0xf] %vm2048_vm9, %v2009_v9 }
 0x28f   : > { %v1757_v63 = vpop.permute.xlu1 %1756  ;;  %3068 = vst.msk [vmem:[#allocation3 + $0x51] sm:$0xff] %vm3006_vm13, %v2979_v4 }
 0x290   : > { %1822 = vst.msk [vmem:[#allocation4 + $0x7c] sm:$0xf] %vm1790_vm8, %v1757_v63  ;;  %v2013_v61 = vpop.permute.xlu0 %2012  ;;  %v4768_v21 = vld [vmem:[#allocation3 + $0x61] sm:$0xff] }
 0x291   : > { %v3103_v11 = vld [vmem:[#allocation3 + $0x60] sm:$0xff]  ;;  %4385 = vrot.lane.b32.xlu1 %v9124_v37, %s7914_s16  ;;  %2079 = vst.msk [vmem:[#allocation4 + $0x78] sm:$0xf] %vm2048_vm9, %v2013_v61  ;;  %v9226_v8 = vpack.c.bf16 %v4768_v21, %v4768_v21 }
 0x292   : > { %4383 = vrot.lane.b32.xlu0 %v9122_v12, %s7914_s16  ;;  %v7184_v6 = vpack.c.bf16 %v3103_v11, %v3103_v11  ;;  %v4766_v15 = vld [vmem:[#allocation3 + $0x49] sm:$0xff]  ;;  %v4512_v44 = vld [vmem:[#allocation3 + $0x60] sm:$0xff] }
 0x293   : > { %v2011_v31 = vpop.permute.xlu1 %2010  ;;  %v3101_v10 = vld [vmem:[#allocation3 + $0x48] sm:$0xff]  ;;  %v9229_v32 = vpack.c.bf16 %v4766_v15, %v4766_v15  ;;  %4225 = vst.msk [vmem:[#allocation5 + $0x4c] sm:$0xf] %vm3255_vm15, %v9226_v8  ;;  %v9316_v9 = vpack.c.bf16 %v4512_v44, %v4512_v44 }
 0x294   : > { %2078 = vst.msk [vmem:[#allocation4 + $0x74] sm:$0xf] %vm2048_vm9, %v2011_v31  ;;  %v7182_v19 = vpack.c.bf16 %v3101_v10, %v3101_v10  ;;  %v5024_v17 = vld [vmem:[#allocation3 + $0x62] sm:$0xff]  ;;  %v5025_v13 = vld [vmem:[#allocation3 + $0x6a] sm:$0xff]  ;;  %v2266_v38 = vpop.permute.xlu0 %2265 }
 0x295   : > { %3264 = vst.msk [vmem:[#allocation5 + $0x60] sm:$0xf] %vm3255_vm15, %v7184_v6  ;;  %v4510_v34 = vld [vmem:[#allocation3 + $0x48] sm:$0xff]  ;;  %v9234_v28 = vpack.c.bf16 %v5024_v17, %v5024_v17  ;;  %v9236_v29 = vpack.c.bf16 %v5025_v13, %v5025_v13  ;;  %3679 = vrot.lane.b32.xlu1 %v9137_v18, %s7915_s13  ;;  %4223 = vst.msk [vmem:[#allocation5 + $0x34] sm:$0xf] %vm3255_vm15, %v9229_v32 }
 0x296   : > { %3677 = vrot.lane.b32.xlu0 %v9139_v22, %s7915_s13  ;;  %2334 = vst.msk [vmem:[#allocation4 + $0x70] sm:$0xf] %vm2305_vm10, %v2266_v38  ;;  %v4769_v33 = vld [vmem:[#allocation3 + $0x69] sm:$0xff]  ;;  %v5023_v1 = vld [vmem:[#allocation3 + $0x52] sm:$0xff]  ;;  %v9259_v23 = vpack.c.bf16 %v4510_v34, %v4510_v34 }
 0x297   : > { %3262 = vst.msk [vmem:[#allocation5 + $0x48] sm:$0xf] %vm3255_vm15, %v7182_v19  ;;  %v3104_v5 = vld [vmem:[#allocation3 + $0x68] sm:$0xff]  ;;  %v2015_v16 = vpop.permute.xlu1 %2014  ;;  %v4511_v14 = vld [vmem:[#allocation3 + $0x50] sm:$0xff]  ;;  %v9246_v41 = vpack.c.bf16 %v4769_v33, %v4769_v33  ;;  %v9250_v27 = vpack.c.bf16 %v5023_v1, %v5023_v1  ;;  %5184 = vst.msk [vmem:[#allocation5 + $0x38] sm:$0xf] %vm3255_vm15, %v9234_v28 }
 0x298   : > { %v5022_v40 = vld [vmem:[#allocation3 + $0x4a] sm:$0xff]  ;;  %v7185_v20 = vpack.c.bf16 %v3104_v5, %v3104_v5  ;;  %5185 = vst.msk [vmem:[#allocation5 + $0x44] sm:$0xf] %vm3255_vm15, %v9236_v29  ;;  %v9257_v22 = vpack.c.bf16 %v4511_v14, %v4511_v14  ;;  %v2270_v25 = vpop.permute.xlu0 %2269 }
 0x299   : > { %v9248_v18 = vpack.c.bf16 %v5022_v40, %v5022_v40  ;;  %2080 = vst.msk [vmem:[#allocation4 + $0x7c] sm:$0xf] %vm2048_vm9, %v2015_v16  ;;  %v4767_v36 = vld [vmem:[#allocation3 + $0x51] sm:$0xff]  ;;  %v4513_v39 = vld [vmem:[#allocation3 + $0x68] sm:$0xff] }
 0x29a   : > { %v3102_v42 = vld [vmem:[#allocation3 + $0x50] sm:$0xff]  ;;  %v9261_v24 = vpack.c.bf16 %v4767_v36, %v4767_v36  ;;  %4226 = vst.msk [vmem:[#allocation5 + $0x58] sm:$0xf] %vm3255_vm15, %v9246_v41  ;;  %3265 = vst.msk [vmem:[#allocation5 + $0x6c] sm:$0xf] %vm3255_vm15, %v7185_v20  ;;  %4642 = vrot.lane.b32.xlu1 %v9257_v22, %s7915_s13  ;;  %4640 = vrot.lane.b32.xlu0 %v9259_v23, %s7915_s13  ;;  %v9313_v56 = vpack.c.bf16 %v4513_v39, %v4513_v39 }
 0x29b   : > { %v7183_v47 = vpack.c.bf16 %v3102_v42, %v3102_v42  ;;  %5182 = vst.msk [vmem:[#allocation5 + $0x20] sm:$0xf] %vm3255_vm15, %v9248_v18  ;;  %5183 = vst.msk [vmem:[#allocation5 + $0x2c] sm:$0xf] %vm3255_vm15, %v9250_v27  ;;  %v2268_v48 = vpop.permute.xlu1 %2267 }
 0x29c   : > { %2336 = vst.msk [vmem:[#allocation4 + $0x78] sm:$0xf] %vm2305_vm10, %v2270_v25  ;;  %2335 = vst.msk [vmem:[#allocation4 + $0x74] sm:$0xf] %vm2305_vm10, %v2268_v48  ;;  %v2523_v30 = vpop.permute.xlu0 %2522 }
 0x29d   : > { %4224 = vst.msk [vmem:[#allocation5 + $0x40] sm:$0xf] %vm3255_vm15, %v9261_v24  ;;  %3263 = vst.msk [vmem:[#allocation5 + $0x54] sm:$0xf] %vm3255_vm15, %v7183_v47 }
 0x29e   : > { %3936 = vrot.lane.b32.xlu1 %v9175_v7, %s7916_s8  ;;  %3934 = vrot.lane.b32.xlu0 %v9177_v43, %s7916_s8  ;;  %2591 = vst.msk [vmem:[#allocation4 + $0x70] sm:$0xf] %vm2562_vm11, %v2523_v30 }
 0x29f   : > { %v2272_v49 = vpop.permute.xlu1 %2271  ;;  %v7777_v6 = vld [vmem:[#allocation5 + $0x38] ss:$12 sps:$4 sm:$0xff]  }
 0x2a0   : > { %2337 = vst.msk [vmem:[#allocation4 + $0x7c] sm:$0xf] %vm2305_vm10, %v2272_v49  ;;  %v2527_v50 = vpop.permute.xlu0 %2526 }
 0x2a1   : > { %2593 = vst.msk [vmem:[#allocation4 + $0x78] sm:$0xf] %vm2562_vm11, %v2527_v50 }
 0x2a2   : > { %4898 = vrot.lane.b32.xlu1 %v9261_v24, %s7916_s8  ;;  %4896 = vrot.lane.b32.xlu0 %v9229_v32, %s7916_s8  ;;  %v7776_v61 = vld [vmem:[#allocation5 + $0x20] ss:$12 sps:$4 sm:$0xff]  }
 0x2a3   : > { %v2525_v54 = vpop.permute.xlu1 %2524 }
 0x2a4   : > { %2592 = vst.msk [vmem:[#allocation4 + $0x74] sm:$0xf] %vm2562_vm11, %v2525_v54  ;;  %v3417_v7 = vpop.permute.xlu0 %3416 }
 0x2a5   : > { %3513 = vst.msk [vmem:[#allocation5] sm:$0xf] %vm3512_vm0, %v3417_v7 }
 0x2a6   : > { %3426 = vrot.lane.b32.xlu1 %v9134_v26, %s7914_s16  ;;  %3424 = vrot.lane.b32.xlu0 %v9106_v53, %s7914_s16 }
 0x2a7   : > { %v2529_v43 = vpop.permute.xlu1 %2528 }
 0x2a8   : > { %2594 = vst.msk [vmem:[#allocation4 + $0x7c] sm:$0xf] %vm2562_vm11, %v2529_v43  ;;  %v7639_v55 = vpop.f32.mrf.mxu0 }
 0x2a9   : > { %v2888_v57 = vadd.f32 %v7639_v55, %v9068_v35 }
 0x2aa   : > { %4389 = vrot.lane.b32.xlu1 %v9250_v27, %s7914_s16  ;;  %4387 = vrot.lane.b32.xlu0 %v9248_v18, %s7914_s16  ;;  %v2879_v0 = vpop.f32.mrf.mxu0 }
 0x2ab   : > { %v7771_v58 = vld [vmem:[#allocation4 + $0x70] sm:$0xff]   ;;  %v3419_v26 = vpop.permute.xlu1 %3418  ;;  %v2984_v59 = vmax.f32 %v2888_v57, 0.0  ;;  %v2880_v53 = vadd.f32 %v9068_v35, %v2879_v0 }
 0x2ac   : > { %3514 = vst.msk [vmem:[#allocation5 + $0xc] sm:$0xf] %vm3512_vm0, %v3419_v26  ;;  %v7640_v45 = vpop.f32.mrf.mxu0  ;;  %7657 = vmatprep.mubr.msk.bf16.mxu0 %vm2758_vm12, %v7771_v58 }
 0x2ad   : > { %3073 = vst.msk [vmem:[#allocation3 + $0x91] sm:$0xff] %vm3006_vm13, %v2984_v59  ;;  %v2982_v60 = vmax.f32 %v2880_v53, 0.0  ;;  %v2891_v2 = vadd.f32 %v7640_v45, %v9068_v35 }
 0x2ae   : > { %3683 = vrot.lane.b32.xlu1 %v9124_v37, %s7915_s13  ;;  %3681 = vrot.lane.b32.xlu0 %v9122_v12, %s7915_s13  ;;  %v2882_v51 = vpop.f32.mrf.mxu0 }
 0x2af   : > { %v7772_v46 = vld [vmem:[#allocation4 + $0x78] sm:$0xff]   ;;  %3071 = vst.msk [vmem:[#allocation3 + $0x79] sm:$0xff] %vm3006_vm13, %v2982_v60  ;;  %v2985_v3 = vmax.f32 %v2891_v2, 0.0  ;;  %v2883_v52 = vadd.f32 %v9068_v35, %v2882_v51 }
 0x2b0   : > { %7658 = vmatmul.mubr.msk.bf16.gmra.mxu0 %vm2758_vm12, %v7772_v46 }
 0x2b1   : > { %3074 = vst.msk [vmem:[#allocation3 + $0x99] sm:$0xff] %vm3006_vm13, %v2985_v3  ;;  %v2983_v37 = vmax.f32 %v2883_v52, 0.0  ;;  %7665 = vmatprep.mubr.msk.bf16.mxu0 %vm3006_vm13, %v7774_v62 }
 0x2b2   : > { %4646 = vrot.lane.b32.xlu1 %v9313_v56, %s7915_s13  ;;  %4644 = vrot.lane.b32.xlu0 %v9316_v9, %s7915_s13 }
 0x2b3   : > { %3072 = vst.msk [vmem:[#allocation3 + $0x81] sm:$0xff] %vm3006_vm13, %v2983_v37 }
 0x2b4   : > { %v4069_v12 = vld [vmem:[#allocation3 + $0x91] sm:$0xff] }
 0x2b5   : > { %v7314_v4 = vpack.c.bf16 %v4069_v12, %v4069_v12  ;;  %v3107_v63 = vld [vmem:[#allocation3 + $0x90] sm:$0xff] }
 0x2b6   : > { %3940 = vrot.lane.b32.xlu1 %v9257_v22, %s7916_s8  ;;  %3938 = vrot.lane.b32.xlu0 %v9259_v23, %s7916_s8  ;;  %v4067_v21 = vld [vmem:[#allocation3 + $0x79] sm:$0xff]  ;;  %v7188_v11 = vpack.c.bf16 %v3107_v63, %v3107_v63 }
 0x2b7   : > { %v7312_v31 = vpack.c.bf16 %v4067_v21, %v4067_v21  ;;  %v3105_v15 = vld [vmem:[#allocation3 + $0x78] sm:$0xff]  ;;  %4229 = vst.msk [vmem:[#allocation5 + $0x7c] sm:$0xf] %vm3255_vm15, %v7314_v4 }
 0x2b8   : > { %v5028_v10 = vld [vmem:[#allocation3 + $0x92] sm:$0xff]  ;;  %v5029_v19 = vld [vmem:[#allocation3 + $0x9a] sm:$0xff]  ;;  %7666 = vmatmul.mubr.msk.bf16.vlgmr.msra.gmra.mxu0 %vm3006_vm13, %v7776_v61  ;;  %v7186_v17 = vpack.c.bf16 %v3105_v15, %v3105_v15  ;;  %3268 = vst.msk [vmem:[#allocation5 + $0x90] sm:$0xf] %vm3255_vm15, %v7188_v11 }
 0x2b9   : > { %v9332_v13 = vpack.c.bf16 %v5028_v10, %v5028_v10  ;;  %v9334_v38 = vpack.c.bf16 %v5029_v19, %v5029_v19  ;;  %7669 = vmatprep.mubr.msk.bf16.mxu0 %vm3006_vm13, %v7777_v6  ;;  %4227 = vst.msk [vmem:[#allocation5 + $0x64] sm:$0xf] %vm3255_vm15, %v7312_v31  ;;  %v4070_v34 = vld [vmem:[#allocation3 + $0x99] sm:$0xff] }
 0x2ba   : > { %4902 = vrot.lane.b32.xlu1 %v9246_v41, %s7916_s8  ;;  %v3108_v33 = vld [vmem:[#allocation3 + $0x98] sm:$0xff]  ;;  %v5027_v40 = vld [vmem:[#allocation3 + $0x82] sm:$0xff]  ;;  %4900 = vrot.lane.b32.xlu0 %v9226_v8, %s7916_s8  ;;  %3266 = vst.msk [vmem:[#allocation5 + $0x78] sm:$0xf] %vm3255_vm15, %v7186_v17  ;;  %v7315_v1 = vpack.c.bf16 %v4070_v34, %v4070_v34 }
 0x2bb   : > { %v5026_v5 = vld [vmem:[#allocation3 + $0x7a] sm:$0xff]  ;;  %v7189_v16 = vpack.c.bf16 %v3108_v33, %v3108_v33  ;;  %5188 = vst.msk [vmem:[#allocation5 + $0x68] sm:$0xf] %vm3255_vm15, %v9332_v13  ;;  %5189 = vst.msk [vmem:[#allocation5 + $0x74] sm:$0xf] %vm3255_vm15, %v9334_v38  ;;  %v9349_v20 = vpack.c.bf16 %v5027_v40, %v5027_v40 }
 0x2bc   : > { %v9347_v14 = vpack.c.bf16 %v5026_v5, %v5026_v5  ;;  %v4068_v22 = vld [vmem:[#allocation3 + $0x81] sm:$0xff]  ;;  %4230 = vst.msk [vmem:[#allocation5 + $0x88] sm:$0xf] %vm3255_vm15, %v7315_v1  ;;  %v4517_v39 = vld [vmem:[#allocation3 + $0x98] sm:$0xff] }
 0x2bd   : > { %v3106_v23 = vld [vmem:[#allocation3 + $0x80] sm:$0xff]  ;;  %v7313_v36 = vpack.c.bf16 %v4068_v22, %v4068_v22  ;;  %3269 = vst.msk [vmem:[#allocation5 + $0x9c] sm:$0xf] %vm3255_vm15, %v7189_v16  ;;  %5187 = vst.msk [vmem:[#allocation5 + $0x5c] sm:$0xf] %vm3255_vm15, %v9349_v20  ;;  %v9413_v3 = vpack.c.bf16 %v4517_v39, %v4517_v39  ;;  %v4772_v5 = vld [vmem:[#allocation3 + $0x91] sm:$0xff] }
 0x2be   : > { %v7187_v42 = vpack.c.bf16 %v3106_v23, %v3106_v23  ;;  %5186 = vst.msk [vmem:[#allocation5 + $0x50] sm:$0xf] %vm3255_vm15, %v9347_v14  ;;  %3430 = vrot.lane.b32.xlu1 %v9261_v24, %s7914_s16  ;;  %3428 = vrot.lane.b32.xlu0 %v9229_v32, %s7914_s16  ;;  %v4515_v25 = vld [vmem:[#allocation3 + $0x80] sm:$0xff]  ;;  %v4514_v24 = vld [vmem:[#allocation3 + $0x78] sm:$0xff]  ;;  %v9454_v1 = vpack.c.bf16 %v4772_v5, %v4772_v5 }
 0x2bf   : > { %4228 = vst.msk [vmem:[#allocation5 + $0x70] sm:$0xf] %vm3255_vm15, %v7313_v36  ;;  %v9372_v32 = vpack.c.bf16 %v4515_v25, %v4515_v25  ;;  %v9375_v30 = vpack.c.bf16 %v4514_v24, %v4514_v24  ;;  %v4771_v49 = vld [vmem:[#allocation3 + $0x81] sm:$0xff]  ;;  %v4773_v17 = vld [vmem:[#allocation3 + $0x99] sm:$0xff] }
 0x2c0   : > { %3267 = vst.msk [vmem:[#allocation5 + $0x84] sm:$0xf] %vm3255_vm15, %v7187_v42  ;;  %v9452_v40 = vpack.c.bf16 %v4773_v17, %v4773_v17 }
 0x2c2   : > { %4393 = vrot.lane.b32.xlu1 %v9236_v29, %s7914_s16  ;;  %4391 = vrot.lane.b32.xlu0 %v9234_v28, %s7914_s16  ;;  %v7779_v47 = vld [vmem:[#allocation5 + $0x68] ss:$12 sps:$4 sm:$0xff]  }
 0x2c5   : > { %v7778_v48 = vld [vmem:[#allocation5 + $0x50] ss:$12 sps:$4 sm:$0xff]  }
 0x2c6   : > { %3687 = vrot.lane.b32.xlu1 %v9250_v27, %s7915_s13  ;;  %3685 = vrot.lane.b32.xlu0 %v9248_v18, %s7915_s13  ;;  %v4770_v27 = vld [vmem:[#allocation3 + $0x79] sm:$0xff]  ;;  %v9385_v18 = vpack.c.bf16 %v4771_v49, %v4771_v49 }
 0x2c7   : > { %7670 = vmatmul.mubr.msk.bf16.gmra.mxu0 %vm3006_vm13, %v7778_v48  ;;  %v9387_v50 = vpack.c.bf16 %v4770_v27, %v4770_v27 }
 0x2c8   : > { %7673 = vmatprep.mubr.msk.bf16.mxu0 %vm3006_vm13, %v7779_v47 }
 0x2ca   : > { %4650 = vrot.lane.b32.xlu1 %v9372_v32, %s7915_s13  ;;  %4648 = vrot.lane.b32.xlu0 %v9375_v30, %s7915_s13 }
 0x2ce   : > { %3944 = vrot.lane.b32.xlu1 %v9313_v56, %s7916_s8  ;;  %3942 = vrot.lane.b32.xlu0 %v9316_v9, %s7916_s8 }
 0x2d0   : > { %v7643_v54 = vpop.f32.mrf.mxu0 }
 0x2d1   : > { %v2904_v7 = vadd.f32 %v7643_v54, %v9068_v35 }
 0x2d2   : > { %4906 = vrot.lane.b32.xlu1 %v9385_v18, %s7916_s8  ;;  %4904 = vrot.lane.b32.xlu0 %v9387_v50, %s7916_s8  ;;  %v2895_v43 = vpop.f32.mrf.mxu0 }
 0x2d3   : > { %v2988_v55 = vmax.f32 %v2904_v7, 0.0  ;;  %v2896_v57 = vadd.f32 %v9068_v35, %v2895_v43 }
 0x2d4   : > { %v7644_v0 = vpop.f32.mrf.mxu0 }
 0x2d5   : > { %3077 = vst.msk [vmem:[#allocation3 + $0xc1] sm:$0xff] %vm3006_vm13, %v2988_v55  ;;  %v2986_v58 = vmax.f32 %v2896_v57, 0.0  ;;  %v2907_v26 = vadd.f32 %v7644_v0, %v9068_v35 }
 0x2d6   : > { %3434 = vrot.lane.b32.xlu1 %v9246_v41, %s7914_s16  ;;  %3432 = vrot.lane.b32.xlu0 %v9226_v8, %s7914_s16  ;;  %v2898_v59 = vpop.f32.mrf.mxu0  ;;  %v4516_v8 = vld [vmem:[#allocation3 + $0x90] sm:$0xff] }
 0x2d7   : > { %3075 = vst.msk [vmem:[#allocation3 + $0xa9] sm:$0xff] %vm3006_vm13, %v2986_v58  ;;  %v2989_v53 = vmax.f32 %v2907_v26, 0.0  ;;  %v2899_v45 = vadd.f32 %v9068_v35, %v2898_v59  ;;  %v9416_v37 = vpack.c.bf16 %v4516_v8, %v4516_v8 }
 0x2d9   : > { %3078 = vst.msk [vmem:[#allocation3 + $0xc9] sm:$0xff] %vm3006_vm13, %v2989_v53  ;;  %v2987_v41 = vmax.f32 %v2899_v45, 0.0 }
 0x2da   : > { %4397 = vrot.lane.b32.xlu1 %v9349_v20, %s7914_s16  ;;  %4395 = vrot.lane.b32.xlu0 %v9347_v14, %s7914_s16 }
 0x2db   : > { %3076 = vst.msk [vmem:[#allocation3 + $0xb1] sm:$0xff] %vm3006_vm13, %v2987_v41 }
 0x2dc   : > { %v4073_v60 = vld [vmem:[#allocation3 + $0xc1] sm:$0xff] }
 0x2dd   : > { %v7318_v2 = vpack.c.bf16 %v4073_v60, %v4073_v60  ;;  %v3111_v44 = vld [vmem:[#allocation3 + $0xc0] sm:$0xff] }
 0x2de   : > { %3691 = vrot.lane.b32.xlu1 %v9236_v29, %s7915_s13  ;;  %3689 = vrot.lane.b32.xlu0 %v9234_v28, %s7915_s13  ;;  %v4071_v51 = vld [vmem:[#allocation3 + $0xa9] sm:$0xff]  ;;  %v7192_v46 = vpack.c.bf16 %v3111_v44, %v3111_v44 }
 0x2df   : > { %v7316_v52 = vpack.c.bf16 %v4071_v51, %v4071_v51  ;;  %v3109_v62 = vld [vmem:[#allocation3 + $0xa8] sm:$0xff]  ;;  %4233 = vst.msk [vmem:[#allocation5 + $0xac] sm:$0xf] %vm3255_vm15, %v7318_v2 }
 0x2e0   : > { %v5032_v56 = vld [vmem:[#allocation3 + $0xc2] sm:$0xff]  ;;  %v5033_v9 = vld [vmem:[#allocation3 + $0xca] sm:$0xff]  ;;  %v7190_v12 = vpack.c.bf16 %v3109_v62, %v3109_v62  ;;  %3272 = vst.msk [vmem:[#allocation5 + $0xc0] sm:$0xf] %vm3255_vm15, %v7192_v46 }
 0x2e1   : > { %v9419_v29 = vpack.c.bf16 %v5032_v56, %v5032_v56  ;;  %v9421_v4 = vpack.c.bf16 %v5033_v9, %v5033_v9  ;;  %v4777_v28 = vld [vmem:[#allocation3 + $0xc9] sm:$0xff]  ;;  %4231 = vst.msk [vmem:[#allocation5 + $0x94] sm:$0xf] %vm3255_vm15, %v7316_v52 }
 0x2e2   : > { %4654 = vrot.lane.b32.xlu1 %v9413_v3, %s7915_s13  ;;  %v3112_v63 = vld [vmem:[#allocation3 + $0xc8] sm:$0xff]  ;;  %v5031_v21 = vld [vmem:[#allocation3 + $0xb2] sm:$0xff]  ;;  %4652 = vrot.lane.b32.xlu0 %v9416_v37, %s7915_s13  ;;  %v9428_v11 = vpack.c.bf16 %v4777_v28, %v4777_v28  ;;  %3270 = vst.msk [vmem:[#allocation5 + $0xa8] sm:$0xf] %vm3255_vm15, %v7190_v12 }
 0x2e3   : > { %v5030_v61 = vld [vmem:[#allocation3 + $0xaa] sm:$0xff]  ;;  %v7193_v6 = vpack.c.bf16 %v3112_v63, %v3112_v63  ;;  %5192 = vst.msk [vmem:[#allocation5 + $0x98] sm:$0xf] %vm3255_vm15, %v9419_v29  ;;  %5193 = vst.msk [vmem:[#allocation5 + $0xa4] sm:$0xf] %vm3255_vm15, %v9421_v4  ;;  %v9437_v15 = vpack.c.bf16 %v5031_v21, %v5031_v21 }
 0x2e4   : > { %v9435_v31 = vpack.c.bf16 %v5030_v61, %v5030_v61  ;;  %v4072_v10 = vld [vmem:[#allocation3 + $0xb1] sm:$0xff]  ;;  %4234 = vst.msk [vmem:[#allocation5 + $0xb8] sm:$0xf] %vm3255_vm15, %v9428_v11  ;;  %v4774_v58 = vld [vmem:[#allocation3 + $0xa9] sm:$0xff] }
 0x2e5   : > { %v3110_v19 = vld [vmem:[#allocation3 + $0xb0] sm:$0xff]  ;;  %v7317_v34 = vpack.c.bf16 %v4072_v10, %v4072_v10  ;;  %3273 = vst.msk [vmem:[#allocation5 + $0xcc] sm:$0xf] %vm3255_vm15, %v7193_v6  ;;  %5191 = vst.msk [vmem:[#allocation5 + $0x8c] sm:$0xf] %vm3255_vm15, %v9437_v15  ;;  %v9506_v2 = vpack.c.bf16 %v4774_v58, %v4774_v58 }
 0x2e6   : > { %v7191_v33 = vpack.c.bf16 %v3110_v19, %v3110_v19  ;;  %5190 = vst.msk [vmem:[#allocation5 + $0x80] sm:$0xf] %vm3255_vm15, %v9435_v31  ;;  %3948 = vrot.lane.b32.xlu1 %v9372_v32, %s7916_s8  ;;  %3946 = vrot.lane.b32.xlu0 %v9375_v30, %s7916_s8  ;;  %v4519_v24 = vld [vmem:[#allocation3 + $0xb0] sm:$0xff]  ;;  %v4518_v32 = vld [vmem:[#allocation3 + $0xa8] sm:$0xff] }
 0x2e7   : > { %4232 = vst.msk [vmem:[#allocation5 + $0xa0] sm:$0xf] %vm3255_vm15, %v7317_v34  ;;  %v9480_v27 = vpack.c.bf16 %v4519_v24, %v4519_v24  ;;  %v4775_v57 = vld [vmem:[#allocation3 + $0xb1] sm:$0xff] }
 0x2e8   : > { %3271 = vst.msk [vmem:[#allocation5 + $0xb4] sm:$0xf] %vm3255_vm15, %v7191_v33  ;;  %v9500_v39 = vpack.c.bf16 %v4775_v57, %v4775_v57 }
 0x2ea   : > { %4910 = vrot.lane.b32.xlu1 %v9452_v40, %s7916_s8  ;;  %4908 = vrot.lane.b32.xlu0 %v9454_v1, %s7916_s8  ;;  %v7793_v23 = vld [vmem:[#allocation5 + $0x98] ss:$12 sps:$4 sm:$0xff]  }
 0x2eb   : > { %v4382_v16 = vpop.permute.xlu1 %4381 }
 0x2ec   : > { %v4380_v22 = vpop.permute.xlu0 %4379  ;;  %4476 = vst.msk [vmem:[#allocation5 + $0x10] sm:$0xf] %vm3512_vm0, %v4382_v16 }
 0x2ed   : > { %4475 = vst.msk [vmem:[#allocation5 + $0x4] sm:$0xf] %vm3512_vm0, %v4380_v22  ;;  %v7789_v36 = vld [vmem:[#allocation5 + $0x80] ss:$12 sps:$4 sm:$0xff]  }
 0x2ee   : > { %3438 = vrot.lane.b32.xlu1 %v9385_v18, %s7914_s16  ;;  %3436 = vrot.lane.b32.xlu0 %v9387_v50, %s7914_s16  ;;  %v9484_v18 = vpack.c.bf16 %v4518_v32, %v4518_v32 }
 0x2ef   : > { %7674 = vmatmul.mubr.msk.bf16.gmra.mxu0 %vm3006_vm13, %v7789_v36  ;;  %v3676_v42 = vpop.permute.xlu1 %3675 }
 0x2f0   : > { %v3674_v25 = vpop.permute.xlu0 %3673  ;;  %7677 = vmatprep.mubr.msk.bf16.mxu0 %vm3006_vm13, %v7793_v23  ;;  %3771 = vst.msk [vmem:[#allocation5 + $0xc] sm:$0xf] %vm3769_vm1, %v3676_v42 }
 0x2f1   : > { %3770 = vst.msk [vmem:[#allocation5] sm:$0xf] %vm3769_vm1, %v3674_v25 }
 0x2f2   : > { %4401 = vrot.lane.b32.xlu1 %v9334_v38, %s7914_s16  ;;  %4399 = vrot.lane.b32.xlu0 %v9332_v13, %s7914_s16 }
 0x2f3   : > { %v4639_v47 = vpop.permute.xlu1 %4638 }
 0x2f4   : > { %v4637_v48 = vpop.permute.xlu0 %4636  ;;  %4733 = vst.msk [vmem:[#allocation5 + $0x10] sm:$0xf] %vm3769_vm1, %v4639_v47 }
 0x2f5   : > { %4732 = vst.msk [vmem:[#allocation5 + $0x4] sm:$0xf] %vm3769_vm1, %v4637_v48  ;;  %v4521_v48 = vld [vmem:[#allocation3 + $0xc8] sm:$0xff] }
 0x2f6   : > { %3695 = vrot.lane.b32.xlu1 %v9349_v20, %s7915_s13  ;;  %3693 = vrot.lane.b32.xlu0 %v9347_v14, %s7915_s13 }
 0x2f7   : > { %v3933_v30 = vpop.permute.xlu1 %3932 }
 0x2f8   : > { %v3931_v49 = vpop.permute.xlu0 %3930  ;;  %4028 = vst.msk [vmem:[#allocation5 + $0xc] sm:$0xf] %vm4026_vm2, %v3933_v30  ;;  %v7647_v50 = vpop.f32.mrf.mxu0  ;;  %v4520_v30 = vld [vmem:[#allocation3 + $0xc0] sm:$0xff] }
 0x2f9   : > { %4027 = vst.msk [vmem:[#allocation5] sm:$0xf] %vm4026_vm2, %v3931_v49  ;;  %v2920_v20 = vadd.f32 %v7647_v50, %v9068_v35 }
 0x2fa   : > { %4658 = vrot.lane.b32.xlu1 %v9480_v27, %s7915_s13  ;;  %4656 = vrot.lane.b32.xlu0 %v9484_v18, %s7915_s13  ;;  %v2911_v14 = vpop.f32.mrf.mxu0 }
 0x2fb   : > { %v4895_v54 = vpop.permute.xlu1 %4894  ;;  %v2992_v43 = vmax.f32 %v2920_v20, 0.0  ;;  %v2912_v55 = vadd.f32 %v9068_v35, %v2911_v14  ;;  %v9568_v20 = vpack.c.bf16 %v4521_v48, %v4521_v48 }
 0x2fc   : > { %v4893_v7 = vpop.permute.xlu0 %4892  ;;  %4989 = vst.msk [vmem:[#allocation5 + $0x10] sm:$0xf] %vm4026_vm2, %v4895_v54  ;;  %v7648_v0 = vpop.f32.mrf.mxu0 }
 0x2fd   : > { %4988 = vst.msk [vmem:[#allocation5 + $0x4] sm:$0xf] %vm4026_vm2, %v4893_v7  ;;  %v2990_v26 = vmax.f32 %v2912_v55, 0.0  ;;  %v2923_v59 = vadd.f32 %v7648_v0, %v9068_v35 }
 0x2fe   : > { %3952 = vrot.lane.b32.xlu1 %v9413_v3, %s7916_s8  ;;  %3081 = vst.msk [vmem:[#allocation3 + $0xf1] sm:$0xff] %vm3006_vm13, %v2992_v43  ;;  %3950 = vrot.lane.b32.xlu0 %v9416_v37, %s7916_s8  ;;  %v2914_v53 = vpop.f32.mrf.mxu0  ;;  %v4776_v43 = vld [vmem:[#allocation3 + $0xc1] sm:$0xff] }
 0x2ff   : > { %v3423_v45 = vpop.permute.xlu1 %3422  ;;  %3079 = vst.msk [vmem:[#allocation3 + $0xd9] sm:$0xff] %vm3006_vm13, %v2990_v26  ;;  %v2993_v60 = vmax.f32 %v2923_v59, 0.0  ;;  %v2915_v8 = vadd.f32 %v9068_v35, %v2914_v53  ;;  %v9588_v0 = vpack.c.bf16 %v4776_v43, %v4776_v43 }
 0x300   : > { %v3421_v41 = vpop.permute.xlu0 %3420  ;;  %3516 = vst.msk [vmem:[#allocation5 + $0x24] sm:$0xf] %vm3512_vm0, %v3423_v45  ;;  %v7798_v3 = vld [vmem:[#allocation5] ss:$12 sps:$4 sm:$0xff]  }
 0x301   : > { %3515 = vst.msk [vmem:[#allocation5 + $0x18] sm:$0xf] %vm3512_vm0, %v3421_v41  ;;  %v2991_v44 = vmax.f32 %v2915_v8, 0.0  ;;  %v9607_v8 = vld [vmem:[%s10293_s2] ss:$0 sm:$0xff] }
 0x302   : > { %4914 = vrot.lane.b32.xlu1 %v9500_v39, %s7916_s8  ;;  %3082 = vst.msk [vmem:[#allocation3 + $0xf9] sm:$0xff] %vm3006_vm13, %v2993_v60  ;;  %4912 = vrot.lane.b32.xlu0 %v9506_v2, %s7916_s8 }
 0x303   : > { %v4386_v51 = vpop.permute.xlu1 %4385  ;;  %3080 = vst.msk [vmem:[#allocation3 + $0xe1] sm:$0xff] %vm3006_vm13, %v2991_v44 }
 0x304   : > { %v4384_v46 = vpop.permute.xlu0 %4383  ;;  %4478 = vst.msk [vmem:[#allocation5 + $0x28] sm:$0xf] %vm3512_vm0, %v4386_v51  ;;  %v7800_v35 = vld [vmem:[#allocation5 + $0x4] ss:$12 sps:$4 sm:$0xff]  }
 0x305   : > { %4477 = vst.msk [vmem:[#allocation5 + $0x1c] sm:$0xf] %vm3512_vm0, %v4384_v46  ;;  %v4780_v52 = vld [vmem:[#allocation3 + $0xf1] sm:$0xff]  ;;  %5747 = vmatprep.mubr.bf16.mxu1 %v7800_v35 }
 0x306   : > { %3442 = vrot.lane.b32.xlu1 %v9452_v40, %s7914_s16  ;;  %v9518_v62 = vpack.c.bf16 %v4780_v52, %v4780_v52  ;;  %v3115_v56 = vld [vmem:[#allocation3 + $0xf0] sm:$0xff]  ;;  %3440 = vrot.lane.b32.xlu0 %v9454_v1, %s7914_s16  ;;  %v4778_v9 = vld [vmem:[#allocation3 + $0xd9] sm:$0xff] }
 0x307   : > { %v3113_v37 = vld [vmem:[#allocation3 + $0xd8] sm:$0xff]  ;;  %v7196_v12 = vpack.c.bf16 %v3115_v56, %v3115_v56  ;;  %v3680_v28 = vpop.permute.xlu1 %3679  ;;  %5748 = vmatmul.mubr.bf16.vlgmr.msra.gmra.mxu1 %v7798_v3  ;;  %v9522_v61 = vpack.c.bf16 %v4778_v9, %v4778_v9 }
 0x308   : > { %v3678_v63 = vpop.permute.xlu0 %3677  ;;  %v7194_v21 = vpack.c.bf16 %v3113_v37, %v3113_v37  ;;  %4237 = vst.msk [vmem:[#allocation5 + $0xdc] sm:$0xf] %vm3255_vm15, %v9518_v62  ;;  %v4522_v56 = vld [vmem:[#allocation3 + $0xd8] sm:$0xff] }
 0x309   : > { %3773 = vst.msk [vmem:[#allocation5 + $0x24] sm:$0xf] %vm3769_vm1, %v3680_v28  ;;  %3772 = vst.msk [vmem:[#allocation5 + $0x18] sm:$0xf] %vm3769_vm1, %v3678_v63  ;;  %v5036_v6 = vld [vmem:[#allocation3 + $0xf2] sm:$0xff]  ;;  %v5037_v10 = vld [vmem:[#allocation3 + $0xfa] sm:$0xff] }
 0x30a   : > { %3276 = vst.msk [vmem:[#allocation5 + $0xf0] sm:$0xf] %vm3255_vm15, %v7196_v12  ;;  %4405 = vrot.lane.b32.xlu1 %v9437_v15, %s7914_s16  ;;  %v9531_v19 = vpack.c.bf16 %v5036_v6, %v5036_v6  ;;  %v9533_v17 = vpack.c.bf16 %v5037_v10, %v5037_v10  ;;  %v4781_v34 = vld [vmem:[#allocation3 + $0xf9] sm:$0xff]  ;;  %4235 = vst.msk [vmem:[#allocation5 + $0xc4] sm:$0xf] %vm3255_vm15, %v9522_v61  ;;  %4403 = vrot.lane.b32.xlu0 %v9435_v31, %s7914_s16  ;;  %v5035_v40 = vld [vmem:[#allocation3 + $0xe2] sm:$0xff] }
 0x30b   : > { %3274 = vst.msk [vmem:[#allocation5 + $0xd8] sm:$0xf] %vm3255_vm15, %v7194_v21  ;;  %v3116_v33 = vld [vmem:[#allocation3 + $0xf8] sm:$0xff]  ;;  %v9540_v1 = vpack.c.bf16 %v4781_v34, %v4781_v34  ;;  %v9548_v42 = vpack.c.bf16 %v5035_v40, %v5035_v40  ;;  %v4779_v25 = vld [vmem:[#allocation3 + $0xe1] sm:$0xff]  ;;  %v9626_v10 = vpack.c.bf16 %v4522_v56, %v4522_v56 }
 0x30c   : > { %v5034_v5 = vld [vmem:[#allocation3 + $0xda] sm:$0xff]  ;;  %v7197_v16 = vpack.c.bf16 %v3116_v33, %v3116_v33  ;;  %v4643_v22 = vpop.permute.xlu1 %4642  ;;  %v4641_v23 = vpop.permute.xlu0 %4640  ;;  %5196 = vst.msk [vmem:[#allocation5 + $0xc8] sm:$0xf] %vm3255_vm15, %v9531_v19  ;;  %5197 = vst.msk [vmem:[#allocation5 + $0xd4] sm:$0xf] %vm3255_vm15, %v9533_v17  ;;  %v9552_v24 = vpack.c.bf16 %v4779_v25, %v4779_v25 }
 0x30d   : > { %v9546_v36 = vpack.c.bf16 %v5034_v5, %v5034_v5  ;;  %v3114_v47 = vld [vmem:[#allocation3 + $0xe0] sm:$0xff]  ;;  %4735 = vst.msk [vmem:[#allocation5 + $0x28] sm:$0xf] %vm3769_vm1, %v4643_v22  ;;  %4734 = vst.msk [vmem:[#allocation5 + $0x1c] sm:$0xf] %vm3769_vm1, %v4641_v23 }
 0x30e   : > { %v7195_v32 = vpack.c.bf16 %v3114_v47, %v3114_v47  ;;  %4238 = vst.msk [vmem:[#allocation5 + $0xe8] sm:$0xf] %vm3255_vm15, %v9540_v1  ;;  %3277 = vst.msk [vmem:[#allocation5 + $0xfc] sm:$0xf] %vm3255_vm15, %v7197_v16  ;;  %3699 = vrot.lane.b32.xlu1 %v9334_v38, %s7915_s13  ;;  %3697 = vrot.lane.b32.xlu0 %v9332_v13, %s7915_s13  ;;  %v9572_v38 = vpack.c.bf16 %v4520_v30, %v4520_v30  ;;  %v4523_v35 = vld [vmem:[#allocation3 + $0xe0] sm:$0xff] }
 0x30f   : > { %5194 = vst.msk [vmem:[#allocation5 + $0xb0] sm:$0xf] %vm3255_vm15, %v9546_v36  ;;  %5195 = vst.msk [vmem:[#allocation5 + $0xbc] sm:$0xf] %vm3255_vm15, %v9548_v42  ;;  %v9621_v63 = vpack.c.bf16 %v4523_v35, %v4523_v35 }
 0x310   : > { %4236 = vst.msk [vmem:[#allocation5 + $0xd0] sm:$0xf] %vm3255_vm15, %v9552_v24  ;;  %3275 = vst.msk [vmem:[#allocation5 + $0xe4] sm:$0xf] %vm3255_vm15, %v7195_v32  ;;  %v3937_v49 = vpop.permute.xlu1 %3936  ;;  %v3935_v50 = vpop.permute.xlu0 %3934 }
 0x311   : > { %4030 = vst.msk [vmem:[#allocation5 + $0x24] sm:$0xf] %vm4026_vm2, %v3937_v49  ;;  %4029 = vst.msk [vmem:[#allocation5 + $0x18] sm:$0xf] %vm4026_vm2, %v3935_v50 }
 0x312   : > { %4662 = vrot.lane.b32.xlu1 %v9568_v20, %s7915_s13  ;;  %4660 = vrot.lane.b32.xlu0 %v9572_v38, %s7915_s13 }
 0x313   : > { %v7804_v54 = vld [vmem:[#allocation5 + $0xc8] ss:$12 sps:$4 sm:$0xff]  }
 0x314   : > { %v4899_v13 = vpop.permute.xlu1 %4898  ;;  %v4897_v14 = vpop.permute.xlu0 %4896 }
 0x315   : > { %4991 = vst.msk [vmem:[#allocation5 + $0x28] sm:$0xf] %vm4026_vm2, %v4899_v13  ;;  %4990 = vst.msk [vmem:[#allocation5 + $0x1c] sm:$0xf] %vm4026_vm2, %v4897_v14 }
 0x316   : > { %v7803_v7 = vld [vmem:[#allocation5 + $0xb0] ss:$12 sps:$4 sm:$0xff]   ;;  %3956 = vrot.lane.b32.xlu1 %v9480_v27, %s7916_s8  ;;  %3954 = vrot.lane.b32.xlu0 %v9484_v18, %s7916_s8 }
 0x317   : > { %7678 = vmatmul.mubr.msk.bf16.gmra.mxu0 %vm3006_vm13, %v7803_v7 }
 0x318   : > { %v3427_v55 = vpop.permute.xlu1 %3426  ;;  %v3425_v57 = vpop.permute.xlu0 %3424  ;;  %7681 = vmatprep.mubr.msk.bf16.mxu0 %vm3006_vm13, %v7804_v54 }
 0x319   : > { %3518 = vst.msk [vmem:[#allocation5 + $0x3c] sm:$0xf] %vm3512_vm0, %v3427_v55  ;;  %3517 = vst.msk [vmem:[#allocation5 + $0x30] sm:$0xf] %vm3512_vm0, %v3425_v57 }
 0x31a   : > { %4918 = vrot.lane.b32.xlu1 %v9428_v11, %s7916_s8  ;;  %4916 = vrot.lane.b32.xlu0 %v9588_v0, %s7916_s8 }
 0x31c   : > { %v4390_v27 = vpop.permute.xlu1 %4389  ;;  %v4388_v18 = vpop.permute.xlu0 %4387  ;;  %v5216_v58 = vld [vmem:[#allocation5 + $0x18] sm:$0xff]  ;;  %v5218_v26 = vld [vmem:[#allocation5 + $0x24] sm:$0xff] }
 0x31d   : > { %v7801_v59 = vld [vmem:[#allocation5 + $0x1c] ss:$12 sps:$4 sm:$0xff]   ;;  %4480 = vst.msk [vmem:[#allocation5 + $0x40] sm:$0xf] %vm3512_vm0, %v4390_v27  ;;  %4479 = vst.msk [vmem:[#allocation5 + $0x34] sm:$0xf] %vm3512_vm0, %v4388_v18  ;;  %v6803_v53 = vcombine.low %v5216_v58, %v5218_v26 }
 0x31e   : > { %3446 = vrot.lane.b32.xlu1 %v9500_v39, %s7914_s16  ;;  %5755 = vmatprep.mubr.bf16.mxu1 %v7801_v59 }
 0x31f   : > { %3444 = vrot.lane.b32.xlu0 %v9506_v2, %s7914_s16  ;;  %5756 = vmatmul.mubr.bf16.gmra.mxu1 %v6803_v53 }
 0x320   : > { %v3684_v45 = vpop.permute.xlu1 %3683  ;;  %v3682_v41 = vpop.permute.xlu0 %3681 }
 0x321   : > { %3775 = vst.msk [vmem:[#allocation5 + $0x3c] sm:$0xf] %vm3769_vm1, %v3684_v45  ;;  %3774 = vst.msk [vmem:[#allocation5 + $0x30] sm:$0xf] %vm3769_vm1, %v3682_v41  ;;  %v7651_v60 = vpop.f32.mrf.mxu0 }
 0x322   : > { %4409 = vrot.lane.b32.xlu1 %v9421_v4, %s7914_s16  ;;  %v2936_v39 = vadd.f32 %v9607_v8, %v7651_v60 }
 0x323   : > { %4407 = vrot.lane.b32.xlu0 %v9419_v29, %s7914_s16  ;;  %v2927_v2 = vpop.f32.mrf.mxu0 }
 0x324   : > { %v4647_v44 = vpop.permute.xlu1 %4646  ;;  %v2996_v51 = vmax.f32 %v2936_v39, 0.0  ;;  %v2928_v46 = vadd.f32 %v9607_v8, %v2927_v2  ;;  %v4645_v3 = vpop.permute.xlu0 %4644 }
 0x325   : > { %4737 = vst.msk [vmem:[#allocation5 + $0x40] sm:$0xf] %vm3769_vm1, %v4647_v44  ;;  %v7652_v52 = vpop.f32.mrf.mxu0  ;;  %4736 = vst.msk [vmem:[#allocation5 + $0x34] sm:$0xf] %vm3769_vm1, %v4645_v3 }
 0x326   : > { %3703 = vrot.lane.b32.xlu1 %v9437_v15, %s7915_s13  ;;  %3085 = vst.msk [vmem:[#allocation3 + $0x121] sm:$0xff] %vm3006_vm13, %v2996_v51  ;;  %v2994_v9 = vmax.f32 %v2928_v46, 0.0  ;;  %v2939_v37 = vadd.f32 %v9607_v8, %v7652_v52  ;;  %v4525_v51 = vld [vmem:[#allocation3 + $0xf8] sm:$0xff]  ;;  %v4524_v52 = vld [vmem:[#allocation3 + $0xf0] sm:$0xff] }
 0x327   : > { %3701 = vrot.lane.b32.xlu0 %v9435_v31, %s7915_s13  ;;  %v2930_v12 = vpop.f32.mrf.mxu0 }
 0x328   : > { %v3941_v28 = vpop.permute.xlu1 %3940  ;;  %3083 = vst.msk [vmem:[#allocation3 + $0x109] sm:$0xff] %vm3006_vm13, %v2994_v9  ;;  %v2997_v21 = vmax.f32 %v2939_v37, 0.0  ;;  %v2931_v6 = vadd.f32 %v9607_v8, %v2930_v12  ;;  %v3939_v15 = vpop.permute.xlu0 %3938  ;;  %v9702_v9 = vpack.c.bf16 %v4525_v51, %v4525_v51  ;;  %v9706_v12 = vpack.c.bf16 %v4524_v52, %v4524_v52 }
 0x329   : > { %4032 = vst.msk [vmem:[#allocation5 + $0x3c] sm:$0xf] %vm4026_vm2, %v3941_v28  ;;  %4031 = vst.msk [vmem:[#allocation5 + $0x30] sm:$0xf] %vm4026_vm2, %v3939_v15 }
 0x32a   : > { %4666 = vrot.lane.b32.xlu1 %v9621_v63, %s7915_s13  ;;  %3086 = vst.msk [vmem:[#allocation3 + $0x129] sm:$0xff] %vm3006_vm13, %v2997_v21  ;;  %v2995_v31 = vmax.f32 %v2931_v6, 0.0 }
 0x32b   : > { %4664 = vrot.lane.b32.xlu0 %v9626_v10, %s7915_s13 }
 0x32c   : > { %v4903_v34 = vpop.permute.xlu1 %4902  ;;  %3084 = vst.msk [vmem:[#allocation3 + $0x111] sm:$0xff] %vm3006_vm13, %v2995_v31  ;;  %v4901_v33 = vpop.permute.xlu0 %4900 }
 0x32d   : > { %4993 = vst.msk [vmem:[#allocation5 + $0x40] sm:$0xf] %vm4026_vm2, %v4903_v34  ;;  %v4784_v5 = vld [vmem:[#allocation3 + $0x121] sm:$0xff]  ;;  %4992 = vst.msk [vmem:[#allocation5 + $0x34] sm:$0xf] %vm4026_vm2, %v4901_v33 }
 0x32e   : > { %v3119_v40 = vld [vmem:[#allocation3 + $0x120] sm:$0xff]  ;;  %3960 = vrot.lane.b32.xlu1 %v9568_v20, %s7916_s8  ;;  %v9639_v16 = vpack.c.bf16 %v4784_v5, %v4784_v5 }
 0x32f   : > { %v7200_v22 = vpack.c.bf16 %v3119_v40, %v3119_v40  ;;  %3958 = vrot.lane.b32.xlu0 %v9572_v38, %s7916_s8  ;;  %v4782_v23 = vld [vmem:[#allocation3 + $0x109] sm:$0xff] }
 0x330   : > { %v3117_v25 = vld [vmem:[#allocation3 + $0x108] sm:$0xff]  ;;  %v3431_v47 = vpop.permute.xlu1 %3430  ;;  %v9643_v48 = vpack.c.bf16 %v4782_v23, %v4782_v23  ;;  %4241 = vst.msk [vmem:[#allocation5 + $0x10c] sm:$0xf] %vm3255_vm15, %v9639_v16  ;;  %v3429_v30 = vpop.permute.xlu0 %3428 }
 0x331   : > { %v7198_v32 = vpack.c.bf16 %v3117_v25, %v3117_v25  ;;  %3280 = vst.msk [vmem:[#allocation5 + $0x120] sm:$0xf] %vm3255_vm15, %v7200_v22  ;;  %v5040_v49 = vld [vmem:[#allocation3 + $0x122] sm:$0xff]  ;;  %v5041_v50 = vld [vmem:[#allocation3 + $0x12a] sm:$0xff] }
 0x332   : > { %3520 = vst.msk [vmem:[#allocation5 + $0x54] sm:$0xf] %vm3512_vm0, %v3431_v47  ;;  %3519 = vst.msk [vmem:[#allocation5 + $0x48] sm:$0xf] %vm3512_vm0, %v3429_v30  ;;  %4922 = vrot.lane.b32.xlu1 %v9552_v24, %s7916_s8  ;;  %v9652_v20 = vpack.c.bf16 %v5040_v49, %v5040_v49  ;;  %v9654_v38 = vpack.c.bf16 %v5041_v50, %v5041_v50  ;;  %v4785_v13 = vld [vmem:[#allocation3 + $0x129] sm:$0xff] }
 0x333   : > { %4239 = vst.msk [vmem:[#allocation5 + $0xf4] sm:$0xf] %vm3255_vm15, %v9643_v48  ;;  %3278 = vst.msk [vmem:[#allocation5 + $0x108] sm:$0xf] %vm3255_vm15, %v7198_v32  ;;  %v3120_v14 = vld [vmem:[#allocation3 + $0x128] sm:$0xff]  ;;  %4920 = vrot.lane.b32.xlu0 %v9522_v61, %s7916_s8  ;;  %v5039_v7 = vld [vmem:[#allocation3 + $0x112] sm:$0xff]  ;;  %v9661_v43 = vpack.c.bf16 %v4785_v13, %v4785_v13 }
 0x334   : > { %v5038_v54 = vld [vmem:[#allocation3 + $0x10a] sm:$0xff]  ;;  %v7201_v55 = vpack.c.bf16 %v3120_v14, %v3120_v14  ;;  %v4394_v57 = vpop.permute.xlu1 %4393  ;;  %5200 = vst.msk [vmem:[#allocation5 + $0xf8] sm:$0xf] %vm3255_vm15, %v9652_v20  ;;  %5201 = vst.msk [vmem:[#allocation5 + $0x104] sm:$0xf] %vm3255_vm15, %v9654_v38  ;;  %v9669_v58 = vpack.c.bf16 %v5039_v7, %v5039_v7  ;;  %v4392_v53 = vpop.permute.xlu0 %4391  ;;  %v5220_v45 = vld [vmem:[#allocation5 + $0x30] sm:$0xff] }
 0x335   : > { %v5222_v27 = vld [vmem:[#allocation5 + $0x3c] sm:$0xff]  ;;  %v9667_v18 = vpack.c.bf16 %v5038_v54, %v5038_v54  ;;  %4482 = vst.msk [vmem:[#allocation5 + $0x58] sm:$0xf] %vm3512_vm0, %v4394_v57  ;;  %4481 = vst.msk [vmem:[#allocation5 + $0x4c] sm:$0xf] %vm3512_vm0, %v4392_v53 }
 0x336   : > { %v4783_v26 = vld [vmem:[#allocation3 + $0x111] sm:$0xff]  ;;  %4242 = vst.msk [vmem:[#allocation5 + $0x118] sm:$0xf] %vm3255_vm15, %v9661_v43  ;;  %3281 = vst.msk [vmem:[#allocation5 + $0x12c] sm:$0xf] %vm3255_vm15, %v7201_v55  ;;  %3450 = vrot.lane.b32.xlu1 %v9428_v11, %s7914_s16  ;;  %v6806_v2 = vcombine.low %v5220_v45, %v5222_v27  ;;  %v4526_v27 = vld [vmem:[#allocation3 + $0x108] sm:$0xff] }
 0x337   : > { %v3118_v59 = vld [vmem:[#allocation3 + $0x110] sm:$0xff]  ;;  %v9672_v60 = vpack.c.bf16 %v4783_v26, %v4783_v26  ;;  %5198 = vst.msk [vmem:[#allocation5 + $0xe0] sm:$0xf] %vm3255_vm15, %v9667_v18  ;;  %5199 = vst.msk [vmem:[#allocation5 + $0xec] sm:$0xf] %vm3255_vm15, %v9669_v58  ;;  %3448 = vrot.lane.b32.xlu0 %v9588_v0, %s7914_s16 }
 0x338   : > { %v7805_v41 = vld [vmem:[#allocation5 + $0x34] ss:$12 sps:$4 sm:$0xff]   ;;  %v7199_v39 = vpack.c.bf16 %v3118_v59, %v3118_v59  ;;  %v3688_v44 = vpop.permute.xlu1 %3687  ;;  %v3686_v11 = vpop.permute.xlu0 %3685 }
 0x339   : > { %5763 = vmatprep.mubr.bf16.mxu1 %v7805_v41  ;;  %4240 = vst.msk [vmem:[#allocation5 + $0x100] sm:$0xf] %vm3255_vm15, %v9672_v60  ;;  %v4527_v7 = vld [vmem:[#allocation3 + $0x110] sm:$0xff] }
 0x33a   : > { %3279 = vst.msk [vmem:[#allocation5 + $0x114] sm:$0xf] %vm3255_vm15, %v7199_v39  ;;  %5764 = vmatmul.mubr.bf16.gmra.mxu1 %v6806_v2  ;;  %4413 = vrot.lane.b32.xlu1 %v9548_v42, %s7914_s16  ;;  %v9755_v39 = vpack.c.bf16 %v4527_v7, %v4527_v7 }
 0x33b   : > { %3777 = vst.msk [vmem:[#allocation5 + $0x54] sm:$0xf] %vm3769_vm1, %v3688_v44  ;;  %3776 = vst.msk [vmem:[#allocation5 + $0x48] sm:$0xf] %vm3769_vm1, %v3686_v11  ;;  %4411 = vrot.lane.b32.xlu0 %v9546_v36, %s7914_s16  ;;  %v7810_v46 = vld [vmem:[#allocation5 + $0xf8] ss:$12 sps:$4 sm:$0xff]   ;;  %v9766_v11 = vpack.c.bf16 %v4526_v27, %v4526_v27 }
 0x33c   : > { %v4651_v0 = vpop.permute.xlu1 %4650  ;;  %v4649_v3 = vpop.permute.xlu0 %4648 }
 0x33d   : > { %4739 = vst.msk [vmem:[#allocation5 + $0x58] sm:$0xf] %vm3769_vm1, %v4651_v0  ;;  %4738 = vst.msk [vmem:[#allocation5 + $0x4c] sm:$0xf] %vm3769_vm1, %v4649_v3 }
 0x33e   : > { %v7809_v35 = vld [vmem:[#allocation5 + $0xe0] ss:$12 sps:$4 sm:$0xff]   ;;  %3707 = vrot.lane.b32.xlu1 %v9421_v4, %s7915_s13 }
 0x33f   : > { %3705 = vrot.lane.b32.xlu0 %v9419_v29, %s7915_s13  ;;  %7682 = vmatmul.mubr.msk.bf16.gmra.mxu0 %vm3006_vm13, %v7809_v35 }
 0x340   : > { %v3945_v56 = vpop.permute.xlu1 %3944  ;;  %7685 = vmatprep.mubr.msk.bf16.mxu0 %vm3006_vm13, %v7810_v46  ;;  %v3943_v37 = vpop.permute.xlu0 %3942 }
 0x341   : > { %4034 = vst.msk [vmem:[#allocation5 + $0x54] sm:$0xf] %vm4026_vm2, %v3945_v56  ;;  %4033 = vst.msk [vmem:[#allocation5 + $0x48] sm:$0xf] %vm4026_vm2, %v3943_v37 }
 0x342   : > { %4670 = vrot.lane.b32.xlu1 %v9702_v9, %s7915_s13 }
 0x343   : > { %4668 = vrot.lane.b32.xlu0 %v9706_v12, %s7915_s13 }
 0x344   : > { %v4907_v29 = vpop.permute.xlu1 %4906  ;;  %v4905_v4 = vpop.permute.xlu0 %4904 }
 0x345   : > { %4995 = vst.msk [vmem:[#allocation5 + $0x58] sm:$0xf] %vm4026_vm2, %v4907_v29  ;;  %4994 = vst.msk [vmem:[#allocation5 + $0x4c] sm:$0xf] %vm4026_vm2, %v4905_v4 }
 0x346   : > { %3964 = vrot.lane.b32.xlu1 %v9621_v63, %s7916_s8 }
 0x347   : > { %3962 = vrot.lane.b32.xlu0 %v9626_v10, %s7916_s8 }
 0x348   : > { %v3435_v28 = vpop.permute.xlu1 %3434  ;;  %v3433_v21 = vpop.permute.xlu0 %3432 }
 0x349   : > { %3522 = vst.msk [vmem:[#allocation5 + $0x6c] sm:$0xf] %vm3512_vm0, %v3435_v28  ;;  %v7655_v6 = vpop.f32.mrf.mxu0  ;;  %3521 = vst.msk [vmem:[#allocation5 + $0x60] sm:$0xf] %vm3512_vm0, %v3433_v21 }
 0x34a   : > { %4926 = vrot.lane.b32.xlu1 %v9540_v1, %s7916_s8  ;;  %v2952_v15 = vadd.f32 %v9607_v8, %v7655_v6 }
 0x34b   : > { %4924 = vrot.lane.b32.xlu0 %v9518_v62, %s7916_s8  ;;  %v2943_v31 = vpop.f32.mrf.mxu0 }
 0x34c   : > { %v4398_v63 = vpop.permute.xlu1 %4397  ;;  %v5226_v34 = vld [vmem:[#allocation5 + $0x54] sm:$0xff]  ;;  %v3000_v33 = vmax.f32 %v2952_v15, 0.0  ;;  %v2944_v10 = vadd.f32 %v9607_v8, %v2943_v31  ;;  %v4396_v5 = vpop.permute.xlu0 %4395  ;;  %v5224_v40 = vld [vmem:[#allocation5 + $0x48] sm:$0xff] }
 0x34d   : > { %4484 = vst.msk [vmem:[#allocation5 + $0x70] sm:$0xf] %vm3512_vm0, %v4398_v63  ;;  %v7807_v22 = vld [vmem:[#allocation5 + $0x4c] ss:$12 sps:$4 sm:$0xff]   ;;  %v7656_v23 = vpop.f32.mrf.mxu0  ;;  %4483 = vst.msk [vmem:[#allocation5 + $0x64] sm:$0xf] %vm3512_vm0, %v4396_v5  ;;  %v6809_v25 = vcombine.low %v5224_v40, %v5226_v34 }
 0x34e   : > { %3454 = vrot.lane.b32.xlu1 %v9552_v24, %s7914_s16  ;;  %3089 = vst.msk [vmem:[#allocation3 + $0x151] sm:$0xff] %vm3006_vm13, %v3000_v33  ;;  %v2998_v47 = vmax.f32 %v2944_v10, 0.0  ;;  %v2955_v32 = vadd.f32 %v9607_v8, %v7656_v23  ;;  %5771 = vmatprep.mubr.bf16.mxu1 %v7807_v22 }
 0x34f   : > { %3452 = vrot.lane.b32.xlu0 %v9522_v61, %s7914_s16  ;;  %v2946_v30 = vpop.f32.mrf.mxu0  ;;  %5772 = vmatmul.mubr.bf16.gmra.mxu1 %v6809_v25 }
 0x350   : > { %v3692_v49 = vpop.permute.xlu1 %3691  ;;  %3087 = vst.msk [vmem:[#allocation3 + $0x139] sm:$0xff] %vm3006_vm13, %v2998_v47  ;;  %v3001_v50 = vmax.f32 %v2955_v32, 0.0  ;;  %v2947_v13 = vadd.f32 %v9607_v8, %v2946_v30  ;;  %v3690_v24 = vpop.permute.xlu0 %3689 }
 0x351   : > { %3779 = vst.msk [vmem:[#allocation5 + $0x6c] sm:$0xf] %vm3769_vm1, %v3692_v49  ;;  %3778 = vst.msk [vmem:[#allocation5 + $0x60] sm:$0xf] %vm3769_vm1, %v3690_v24  ;;  %v4529_v49 = vld [vmem:[#allocation3 + $0x128] sm:$0xff] }
 0x352   : > { %4417 = vrot.lane.b32.xlu1 %v9533_v17, %s7914_s16  ;;  %3090 = vst.msk [vmem:[#allocation3 + $0x159] sm:$0xff] %vm3006_vm13, %v3001_v50  ;;  %v2999_v61 = vmax.f32 %v2947_v13, 0.0  ;;  %v4528_v50 = vld [vmem:[#allocation3 + $0x120] sm:$0xff]  ;;  %v9841_v24 = vpack.c.bf16 %v4529_v49, %v4529_v49 }
 0x353   : > { %4415 = vrot.lane.b32.xlu0 %v9531_v19, %s7914_s16 }
 0x354   : > { %v4655_v14 = vpop.permute.xlu1 %4654  ;;  %3088 = vst.msk [vmem:[#allocation3 + $0x141] sm:$0xff] %vm3006_vm13, %v2999_v61  ;;  %v4653_v54 = vpop.permute.xlu0 %4652 }
 0x355   : > { %4741 = vst.msk [vmem:[#allocation5 + $0x70] sm:$0xf] %vm3769_vm1, %v4655_v14  ;;  %v4532_v55 = vld [vmem:[#allocation3 + $0x150] sm:$0xff]  ;;  %4740 = vst.msk [vmem:[#allocation5 + $0x64] sm:$0xf] %vm3769_vm1, %v4653_v54  ;;  %v9844_v54 = vpack.c.bf16 %v4528_v50, %v4528_v50 }
 0x356   : > { %v4788_v57 = vld [vmem:[#allocation3 + $0x151] sm:$0xff]  ;;  %3711 = vrot.lane.b32.xlu1 %v9548_v42, %s7915_s13  ;;  %v9749_v26 = vpack.c.bf16 %v4532_v55, %v4532_v55 }
 0x357   : > { %v9751_v59 = vpack.c.bf16 %v4788_v57, %v4788_v57  ;;  %3709 = vrot.lane.b32.xlu0 %v9546_v36, %s7915_s13  ;;  %v4530_v53 = vld [vmem:[#allocation3 + $0x138] sm:$0xff] }
 0x358   : > { %v4786_v45 = vld [vmem:[#allocation3 + $0x139] sm:$0xff]  ;;  %v3949_v41 = vpop.permute.xlu1 %3948  ;;  %v9757_v2 = vpack.c.bf16 %v4530_v53, %v4530_v53  ;;  %3284 = vst.msk [vmem:[#allocation5 + $0x150] sm:$0xf] %vm3255_vm15, %v9749_v26  ;;  %v3947_v42 = vpop.permute.xlu0 %3946 }
 0x359   : > { %v9759_v44 = vpack.c.bf16 %v4786_v45, %v4786_v45  ;;  %4245 = vst.msk [vmem:[#allocation5 + $0x13c] sm:$0xf] %vm3255_vm15, %v9751_v59  ;;  %v5044_v36 = vld [vmem:[#allocation3 + $0x152] sm:$0xff]  ;;  %v5045_v0 = vld [vmem:[#allocation3 + $0x15a] sm:$0xff] }
 0x35a   : > { %4036 = vst.msk [vmem:[#allocation5 + $0x6c] sm:$0xf] %vm4026_vm2, %v3949_v41  ;;  %v4533_v51 = vld [vmem:[#allocation3 + $0x158] sm:$0xff]  ;;  %4035 = vst.msk [vmem:[#allocation5 + $0x60] sm:$0xf] %vm4026_vm2, %v3947_v42  ;;  %4674 = vrot.lane.b32.xlu1 %v9755_v39, %s7915_s13  ;;  %v9771_v46 = vpack.c.bf16 %v5044_v36, %v5044_v36  ;;  %v9773_v3 = vpack.c.bf16 %v5045_v0, %v5045_v0 }
 0x35b   : > { %v9775_v35 = vpack.c.bf16 %v4533_v51, %v4533_v51  ;;  %v4789_v52 = vld [vmem:[#allocation3 + $0x159] sm:$0xff]  ;;  %4243 = vst.msk [vmem:[#allocation5 + $0x124] sm:$0xf] %vm3255_vm15, %v9759_v44  ;;  %3282 = vst.msk [vmem:[#allocation5 + $0x138] sm:$0xf] %vm3255_vm15, %v9757_v2  ;;  %4672 = vrot.lane.b32.xlu0 %v9766_v11, %s7915_s13  ;;  %v5043_v37 = vld [vmem:[#allocation3 + $0x142] sm:$0xff] }
 0x35c   : > { %v5042_v56 = vld [vmem:[#allocation3 + $0x13a] sm:$0xff]  ;;  %v9783_v4 = vpack.c.bf16 %v4789_v52, %v4789_v52  ;;  %v4911_v28 = vpop.permute.xlu1 %4910  ;;  %5204 = vst.msk [vmem:[#allocation5 + $0x128] sm:$0xf] %vm3255_vm15, %v9771_v46  ;;  %5205 = vst.msk [vmem:[#allocation5 + $0x134] sm:$0xf] %vm3255_vm15, %v9773_v3  ;;  %v9791_v6 = vpack.c.bf16 %v5043_v37, %v5043_v37  ;;  %v4909_v63 = vpop.permute.xlu0 %4908 }
 0x35d   : > { %v4531_v29 = vld [vmem:[#allocation3 + $0x140] sm:$0xff]  ;;  %v9789_v21 = vpack.c.bf16 %v5042_v56, %v5042_v56  ;;  %3285 = vst.msk [vmem:[#allocation5 + $0x15c] sm:$0xf] %vm3255_vm15, %v9775_v35 }
 0x35e   : > { %v9793_v15 = vpack.c.bf16 %v4531_v29, %v4531_v29  ;;  %v4787_v31 = vld [vmem:[#allocation3 + $0x141] sm:$0xff]  ;;  %4997 = vst.msk [vmem:[#allocation5 + $0x70] sm:$0xf] %vm4026_vm2, %v4911_v28  ;;  %4996 = vst.msk [vmem:[#allocation5 + $0x64] sm:$0xf] %vm4026_vm2, %v4909_v63  ;;  %3968 = vrot.lane.b32.xlu1 %v9702_v9, %s7916_s8 }
 0x35f   : > { %v9798_v34 = vpack.c.bf16 %v4787_v31, %v4787_v31  ;;  %4246 = vst.msk [vmem:[#allocation5 + $0x148] sm:$0xf] %vm3255_vm15, %v9783_v4  ;;  %5202 = vst.msk [vmem:[#allocation5 + $0x110] sm:$0xf] %vm3255_vm15, %v9789_v21  ;;  %3966 = vrot.lane.b32.xlu0 %v9706_v12, %s7916_s8 }
 0x360   : > { %5203 = vst.msk [vmem:[#allocation5 + $0x11c] sm:$0xf] %vm3255_vm15, %v9791_v6  ;;  %3283 = vst.msk [vmem:[#allocation5 + $0x144] sm:$0xf] %vm3255_vm15, %v9793_v15  ;;  %v3439_v33 = vpop.permute.xlu1 %3438  ;;  %v3437_v10 = vpop.permute.xlu0 %3436 }
 0x361   : > { %4244 = vst.msk [vmem:[#allocation5 + $0x130] sm:$0xf] %vm3255_vm15, %v9798_v34 }
 0x362   : > { %3524 = vst.msk [vmem:[#allocation5 + $0x84] sm:$0xf] %vm3512_vm0, %v3439_v33  ;;  %3523 = vst.msk [vmem:[#allocation5 + $0x78] sm:$0xf] %vm3512_vm0, %v3437_v10  ;;  %4930 = vrot.lane.b32.xlu1 %v9672_v60, %s7916_s8 }
 0x363   : > { %4928 = vrot.lane.b32.xlu0 %v9643_v48, %s7916_s8  ;;  %v7816_v40 = vld [vmem:[#allocation5 + $0x128] ss:$12 sps:$4 sm:$0xff]  }
 0x364   : > { %v4402_v9 = vpop.permute.xlu1 %4401  ;;  %v4400_v12 = vpop.permute.xlu0 %4399 }
 0x365   : > { %v5230_v5 = vld [vmem:[#allocation5 + $0x6c] sm:$0xff]  ;;  %4486 = vst.msk [vmem:[#allocation5 + $0x88] sm:$0xf] %vm3512_vm0, %v4402_v9  ;;  %v5228_v22 = vld [vmem:[#allocation5 + $0x60] sm:$0xff]  ;;  %4485 = vst.msk [vmem:[#allocation5 + $0x7c] sm:$0xf] %vm3512_vm0, %v4400_v12 }
 0x366   : > { %v7811_v23 = vld [vmem:[#allocation5 + $0x64] ss:$12 sps:$4 sm:$0xff]   ;;  %3458 = vrot.lane.b32.xlu1 %v9540_v1, %s7914_s16  ;;  %v6812_v25 = vcombine.low %v5228_v22, %v5230_v5 }
 0x367   : > { %v7815_v47 = vld [vmem:[#allocation5 + $0x110] ss:$12 sps:$4 sm:$0xff]   ;;  %3456 = vrot.lane.b32.xlu0 %v9518_v62, %s7914_s16  ;;  %5779 = vmatprep.mubr.bf16.mxu1 %v7811_v23 }
 0x368   : > { %v3696_v32 = vpop.permute.xlu1 %3695  ;;  %5780 = vmatmul.mubr.bf16.gmra.mxu1 %v6812_v25  ;;  %7686 = vmatmul.mubr.msk.bf16.gmra.mxu0 %vm3006_vm13, %v7815_v47  ;;  %v3694_v30 = vpop.permute.xlu0 %3693 }
 0x369   : > { %3781 = vst.msk [vmem:[#allocation5 + $0x84] sm:$0xf] %vm3769_vm1, %v3696_v32  ;;  %7689 = vmatprep.mubr.msk.bf16.mxu0 %vm3006_vm13, %v7816_v40  ;;  %3780 = vst.msk [vmem:[#allocation5 + $0x78] sm:$0xf] %vm3769_vm1, %v3694_v30 }
 0x36a   : > { %4421 = vrot.lane.b32.xlu1 %v9669_v58, %s7914_s16 }
 0x36b   : > { %4419 = vrot.lane.b32.xlu0 %v9667_v18, %s7914_s16 }
 0x36c   : > { %v4659_v1 = vpop.permute.xlu1 %4658  ;;  %v4657_v62 = vpop.permute.xlu0 %4656 }
 0x36d   : > { %4743 = vst.msk [vmem:[#allocation5 + $0x88] sm:$0xf] %vm3769_vm1, %v4659_v1  ;;  %4742 = vst.msk [vmem:[#allocation5 + $0x7c] sm:$0xf] %vm3769_vm1, %v4657_v62 }
 0x36e   : > { %3715 = vrot.lane.b32.xlu1 %v9533_v17, %s7915_s13 }
 0x36f   : > { %3713 = vrot.lane.b32.xlu0 %v9531_v19, %s7915_s13 }
 0x370   : > { %v3953_v13 = vpop.permute.xlu1 %3952  ;;  %v3951_v61 = vpop.permute.xlu0 %3950 }
 0x371   : > { %4038 = vst.msk [vmem:[#allocation5 + $0x84] sm:$0xf] %vm4026_vm2, %v3953_v13  ;;  %v7659_v14 = vpop.f32.mrf.mxu0  ;;  %4037 = vst.msk [vmem:[#allocation5 + $0x78] sm:$0xf] %vm4026_vm2, %v3951_v61 }
 0x372   : > { %v2968_v7 = vadd.f32 %v9607_v8, %v7659_v14  ;;  %4678 = vrot.lane.b32.xlu1 %v9841_v24, %s7915_s13 }
 0x373   : > { %4676 = vrot.lane.b32.xlu0 %v9844_v54, %s7915_s13  ;;  %v2959_v19 = vpop.f32.mrf.mxu0 }
 0x374   : > { %v3004_v17 = vmax.f32 %v2968_v7, 0.0  ;;  %v2960_v55 = vadd.f32 %v9607_v8, %v2959_v19  ;;  %v4915_v57 = vpop.permute.xlu1 %4914  ;;  %v4913_v27 = vpop.permute.xlu0 %4912 }
 0x375   : > { %4999 = vst.msk [vmem:[#allocation5 + $0x88] sm:$0xf] %vm4026_vm2, %v4915_v57  ;;  %v7660_v53 = vpop.f32.mrf.mxu0  ;;  %4998 = vst.msk [vmem:[#allocation5 + $0x7c] sm:$0xf] %vm4026_vm2, %v4913_v27 }
 0x376   : > { %3093 = vst.msk [vmem:[#allocation3 + $0x181] sm:$0xff] %vm3006_vm13, %v3004_v17  ;;  %v3002_v45 = vmax.f32 %v2960_v55, 0.0  ;;  %v2971_v41 = vadd.f32 %v9607_v8, %v7660_v53  ;;  %3972 = vrot.lane.b32.xlu1 %v9755_v39, %s7916_s8 }
 0x377   : > { %3970 = vrot.lane.b32.xlu0 %v9766_v11, %s7916_s8  ;;  %v2962_v42 = vpop.f32.mrf.mxu0 }
 0x378   : > { %3091 = vst.msk [vmem:[#allocation3 + $0x169] sm:$0xff] %vm3006_vm13, %v3002_v45  ;;  %v3005_v36 = vmax.f32 %v2971_v41, 0.0  ;;  %v2963_v0 = vadd.f32 %v9607_v8, %v2962_v42  ;;  %v3443_v51 = vpop.permute.xlu1 %3442  ;;  %v3441_v52 = vpop.permute.xlu0 %3440 }
 0x379   : > { %3526 = vst.msk [vmem:[#allocation5 + $0x9c] sm:$0xf] %vm3512_vm0, %v3443_v51  ;;  %3525 = vst.msk [vmem:[#allocation5 + $0x90] sm:$0xf] %vm3512_vm0, %v3441_v52 }
 0x37a   : > { %3094 = vst.msk [vmem:[#allocation3 + $0x189] sm:$0xff] %vm3006_vm13, %v3005_v36  ;;  %v3003_v56 = vmax.f32 %v2963_v0, 0.0  ;;  %4934 = vrot.lane.b32.xlu1 %v9661_v43, %s7916_s8 }
 0x37b   : > { %4932 = vrot.lane.b32.xlu0 %v9639_v16, %s7916_s8 }
 0x37c   : > { %3092 = vst.msk [vmem:[#allocation3 + $0x171] sm:$0xff] %vm3006_vm13, %v3003_v56  ;;  %v4406_v39 = vpop.permute.xlu1 %4405  ;;  %v5234_v11 = vld [vmem:[#allocation5 + $0x84] sm:$0xff]  ;;  %v4404_v8 = vpop.permute.xlu0 %4403  ;;  %v5232_v37 = vld [vmem:[#allocation5 + $0x78] sm:$0xff] }
 0x37d   : > { %4488 = vst.msk [vmem:[#allocation5 + $0xa0] sm:$0xf] %vm3512_vm0, %v4406_v39  ;;  %v7813_v29 = vld [vmem:[#allocation5 + $0x7c] ss:$12 sps:$4 sm:$0xff]   ;;  %4487 = vst.msk [vmem:[#allocation5 + $0x94] sm:$0xf] %vm3512_vm0, %v4404_v8  ;;  %v6815_v28 = vcombine.low %v5232_v37, %v5234_v11 }
 0x37e   : > { %3462 = vrot.lane.b32.xlu1 %v9672_v60, %s7914_s16  ;;  %v4792_v31 = vld [vmem:[#allocation3 + $0x181] sm:$0xff]  ;;  %5787 = vmatprep.mubr.bf16.mxu1 %v7813_v29 }
 0x37f   : > { %3460 = vrot.lane.b32.xlu0 %v9643_v48, %s7914_s16  ;;  %v4534_v63 = vld [vmem:[#allocation3 + $0x168] sm:$0xff]  ;;  %v9877_v10 = vpack.c.bf16 %v4792_v31, %v4792_v31  ;;  %5788 = vmatmul.mubr.bf16.gmra.mxu1 %v6815_v28 }
 0x380   : > { %v4790_v33 = vld [vmem:[#allocation3 + $0x169] sm:$0xff]  ;;  %v3700_v9 = vpop.permute.xlu1 %3699  ;;  %v9879_v5 = vpack.c.bf16 %v4534_v63, %v4534_v63  ;;  %v3698_v60 = vpop.permute.xlu0 %3697 }
 0x381   : > { %v9881_v40 = vpack.c.bf16 %v4790_v33, %v4790_v33  ;;  %v5048_v12 = vld [vmem:[#allocation3 + $0x182] sm:$0xff]  ;;  %v5049_v22 = vld [vmem:[#allocation3 + $0x18a] sm:$0xff]  ;;  %3783 = vst.msk [vmem:[#allocation5 + $0x9c] sm:$0xf] %vm3769_vm1, %v3700_v9  ;;  %3782 = vst.msk [vmem:[#allocation5 + $0x90] sm:$0xf] %vm3769_vm1, %v3698_v60 }
 0x382   : > { %4249 = vst.msk [vmem:[#allocation5 + $0x16c] sm:$0xf] %vm3255_vm15, %v9877_v10  ;;  %v9886_v48 = vpack.c.bf16 %v5048_v12, %v5048_v12  ;;  %v9888_v23 = vpack.c.bf16 %v5049_v22, %v5049_v22  ;;  %4425 = vrot.lane.b32.xlu1 %v9654_v38, %s7914_s16  ;;  %v4793_v25 = vld [vmem:[#allocation3 + $0x189] sm:$0xff]  ;;  %3286 = vst.msk [vmem:[#allocation5 + $0x168] sm:$0xf] %vm3255_vm15, %v9879_v5 }
 0x383   : > { %4247 = vst.msk [vmem:[#allocation5 + $0x154] sm:$0xf] %vm3255_vm15, %v9881_v40  ;;  %v5046_v47 = vld [vmem:[#allocation3 + $0x16a] sm:$0xff]  ;;  %v5047_v32 = vld [vmem:[#allocation3 + $0x172] sm:$0xff]  ;;  %4423 = vrot.lane.b32.xlu0 %v9652_v20, %s7914_s16  ;;  %v9899_v1 = vpack.c.bf16 %v4793_v25, %v4793_v25 }
 0x384   : > { %v4535_v30 = vld [vmem:[#allocation3 + $0x170] sm:$0xff]  ;;  %5208 = vst.msk [vmem:[#allocation5 + $0x158] sm:$0xf] %vm3255_vm15, %v9886_v48  ;;  %5209 = vst.msk [vmem:[#allocation5 + $0x164] sm:$0xf] %vm3255_vm15, %v9888_v23  ;;  %v9905_v62 = vpack.c.bf16 %v5046_v47, %v5046_v47  ;;  %v9907_v49 = vpack.c.bf16 %v5047_v32, %v5047_v32  ;;  %v4663_v50 = vpop.permute.xlu1 %4662  ;;  %v4661_v14 = vpop.permute.xlu0 %4660 }
 0x385   : > { %v9909_v13 = vpack.c.bf16 %v4535_v30, %v4535_v30  ;;  %v4791_v61 = vld [vmem:[#allocation3 + $0x171] sm:$0xff]  ;;  %4745 = vst.msk [vmem:[#allocation5 + $0xa0] sm:$0xf] %vm3769_vm1, %v4663_v50  ;;  %4744 = vst.msk [vmem:[#allocation5 + $0x94] sm:$0xf] %vm3769_vm1, %v4661_v14  ;;  %v10022_v32 = vpop.f32.mrf.mxu0 }
 0x386   : > { %v9912_v7 = vpack.c.bf16 %v4791_v61, %v4791_v61  ;;  %4250 = vst.msk [vmem:[#allocation5 + $0x178] sm:$0xf] %vm3255_vm15, %v9899_v1  ;;  %5206 = vst.msk [vmem:[#allocation5 + $0x140] sm:$0xf] %vm3255_vm15, %v9905_v62  ;;  %3719 = vrot.lane.b32.xlu1 %v9669_v58, %s7915_s13 }
 0x387   : > { %5207 = vst.msk [vmem:[#allocation5 + $0x14c] sm:$0xf] %vm3255_vm15, %v9907_v49  ;;  %3287 = vst.msk [vmem:[#allocation5 + $0x174] sm:$0xf] %vm3255_vm15, %v9909_v13  ;;  %3717 = vrot.lane.b32.xlu0 %v9667_v18, %s7915_s13 }
 0x388   : > { %4248 = vst.msk [vmem:[#allocation5 + $0x160] sm:$0xf] %vm3255_vm15, %v9912_v7  ;;  %v3957_v19 = vpop.permute.xlu1 %3956  ;;  %v3955_v17 = vpop.permute.xlu0 %3954 }
 0x389   : > { %4040 = vst.msk [vmem:[#allocation5 + $0x9c] sm:$0xf] %vm4026_vm2, %v3957_v19  ;;  %4039 = vst.msk [vmem:[#allocation5 + $0x90] sm:$0xf] %vm4026_vm2, %v3955_v17  ;;  %v5910_v19 = vpop.f32.mrf.mxu0 }
 0x38a   : > { %4682 = vrot.lane.b32.xlu1 %v9793_v15, %s7915_s13 }
 0x38b   : > { %4680 = vrot.lane.b32.xlu0 %v9757_v2, %s7915_s13  ;;  %v7822_v55 = vld [vmem:[#allocation5 + $0x158] ss:$12 sps:$4 sm:$0xff]  }
 0x38c   : > { %v4919_v58 = vpop.permute.xlu1 %4918  ;;  %v4917_v18 = vpop.permute.xlu0 %4916 }
 0x38d   : > { %5001 = vst.msk [vmem:[#allocation5 + $0xa0] sm:$0xf] %vm4026_vm2, %v4919_v58  ;;  %5000 = vst.msk [vmem:[#allocation5 + $0x94] sm:$0xf] %vm4026_vm2, %v4917_v18 }
 0x38e   : > { %v7821_v57 = vld [vmem:[#allocation5 + $0x140] ss:$12 sps:$4 sm:$0xff]   ;;  %3976 = vrot.lane.b32.xlu1 %v9841_v24, %s7916_s8 }
 0x38f   : > { %3974 = vrot.lane.b32.xlu0 %v9844_v54, %s7916_s8  ;;  %7690 = vmatmul.mubr.msk.bf16.gmra.mxu0 %vm3006_vm13, %v7821_v57 }
 0x390   : > { %v3447_v27 = vpop.permute.xlu1 %3446  ;;  %7693 = vmatprep.mubr.msk.bf16.mxu0 %vm3006_vm13, %v7822_v55 }
 0x391   : > { %3528 = vst.msk [vmem:[#allocation5 + $0xb4] sm:$0xf] %vm3512_vm0, %v3447_v27  ;;  %v3445_v53 = vpop.permute.xlu0 %3444  ;;  %v4537_v27 = vld [vmem:[#allocation3 + $0x188] sm:$0xff] }
 0x392   : > { %3527 = vst.msk [vmem:[#allocation5 + $0xa8] sm:$0xf] %vm3512_vm0, %v3445_v53  ;;  %4938 = vrot.lane.b32.xlu1 %v9798_v34, %s7916_s8  ;;  %v4536_v53 = vld [vmem:[#allocation3 + $0x180] sm:$0xff] }
 0x393   : > { %4936 = vrot.lane.b32.xlu0 %v9759_v44, %s7916_s8 }
 0x394   : > { %v4410_v24 = vpop.permute.xlu1 %4409  ;;  %v5238_v45 = vld [vmem:[#allocation5 + $0x9c] sm:$0xff]  ;;  %v5236_v41 = vld [vmem:[#allocation5 + $0x90] sm:$0xff] }
 0x395   : > { %4490 = vst.msk [vmem:[#allocation5 + $0xb8] sm:$0xf] %vm3512_vm0, %v4410_v24  ;;  %v4408_v54 = vpop.permute.xlu0 %4407  ;;  %v7817_v42 = vld [vmem:[#allocation5 + $0x94] ss:$12 sps:$4 sm:$0xff]   ;;  %v6818_v36 = vcombine.low %v5236_v41, %v5238_v45  ;;  %v10045_v24 = vpop.f32.mrf.mxu0 }
 0x396   : > { %4489 = vst.msk [vmem:[#allocation5 + $0xac] sm:$0xf] %vm3512_vm0, %v4408_v54  ;;  %3466 = vrot.lane.b32.xlu1 %v9661_v43, %s7914_s16  ;;  %5795 = vmatprep.mubr.bf16.mxu1 %v7817_v42 }
 0x397   : > { %3464 = vrot.lane.b32.xlu0 %v9639_v16, %s7914_s16  ;;  %5796 = vmatmul.mubr.bf16.gmra.mxu1 %v6818_v36  ;;  %v10052_v36 = vpack.c.bf16 %v4537_v27, %v4537_v27 }
 0x398   : > { %v3704_v0 = vpop.permute.xlu1 %3703 }
 0x399   : > { %3785 = vst.msk [vmem:[#allocation5 + $0xb4] sm:$0xf] %vm3769_vm1, %v3704_v0  ;;  %v3702_v51 = vpop.permute.xlu0 %3701  ;;  %v10054_v0 = vpack.c.bf16 %v4536_v53, %v4536_v53 }
 0x39a   : > { %3784 = vst.msk [vmem:[#allocation5 + $0xa8] sm:$0xf] %vm3769_vm1, %v3702_v51  ;;  %4429 = vrot.lane.b32.xlu1 %v9791_v6, %s7914_s16  ;;  %v5050_v51 = vld [vmem:[#allocation3 + $0x19a] sm:$0xff] }
 0x39b   : > { %4427 = vrot.lane.b32.xlu0 %v9789_v21, %s7914_s16 }
 0x39c   : > { %v4667_v52 = vpop.permute.xlu1 %4666 }
 0x39d   : > { %4747 = vst.msk [vmem:[#allocation5 + $0xb8] sm:$0xf] %vm3769_vm1, %v4667_v52  ;;  %v4665_v43 = vpop.permute.xlu0 %4664  ;;  %v5051_v52 = vld [vmem:[#allocation3 + $0x1a2] sm:$0xff] }
 0x39e   : > { %4746 = vst.msk [vmem:[#allocation5 + $0xac] sm:$0xf] %vm3769_vm1, %v4665_v43  ;;  %3723 = vrot.lane.b32.xlu1 %v9654_v38, %s7915_s13 }
 0x39f   : > { %3721 = vrot.lane.b32.xlu0 %v9652_v20, %s7915_s13 }
 0x3a0   : > { %v3961_v16 = vpop.permute.xlu1 %3960 }
 0x3a1   : > { %4042 = vst.msk [vmem:[#allocation5 + $0xb4] sm:$0xf] %vm4026_vm2, %v3961_v16  ;;  %v3959_v56 = vpop.permute.xlu0 %3958 }
 0x3a2   : > { %4041 = vst.msk [vmem:[#allocation5 + $0xa8] sm:$0xf] %vm4026_vm2, %v3959_v56  ;;  %4686 = vrot.lane.b32.xlu1 %v9775_v35, %s7915_s13 }
 0x3a3   : > { %4684 = vrot.lane.b32.xlu0 %v9749_v26, %s7915_s13 }
 0x3a4   : > { %v4923_v39 = vpop.permute.xlu1 %4922 }
 0x3a5   : > { %5003 = vst.msk [vmem:[#allocation5 + $0xb8] sm:$0xf] %vm4026_vm2, %v4923_v39  ;;  %v4921_v11 = vpop.permute.xlu0 %4920  ;;  %v7463_v39 = vpack.c.bf16 %v5051_v52, %v5051_v52 }
 0x3a6   : > { %5002 = vst.msk [vmem:[#allocation5 + $0xac] sm:$0xf] %vm4026_vm2, %v4921_v11  ;;  %3980 = vrot.lane.b32.xlu1 %v9793_v15, %s7916_s8  ;;  %v5913_v11 = vpop.f32.mrf.mxu0 }
 0x3a7   : > { %3978 = vrot.lane.b32.xlu0 %v9757_v2, %s7916_s8  ;;  %5211 = vst.msk [vmem:[#allocation5 + $0x17c] sm:$0xf] %vm3255_vm15, %v7463_v39 }
 0x3a8   : > { %v3451_v20 = vpop.permute.xlu1 %3450 }
 0x3a9   : > { %3530 = vst.msk [vmem:[#allocation5 + $0xcc] sm:$0xf] %vm3512_vm0, %v3451_v20  ;;  %v3449_v38 = vpop.permute.xlu0 %3448 }
 0x3aa   : > { %3529 = vst.msk [vmem:[#allocation5 + $0xc0] sm:$0xf] %vm3512_vm0, %v3449_v38  ;;  %4942 = vrot.lane.b32.xlu1 %v9783_v4, %s7916_s8 }
 0x3ab   : > { %4940 = vrot.lane.b32.xlu0 %v9751_v59, %s7916_s8 }
 0x3ac   : > { %v4414_v8 = vpop.permute.xlu1 %4413  ;;  %v5242_v37 = vld [vmem:[#allocation5 + $0xb4] sm:$0xff] }
 0x3ad   : > { %4492 = vst.msk [vmem:[#allocation5 + $0xd0] sm:$0xf] %vm3512_vm0, %v4414_v8  ;;  %v4412_v15 = vpop.permute.xlu0 %4411  ;;  %v5240_v29 = vld [vmem:[#allocation5 + $0xa8] sm:$0xff] }
 0x3ae   : > { %v7819_v28 = vld [vmem:[#allocation5 + $0xac] ss:$12 sps:$4 sm:$0xff]   ;;  %4491 = vst.msk [vmem:[#allocation5 + $0xc4] sm:$0xf] %vm3512_vm0, %v4412_v15  ;;  %3470 = vrot.lane.b32.xlu1 %v9798_v34, %s7914_s16  ;;  %v6821_v2 = vcombine.low %v5240_v29, %v5242_v37 }
 0x3af   : > { %3468 = vrot.lane.b32.xlu0 %v9759_v44, %s7914_s16  ;;  %5803 = vmatprep.mubr.bf16.mxu1 %v7819_v28 }
 0x3b0   : > { %v3708_v31 = vpop.permute.xlu1 %3707  ;;  %5804 = vmatmul.mubr.bf16.gmra.mxu1 %v6821_v2 }
 0x3b1   : > { %3787 = vst.msk [vmem:[#allocation5 + $0xcc] sm:$0xf] %vm3769_vm1, %v3708_v31  ;;  %v3706_v63 = vpop.permute.xlu0 %3705 }
 0x3b2   : > { %3786 = vst.msk [vmem:[#allocation5 + $0xc0] sm:$0xf] %vm3769_vm1, %v3706_v63  ;;  %4433 = vrot.lane.b32.xlu1 %v9773_v3, %s7914_s16 }
 0x3b3   : > { %4431 = vrot.lane.b32.xlu0 %v9771_v46, %s7914_s16 }
 0x3b4   : > { %v4671_v33 = vpop.permute.xlu1 %4670 }
 0x3b5   : > { %4749 = vst.msk [vmem:[#allocation5 + $0xd0] sm:$0xf] %vm3769_vm1, %v4671_v33  ;;  %v4669_v34 = vpop.permute.xlu0 %4668 }
 0x3b6   : > { %4748 = vst.msk [vmem:[#allocation5 + $0xc4] sm:$0xf] %vm3769_vm1, %v4669_v34  ;;  %3727 = vrot.lane.b32.xlu1 %v9791_v6, %s7915_s13 }
 0x3b7   : > { %3725 = vrot.lane.b32.xlu0 %v9789_v21, %s7915_s13 }
 0x3b8   : > { %v3965_v44 = vpop.permute.xlu1 %3964 }
 0x3b9   : > { %4044 = vst.msk [vmem:[#allocation5 + $0xcc] sm:$0xf] %vm4026_vm2, %v3965_v44  ;;  %v3963_v9 = vpop.permute.xlu0 %3962 }
 0x3ba   : > { %4043 = vst.msk [vmem:[#allocation5 + $0xc0] sm:$0xf] %vm4026_vm2, %v3963_v9  ;;  %4690 = vrot.lane.b32.xlu1 %v9909_v13, %s7915_s13  ;;  %v4539_v9 = vld [vmem:[#allocation3 + $0x1a0] sm:$0xff] }
 0x3bb   : > { %4688 = vrot.lane.b32.xlu0 %v9879_v5, %s7915_s13 }
 0x3bc   : > { %v4927_v12 = vpop.permute.xlu1 %4926 }
 0x3bd   : > { %5005 = vst.msk [vmem:[#allocation5 + $0xd0] sm:$0xf] %vm4026_vm2, %v4927_v12  ;;  %v4925_v22 = vpop.permute.xlu0 %4924 }
 0x3be   : > { %5004 = vst.msk [vmem:[#allocation5 + $0xc4] sm:$0xf] %vm4026_vm2, %v4925_v22  ;;  %3984 = vrot.lane.b32.xlu1 %v9775_v35, %s7916_s8  ;;  %v4538_v22 = vld [vmem:[#allocation3 + $0x198] sm:$0xff] }
 0x3bf   : > { %3982 = vrot.lane.b32.xlu0 %v9749_v26, %s7916_s8 }
 0x3c0   : > { %v3455_v21 = vpop.permute.xlu1 %3454 }
 0x3c1   : > { %3532 = vst.msk [vmem:[#allocation5 + $0xe4] sm:$0xf] %vm3512_vm0, %v3455_v21  ;;  %v3453_v6 = vpop.permute.xlu0 %3452 }
 0x3c2   : > { %3531 = vst.msk [vmem:[#allocation5 + $0xd8] sm:$0xf] %vm3512_vm0, %v3453_v6  ;;  %4946 = vrot.lane.b32.xlu1 %v9912_v7, %s7916_s8 }
 0x3c3   : > { %4944 = vrot.lane.b32.xlu0 %v9881_v40, %s7916_s8 }
 0x3c4   : > { %v4418_v60 = vpop.permute.xlu1 %4417  ;;  %v5246_v25 = vld [vmem:[#allocation5 + $0xcc] sm:$0xff] }
 0x3c5   : > { %4494 = vst.msk [vmem:[#allocation5 + $0xe8] sm:$0xf] %vm3512_vm0, %v4418_v60  ;;  %v4416_v35 = vpop.permute.xlu0 %4415  ;;  %v5244_v47 = vld [vmem:[#allocation5 + $0xc0] sm:$0xff] }
 0x3c6   : > { %v7823_v26 = vld [vmem:[#allocation5 + $0xc4] ss:$12 sps:$4 sm:$0xff]   ;;  %4493 = vst.msk [vmem:[#allocation5 + $0xdc] sm:$0xf] %vm3512_vm0, %v4416_v35  ;;  %3474 = vrot.lane.b32.xlu1 %v9783_v4, %s7914_s16  ;;  %v6824_v30 = vcombine.low %v5244_v47, %v5246_v25  ;;  %v10037_v4 = vld [vmem:[%s10295_s4] ss:$0 sm:$0xff]  ;;  %v7398_v25 = vpack.c.bf16 %v4538_v22, %v4538_v22 }
 0x3c7   : > { %3472 = vrot.lane.b32.xlu0 %v9751_v59, %s7914_s16  ;;  %5811 = vmatprep.mubr.bf16.mxu1 %v7823_v26  ;;  %v7503_v61 = vpop.f32.mrf.mxu1 }
 0x3c8   : > { %v3712_v50 = vpop.permute.xlu1 %3711  ;;  %5812 = vmatmul.mubr.bf16.gmra.mxu1 %v6824_v30 }
 0x3c9   : > { %3789 = vst.msk [vmem:[#allocation5 + $0xe4] sm:$0xf] %vm3769_vm1, %v3712_v50  ;;  %v3710_v14 = vpop.permute.xlu0 %3709  ;;  %v7504_v59 = vpop.f32.mrf.mxu1 }
 0x3ca   : > { %3788 = vst.msk [vmem:[#allocation5 + $0xd8] sm:$0xf] %vm3769_vm1, %v3710_v14  ;;  %4437 = vrot.lane.b32.xlu1 %v9907_v49, %s7914_s16  ;;  %v7505_v17 = vadd.f32 %v7504_v59, %v7503_v61  ;;  %v4794_v61 = vld [vmem:[#allocation3 + $0x199] sm:$0xff] }
 0x3cb   : > { %4435 = vrot.lane.b32.xlu0 %v9905_v62, %s7914_s16  ;;  %v7506_v55 = vpop.f32.mrf.mxu1  ;;  %v7430_v59 = vpack.c.bf16 %v4794_v61, %v4794_v61 }
 0x3cc   : > { %v4675_v58 = vpop.permute.xlu1 %4674  ;;  %v5750_v18 = vadd.f32 %v7505_v17, %v10037_v4 }
 0x3cd   : > { %4751 = vst.msk [vmem:[#allocation5 + $0xe8] sm:$0xf] %vm3769_vm1, %v4675_v58  ;;  %v4673_v57 = vpop.permute.xlu0 %4672  ;;  %v7507_v45 = vpop.f32.mrf.mxu1 }
 0x3ce   : > { %4750 = vst.msk [vmem:[#allocation5 + $0xdc] sm:$0xf] %vm3769_vm1, %v4673_v57  ;;  %3731 = vrot.lane.b32.xlu1 %v9773_v3, %s7915_s13  ;;  %v5911_v54 = vadd.f32 %v5910_v19, %v5750_v18  ;;  %v7508_v41 = vadd.f32 %v7507_v45, %v7506_v55  ;;  %v7462_v3 = vpack.c.bf16 %v5050_v51, %v5050_v51 }
 0x3cf   : > { %3729 = vrot.lane.b32.xlu0 %v9771_v46, %s7915_s13 }
 0x3d0   : > { %v3969_v42 = vpop.permute.xlu1 %3968  ;;  %v6037_v43 = vmax.f32 %v5911_v54, 0.0  ;;  %v5753_v16 = vadd.f32 %v7508_v41, %v10037_v4  ;;  %5210 = vst.msk [vmem:[#allocation5 + $0x170] sm:$0xf] %vm3255_vm15, %v7462_v3 }
 0x3d1   : > { %4046 = vst.msk [vmem:[#allocation5 + $0xe4] sm:$0xf] %vm4026_vm2, %v3969_v42  ;;  %v3967_v56 = vpop.permute.xlu0 %3966 }
 0x3d2   : > { %4045 = vst.msk [vmem:[#allocation5 + $0xd8] sm:$0xf] %vm4026_vm2, %v3967_v56  ;;  %4694 = vrot.lane.b32.xlu1 %v10052_v36, %s7915_s13  ;;  %6069 = vst [vmem:[%s10061_s17] sm:$0xff] %v6037_v43  ;;  %v5914_v46 = vadd.f32 %v5913_v11, %v5753_v16 }
 0x3d3   : > { %4692 = vrot.lane.b32.xlu0 %v10054_v0, %s7915_s13 }
 0x3d4   : > { %v4931_v20 = vpop.permute.xlu1 %4930  ;;  %v6038_v38 = vmax.f32 %v5914_v46, 0.0 }
 0x3d5   : > { %5007 = vst.msk [vmem:[#allocation5 + $0xe8] sm:$0xf] %vm4026_vm2, %v4931_v20  ;;  %v4929_v8 = vpop.permute.xlu0 %4928 }
 0x3d6   : > { %5006 = vst.msk [vmem:[#allocation5 + $0xdc] sm:$0xf] %vm4026_vm2, %v4929_v8  ;;  %3988 = vrot.lane.b32.xlu1 %v9909_v13, %s7916_s8  ;;  %6070 = vst [vmem:[%s10061_s17 + $0x8] sm:$0xff] %v6038_v38 }
 0x3d7   : > { %3986 = vrot.lane.b32.xlu0 %v9879_v5, %s7916_s8  ;;  %v7837_v29 = vld [vmem:[#allocation5 + $0x170] ss:$12 sps:$4 sm:$0xff]  }
 0x3d8   : > { %v3459_v37 = vpop.permute.xlu1 %3458  ;;  %7694 = vmatmul.mubr.msk.bf16.gmra.mxu0 %vm3006_vm13, %v7837_v29 }
 0x3d9   : > { %3534 = vst.msk [vmem:[#allocation5 + $0xfc] sm:$0xf] %vm3512_vm0, %v3459_v37  ;;  %v3457_v15 = vpop.permute.xlu0 %3456 }
 0x3da   : > { %3533 = vst.msk [vmem:[#allocation5 + $0xf0] sm:$0xf] %vm3512_vm0, %v3457_v15  ;;  %4950 = vrot.lane.b32.xlu1 %v9899_v1, %s7916_s8 }
 0x3db   : > { %4948 = vrot.lane.b32.xlu0 %v9877_v10, %s7916_s8 }
 0x3dc   : > { %v4422_v28 = vpop.permute.xlu1 %4421  ;;  %v5250_v2 = vld [vmem:[#allocation5 + $0xe4] sm:$0xff] }
 0x3dd   : > { %4496 = vst.msk [vmem:[#allocation5 + $0x100] sm:$0xf] %vm3512_vm0, %v4422_v28  ;;  %v4420_v5 = vpop.permute.xlu0 %4419  ;;  %v5248_v13 = vld [vmem:[#allocation5 + $0xd8] sm:$0xff] }
 0x3de   : > { %v7825_v31 = vld [vmem:[#allocation5 + $0xdc] ss:$12 sps:$4 sm:$0xff]   ;;  %4495 = vst.msk [vmem:[#allocation5 + $0xf4] sm:$0xf] %vm3512_vm0, %v4420_v5  ;;  %3478 = vrot.lane.b32.xlu1 %v9912_v7, %s7914_s16  ;;  %v6827_v63 = vcombine.low %v5248_v13, %v5250_v2 }
 0x3df   : > { %3476 = vrot.lane.b32.xlu0 %v9881_v40, %s7914_s16  ;;  %5819 = vmatprep.mubr.bf16.mxu1 %v7825_v31  ;;  %v7509_v10 = vpop.f32.mrf.mxu1 }
 0x3e0   : > { %v3716_v1 = vpop.permute.xlu1 %3715  ;;  %5820 = vmatmul.mubr.bf16.gmra.mxu1 %v6827_v63 }
 0x3e1   : > { %3791 = vst.msk [vmem:[#allocation5 + $0xfc] sm:$0xf] %vm3769_vm1, %v3716_v1  ;;  %v3714_v33 = vpop.permute.xlu0 %3713  ;;  %v7510_v34 = vpop.f32.mrf.mxu1 }
 0x3e2   : > { %3790 = vst.msk [vmem:[#allocation5 + $0xf0] sm:$0xf] %vm3769_vm1, %v3714_v33  ;;  %4441 = vrot.lane.b32.xlu1 %v9888_v23, %s7914_s16  ;;  %v7511_v44 = vadd.f32 %v7510_v34, %v7509_v10 }
 0x3e3   : > { %4439 = vrot.lane.b32.xlu0 %v9886_v48, %s7914_s16  ;;  %v7512_v7 = vpop.f32.mrf.mxu1  ;;  %v7399_v48 = vpack.c.bf16 %v4539_v9, %v4539_v9  ;;  %s7464_s16 = sshll.u32 %s7971_s22, 12  ;;  %s7917_s22 = smov [#allocation6]  }
 0x3e4   : > { %v5758_v40 = vadd.f32 %v7511_v44, %v10037_v4  ;;  %v4679_v12 = vpop.permute.xlu1 %4678  ;;  %s10244_s26 = scalar_lea.hbm %s10296_s5, %s7464_s16  ;;  %s7846_s7 = sshll.u32 %s7917_s22, 4  ;;  %s7847_s7 = int_to_ptr.vmem [resolvable:$false] %s7846_s7 }
 0x3e5   : > { %4753 = vst.msk [vmem:[#allocation5 + $0x100] sm:$0xf] %vm3769_vm1, %v4679_v12  ;;  %v4677_v21 = vpop.permute.xlu0 %4676  ;;  %v7513_v6 = vpop.f32.mrf.mxu1 }
 0x3e6   : > { %v5919_v60 = vadd.f32 %v10022_v32, %v5758_v40  ;;  %4752 = vst.msk [vmem:[#allocation5 + $0xf4] sm:$0xf] %vm3769_vm1, %v4677_v21  ;;  %3735 = vrot.lane.b32.xlu1 %v9907_v49, %s7915_s13  ;;  %v7514_v23 = vadd.f32 %v7513_v6, %v7512_v7  ;;  %v4795_v49 = vld [vmem:[#allocation3 + $0x1a1] sm:$0xff] }
 0x3e7   : > { %3733 = vrot.lane.b32.xlu0 %v9905_v62, %s7915_s13  ;;  %v7431_v19 = vpack.c.bf16 %v4795_v49, %v4795_v49 }
 0x3e8   : > { %v6039_v35 = vmax.f32 %v5919_v60, 0.0  ;;  %v5761_v47 = vadd.f32 %v7514_v23, %v10037_v4  ;;  %v3973_v26 = vpop.permute.xlu1 %3972 }
 0x3e9   : > { %4048 = vst.msk [vmem:[#allocation5 + $0xfc] sm:$0xf] %vm4026_vm2, %v3973_v26  ;;  %v3971_v30 = vpop.permute.xlu0 %3970 }
 0x3ea   : > { %6071 = vst [vmem:[%s10061_s17 + $0x10] sm:$0xff] %v6039_v35  ;;  %v5922_v32 = vadd.f32 %v10045_v24, %v5761_v47  ;;  %4047 = vst.msk [vmem:[#allocation5 + $0xf0] sm:$0xf] %vm4026_vm2, %v3971_v30  ;;  %4698 = vrot.lane.b32.xlu1 %v7399_v48, %s7915_s13  ;;  %v10121_v24 = vpop.f32.mrf.mxu0 }
 0x3eb   : > { %4696 = vrot.lane.b32.xlu0 %v7398_v25, %s7915_s13  ;;  %s6115_s13 = sshll.u32 %s10061_s17, 4  ;;  %s10246_s13 = int_to_ptr.vmem [resolvable:$true] %s6115_s13 }
 0x3ec   : > { %v6040_v62 = vmax.f32 %v5922_v32, 0.0  ;;  %v4935_v50 = vpop.permute.xlu1 %4934  ;;  %s7842_s6 = scalar_lea.vmem %s10246_s13, 4096  ;;  %p7849_p0 = scmp.lt.s32.totalorder %s10246_s13, %s7847_s7 }
 0x3ed   : > { %5009 = vst.msk [vmem:[#allocation5 + $0x100] sm:$0xf] %vm4026_vm2, %v4935_v50  ;;  %v4933_v14 = vpop.permute.xlu0 %4932  ;;  %p7843_p11 = scmp.ne.s32.totalorder %s10246_s13, %s7842_s6 }
 0x3ee   : > { %6072 = vst [vmem:[%s10061_s17 + $0x18] sm:$0xff] %v6040_v62  ;;  %5008 = vst.msk [vmem:[#allocation5 + $0xf4] sm:$0xf] %vm4026_vm2, %v4933_v14  ;;  %3992 = vrot.lane.b32.xlu1 %v10052_v36, %s7916_s8  ;;  %v5926_v36 = vpop.f32.mrf.mxu0 }
 0x3ef   : > { %3990 = vrot.lane.b32.xlu0 %v10054_v0, %s7916_s8  ;;  %p7844_p12 = pnand %p7843_p11, %p7988_p5 }
 0x3f0   : > { %v3463_v17 = vpop.permute.xlu1 %3462  ;;  %v7672_v3 = vpop.f32.mrf.mxu0 }
 0x3f1   : > { %3536 = vst.msk [vmem:[#allocation5 + $0x114] sm:$0xf] %vm3512_vm0, %v3463_v17  ;;  %v3461_v58 = vpop.permute.xlu0 %3460  ;;  %p7845_p13 = pneg %p7844_p12 }
 0x3f2   : > { %3535 = vst.msk [vmem:[#allocation5 + $0x108] sm:$0xf] %vm3512_vm0, %v3461_v58  ;;  %4954 = vrot.lane.b32.xlu1 %v7431_v19, %s7916_s8  ;;  %v5929_v15 = vpop.f32.mrf.mxu0 }
 0x3f3   : > { %4952 = vrot.lane.b32.xlu0 %v7430_v59, %s7916_s8  ;;  %s7848_s8 = scalar_lea.vmem %s7847_s7, 8192 }
 0x3f4   : > { %v4426_v55 = vpop.permute.xlu1 %4425  ;;  %v5254_v18 = vld [vmem:[#allocation5 + $0xfc] sm:$0xff]  ;;  %p7850_p1 = scmp.lt.s32.totalorder %s7848_s8, %s7842_s6 }
 0x3f5   : > { %4498 = vst.msk [vmem:[#allocation5 + $0x118] sm:$0xf] %vm3512_vm0, %v4426_v55  ;;  %v4424_v57 = vpop.permute.xlu0 %4423  ;;  %v5252_v27 = vld [vmem:[#allocation5 + $0xf0] sm:$0xff] }
 0x3f6   : > { %v7827_v53 = vld [vmem:[#allocation5 + $0xf4] ss:$12 sps:$4 sm:$0xff]   ;;  %4497 = vst.msk [vmem:[#allocation5 + $0x10c] sm:$0xf] %vm3512_vm0, %v4424_v57  ;;  %v6830_v45 = vcombine.low %v5252_v27, %v5254_v18  ;;  %v10156_v57 = vpop.f32.mrf.mxu0  ;;  %p7851_p2 = por %p7850_p1, %p7849_p0 }
 0x3f7   : > { %5827 = vmatprep.mubr.bf16.mxu1 %v7827_v53 }
 0x3f8   : > { %v3720_v54 = vpop.permute.xlu1 %3719  ;;  %5828 = vmatmul.mubr.bf16.gmra.mxu1 %v6830_v45  ;;  %p7852_p3 = pnand %p7851_p2, %p7845_p13 }
 0x3f9   : > { %3793 = vst.msk [vmem:[#allocation5 + $0x114] sm:$0xf] %vm3769_vm1, %v3720_v54  ;;  %v3718_v42 = vpop.permute.xlu0 %3717  ;;  %v5942_v54 = vpop.f32.mrf.mxu0 }
 0x3fa   : > { %v7515_v41 = vpop.f32.mrf.mxu1  ;;  %3792 = vst.msk [vmem:[#allocation5 + $0x108] sm:$0xf] %vm3769_vm1, %v3718_v42 }
 0x3fc   : > { %v7516_v0 = vpop.f32.mrf.mxu1  ;;  %v4683_v52 = vpop.permute.xlu1 %4682 }
 0x3fd   : > { %v7517_v51 = vadd.f32 %v7516_v0, %v7515_v41  ;;  %4755 = vst.msk [vmem:[#allocation5 + $0x118] sm:$0xf] %vm3769_vm1, %v4683_v52  ;;  %v4681_v56 = vpop.permute.xlu0 %4680 }
 0x3fe   : > { %v7518_v43 = vpop.f32.mrf.mxu1  ;;  %4754 = vst.msk [vmem:[#allocation5 + $0x10c] sm:$0xf] %vm3769_vm1, %v4681_v56 }
 0x3ff   : > { %v5766_v16 = vadd.f32 %v7517_v51, %v10037_v4 }
 0x400   : > { %v7519_v39 = vpop.f32.mrf.mxu1  ;;  %v3977_v20 = vpop.permute.xlu1 %3976 }
 0x401   : > { %v5927_v11 = vadd.f32 %v5926_v36, %v5766_v16  ;;  %v7520_v46 = vadd.f32 %v7519_v39, %v7518_v43  ;;  %4050 = vst.msk [vmem:[#allocation5 + $0x114] sm:$0xf] %vm4026_vm2, %v3977_v20  ;;  %v3975_v37 = vpop.permute.xlu0 %3974  ;;  %v7676_v43 = vpop.f32.mrf.mxu0 }
 0x402   : > { %4049 = vst.msk [vmem:[#allocation5 + $0x108] sm:$0xf] %vm4026_vm2, %v3975_v37 }
 0x403   : > { %v6041_v38 = vmax.f32 %v5927_v11, 0.0  ;;  %v5769_v8 = vadd.f32 %v7520_v46, %v10037_v4 }
 0x404   : > { %v4939_v28 = vpop.permute.xlu1 %4938 }
 0x405   : > { %6073 = vst [vmem:[%s10061_s17 + $0x20] sm:$0xff] %v6041_v38  ;;  %v5930_v29 = vadd.f32 %v5929_v15, %v5769_v8  ;;  %5011 = vst.msk [vmem:[#allocation5 + $0x118] sm:$0xf] %vm4026_vm2, %v4939_v28  ;;  %v4937_v5 = vpop.permute.xlu0 %4936  ;;  %v5945_v38 = vpop.f32.mrf.mxu0 }
 0x406   : > { %5010 = vst.msk [vmem:[#allocation5 + $0x10c] sm:$0xf] %vm4026_vm2, %v4937_v5 }
 0x407   : > { %v6042_v2 = vmax.f32 %v5930_v29, 0.0 }
 0x408   : > { %v3467_v13 = vpop.permute.xlu1 %3466 }
 0x409   : > { %6074 = vst [vmem:[%s10061_s17 + $0x28] sm:$0xff] %v6042_v2  ;;  %3538 = vst.msk [vmem:[#allocation5 + $0x12c] sm:$0xf] %vm3512_vm0, %v3467_v13  ;;  %v3465_v31 = vpop.permute.xlu0 %3464 }
 0x40a   : > { %3537 = vst.msk [vmem:[#allocation5 + $0x120] sm:$0xf] %vm3512_vm0, %v3465_v31 }
 0x40c   : > { %v4430_v63 = vpop.permute.xlu1 %4429  ;;  %v5258_v10 = vld [vmem:[#allocation5 + $0x114] sm:$0xff] }
 0x40d   : > { %4500 = vst.msk [vmem:[#allocation5 + $0x130] sm:$0xf] %vm3512_vm0, %v4430_v63  ;;  %v4428_v1 = vpop.permute.xlu0 %4427  ;;  %v5256_v33 = vld [vmem:[#allocation5 + $0x108] sm:$0xff] }
 0x40e   : > { %v7829_v34 = vld [vmem:[#allocation5 + $0x10c] ss:$12 sps:$4 sm:$0xff]   ;;  %4499 = vst.msk [vmem:[#allocation5 + $0x124] sm:$0xf] %vm3512_vm0, %v4428_v1  ;;  %v6833_v44 = vcombine.low %v5256_v33, %v5258_v10 }
 0x40f   : > { %5835 = vmatprep.mubr.bf16.mxu1 %v7829_v34  ;;  %v7521_v9 = vpop.f32.mrf.mxu1 }
 0x410   : > { %v3724_v7 = vpop.permute.xlu1 %3723  ;;  %5836 = vmatmul.mubr.bf16.gmra.mxu1 %v6833_v44 }
 0x411   : > { %3795 = vst.msk [vmem:[#allocation5 + $0x12c] sm:$0xf] %vm3769_vm1, %v3724_v7  ;;  %v3722_v40 = vpop.permute.xlu0 %3721  ;;  %v7522_v12 = vpop.f32.mrf.mxu1 }
 0x412   : > { %3794 = vst.msk [vmem:[#allocation5 + $0x120] sm:$0xf] %vm3769_vm1, %v3722_v40  ;;  %v7523_v22 = vadd.f32 %v7522_v12, %v7521_v9 }
 0x413   : > { %v7524_v6 = vpop.f32.mrf.mxu1 }
 0x414   : > { %v4687_v21 = vpop.permute.xlu1 %4686  ;;  %v5774_v60 = vadd.f32 %v7523_v22, %v10037_v4 }
 0x415   : > { %4757 = vst.msk [vmem:[#allocation5 + $0x130] sm:$0xf] %vm3769_vm1, %v4687_v21  ;;  %v4685_v23 = vpop.permute.xlu0 %4684  ;;  %v7525_v48 = vpop.f32.mrf.mxu1 }
 0x416   : > { %4756 = vst.msk [vmem:[#allocation5 + $0x124] sm:$0xf] %vm3769_vm1, %v4685_v23  ;;  %v5935_v25 = vadd.f32 %v10121_v24, %v5774_v60  ;;  %v7526_v35 = vadd.f32 %v7525_v48, %v7524_v6 }
 0x418   : > { %v3981_v47 = vpop.permute.xlu1 %3980  ;;  %v6043_v26 = vmax.f32 %v5935_v25, 0.0  ;;  %v5777_v30 = vadd.f32 %v7526_v35, %v10037_v4 }
 0x419   : > { %4052 = vst.msk [vmem:[#allocation5 + $0x12c] sm:$0xf] %vm4026_vm2, %v3981_v47  ;;  %v3979_v32 = vpop.permute.xlu0 %3978 }
 0x41a   : > { %4051 = vst.msk [vmem:[#allocation5 + $0x120] sm:$0xf] %vm4026_vm2, %v3979_v32  ;;  %6075 = vst [vmem:[%s10061_s17 + $0x30] sm:$0xff] %v6043_v26  ;;  %v5938_v49 = vadd.f32 %v7672_v3, %v5777_v30 }
 0x41c   : > { %v4943_v62 = vpop.permute.xlu1 %4942  ;;  %v6044_v50 = vmax.f32 %v5938_v49, 0.0 }
 0x41d   : > { %5013 = vst.msk [vmem:[#allocation5 + $0x130] sm:$0xf] %vm4026_vm2, %v4943_v62  ;;  %v4941_v61 = vpop.permute.xlu0 %4940 }
 0x41e   : > { %5012 = vst.msk [vmem:[#allocation5 + $0x124] sm:$0xf] %vm4026_vm2, %v4941_v61  ;;  %6076 = vst [vmem:[%s10061_s17 + $0x38] sm:$0xff] %v6044_v50 }
 0x420   : > { %v3471_v14 = vpop.permute.xlu1 %3470 }
 0x421   : > { %3540 = vst.msk [vmem:[#allocation5 + $0x144] sm:$0xf] %vm3512_vm0, %v3471_v14  ;;  %v3469_v19 = vpop.permute.xlu0 %3468 }
 0x422   : > { %3539 = vst.msk [vmem:[#allocation5 + $0x138] sm:$0xf] %vm3512_vm0, %v3469_v19 }
 0x424   : > { %v4434_v59 = vpop.permute.xlu1 %4433  ;;  %v5262_v17 = vld [vmem:[#allocation5 + $0x12c] sm:$0xff] }
 0x425   : > { %4502 = vst.msk [vmem:[#allocation5 + $0x148] sm:$0xf] %vm3512_vm0, %v4434_v59  ;;  %v4432_v58 = vpop.permute.xlu0 %4431  ;;  %v5260_v55 = vld [vmem:[#allocation5 + $0x120] sm:$0xff] }
 0x426   : > { %v7831_v18 = vld [vmem:[#allocation5 + $0x124] ss:$12 sps:$4 sm:$0xff]   ;;  %4501 = vst.msk [vmem:[#allocation5 + $0x13c] sm:$0xf] %vm3512_vm0, %v4432_v58  ;;  %v6836_v27 = vcombine.low %v5260_v55, %v5262_v17  ;;  %v7679_v58 = vpop.f32.mrf.mxu0 }
 0x427   : > { %5843 = vmatprep.mubr.bf16.mxu1 %v7831_v18 }
 0x428   : > { %v3728_v53 = vpop.permute.xlu1 %3727  ;;  %v7527_v24 = vpop.f32.mrf.mxu1  ;;  %5844 = vmatmul.mubr.bf16.gmra.mxu1 %v6836_v27 }
 0x429   : > { %3797 = vst.msk [vmem:[#allocation5 + $0x144] sm:$0xf] %vm3769_vm1, %v3728_v53  ;;  %v3726_v45 = vpop.permute.xlu0 %3725  ;;  %v5958_v53 = vpop.f32.mrf.mxu0 }
 0x42a   : > { %3796 = vst.msk [vmem:[#allocation5 + $0x138] sm:$0xf] %vm3769_vm1, %v3726_v45  ;;  %v7528_v41 = vpop.f32.mrf.mxu1 }
 0x42b   : > { %v7529_v42 = vadd.f32 %v7528_v41, %v7527_v24 }
 0x42c   : > { %v4691_v36 = vpop.permute.xlu1 %4690  ;;  %v7530_v0 = vpop.f32.mrf.mxu1 }
 0x42d   : > { %v5782_v51 = vadd.f32 %v7529_v42, %v10037_v4  ;;  %4759 = vst.msk [vmem:[#allocation5 + $0x148] sm:$0xf] %vm3769_vm1, %v4691_v36  ;;  %v4689_v52 = vpop.permute.xlu0 %4688 }
 0x42e   : > { %4758 = vst.msk [vmem:[#allocation5 + $0x13c] sm:$0xf] %vm3769_vm1, %v4689_v52  ;;  %v7531_v16 = vpop.f32.mrf.mxu1 }
 0x42f   : > { %v5943_v56 = vadd.f32 %v5942_v54, %v5782_v51  ;;  %v7532_v3 = vadd.f32 %v7531_v16, %v7530_v0  ;;  %v7680_v0 = vpop.f32.mrf.mxu0 }
 0x430   : > { %v3985_v39 = vpop.permute.xlu1 %3984 }
 0x431   : > { %v6045_v11 = vmax.f32 %v5943_v56, 0.0  ;;  %v5785_v46 = vadd.f32 %v7532_v3, %v10037_v4  ;;  %4054 = vst.msk [vmem:[#allocation5 + $0x144] sm:$0xf] %vm4026_vm2, %v3985_v39  ;;  %v3983_v20 = vpop.permute.xlu0 %3982 }
 0x432   : > { %4053 = vst.msk [vmem:[#allocation5 + $0x138] sm:$0xf] %vm4026_vm2, %v3983_v20 }
 0x433   : > { %6077 = vst [vmem:[%s10061_s17 + $0x40] sm:$0xff] %v6045_v11  ;;  %v5946_v8 = vadd.f32 %v5945_v38, %v5785_v46  ;;  %v5961_v11 = vpop.f32.mrf.mxu0 }
 0x434   : > { %v4947_v37 = vpop.permute.xlu1 %4946 }
 0x435   : > { %v6046_v15 = vmax.f32 %v5946_v8, 0.0  ;;  %5015 = vst.msk [vmem:[#allocation5 + $0x148] sm:$0xf] %vm4026_vm2, %v4947_v37  ;;  %v4945_v29 = vpop.permute.xlu0 %4944 }
 0x436   : > { %5014 = vst.msk [vmem:[#allocation5 + $0x13c] sm:$0xf] %vm4026_vm2, %v4945_v29 }
 0x437   : > { %6078 = vst [vmem:[%s10061_s17 + $0x48] sm:$0xff] %v6046_v15 }
 0x438   : > { %v3475_v28 = vpop.permute.xlu1 %3474 }
 0x439   : > { %3542 = vst.msk [vmem:[#allocation5 + $0x15c] sm:$0xf] %vm3512_vm0, %v3475_v28  ;;  %v3473_v2 = vpop.permute.xlu0 %3472 }
 0x43a   : > { %3541 = vst.msk [vmem:[#allocation5 + $0x150] sm:$0xf] %vm3512_vm0, %v3473_v2 }
 0x43c   : > { %v4438_v5 = vpop.permute.xlu1 %4437  ;;  %v5266_v13 = vld [vmem:[#allocation5 + $0x144] sm:$0xff] }
 0x43d   : > { %4504 = vst.msk [vmem:[#allocation5 + $0x160] sm:$0xf] %vm3512_vm0, %v4438_v5  ;;  %v4436_v31 = vpop.permute.xlu0 %4435  ;;  %v5264_v63 = vld [vmem:[#allocation5 + $0x138] sm:$0xff] }
 0x43e   : > { %v7833_v10 = vld [vmem:[#allocation5 + $0x13c] ss:$12 sps:$4 sm:$0xff]   ;;  %4503 = vst.msk [vmem:[#allocation5 + $0x154] sm:$0xf] %vm3512_vm0, %v4436_v31  ;;  %v6839_v1 = vcombine.low %v5264_v63, %v5266_v13 }
 0x43f   : > { %5851 = vmatprep.mubr.bf16.mxu1 %v7833_v10  ;;  %v7533_v34 = vpop.f32.mrf.mxu1 }
 0x440   : > { %v3732_v33 = vpop.permute.xlu1 %3731  ;;  %5852 = vmatmul.mubr.bf16.gmra.mxu1 %v6839_v1 }
 0x441   : > { %3799 = vst.msk [vmem:[#allocation5 + $0x15c] sm:$0xf] %vm3769_vm1, %v3732_v33  ;;  %v3730_v44 = vpop.permute.xlu0 %3729  ;;  %v7534_v7 = vpop.f32.mrf.mxu1 }
 0x442   : > { %3798 = vst.msk [vmem:[#allocation5 + $0x150] sm:$0xf] %vm3769_vm1, %v3730_v44  ;;  %v7535_v9 = vadd.f32 %v7534_v7, %v7533_v34  ;;  %v7683_v7 = vpop.f32.mrf.mxu0 }
 0x443   : > { %v7536_v12 = vpop.f32.mrf.mxu1 }
 0x444   : > { %v4695_v40 = vpop.permute.xlu1 %4694  ;;  %v5790_v22 = vadd.f32 %v7535_v9, %v10037_v4 }
 0x445   : > { %4761 = vst.msk [vmem:[#allocation5 + $0x160] sm:$0xf] %vm3769_vm1, %v4695_v40  ;;  %v4693_v21 = vpop.permute.xlu0 %4692  ;;  %v7537_v6 = vpop.f32.mrf.mxu1 }
 0x446   : > { %4760 = vst.msk [vmem:[#allocation5 + $0x154] sm:$0xf] %vm3769_vm1, %v4693_v21  ;;  %v5951_v60 = vadd.f32 %v10156_v57, %v5790_v22  ;;  %v7538_v23 = vadd.f32 %v7537_v6, %v7536_v12  ;;  %v5974_v40 = vpop.f32.mrf.mxu0 }
 0x448   : > { %v3989_v48 = vpop.permute.xlu1 %3988  ;;  %v6047_v25 = vmax.f32 %v5951_v60, 0.0  ;;  %v5793_v35 = vadd.f32 %v7538_v23, %v10037_v4  ;;  %v7684_v60 = vpop.f32.mrf.mxu0 }
 0x449   : > { %4056 = vst.msk [vmem:[#allocation5 + $0x15c] sm:$0xf] %vm4026_vm2, %v3989_v48  ;;  %v3987_v47 = vpop.permute.xlu0 %3986 }
 0x44a   : > { %4055 = vst.msk [vmem:[#allocation5 + $0x150] sm:$0xf] %vm4026_vm2, %v3987_v47  ;;  %6079 = vst [vmem:[%s10061_s17 + $0x50] sm:$0xff] %v6047_v25  ;;  %v5954_v26 = vadd.f32 %v7676_v43, %v5793_v35 }
 0x44c   : > { %v4951_v30 = vpop.permute.xlu1 %4950  ;;  %v6048_v32 = vmax.f32 %v5954_v26, 0.0  ;;  %v5977_v26 = vpop.f32.mrf.mxu0 }
 0x44d   : > { %5017 = vst.msk [vmem:[#allocation5 + $0x160] sm:$0xf] %vm4026_vm2, %v4951_v30  ;;  %v4949_v49 = vpop.permute.xlu0 %4948 }
 0x44e   : > { %5016 = vst.msk [vmem:[#allocation5 + $0x154] sm:$0xf] %vm4026_vm2, %v4949_v49  ;;  %6080 = vst [vmem:[%s10061_s17 + $0x58] sm:$0xff] %v6048_v32 }
 0x450   : > { %v3479_v62 = vpop.permute.xlu1 %3478 }
 0x451   : > { %3544 = vst.msk [vmem:[#allocation5 + $0x174] sm:$0xf] %vm3512_vm0, %v3479_v62  ;;  %v3477_v50 = vpop.permute.xlu0 %3476 }
 0x452   : > { %3543 = vst.msk [vmem:[#allocation5 + $0x168] sm:$0xf] %vm3512_vm0, %v3477_v50 }
 0x454   : > { %v4442_v61 = vpop.permute.xlu1 %4441  ;;  %v5270_v14 = vld [vmem:[#allocation5 + $0x15c] sm:$0xff] }
 0x455   : > { %4506 = vst.msk [vmem:[#allocation5 + $0x178] sm:$0xf] %vm3512_vm0, %v4442_v61  ;;  %v4440_v19 = vpop.permute.xlu0 %4439  ;;  %v5268_v59 = vld [vmem:[#allocation5 + $0x150] sm:$0xff] }
 0x456   : > { %v7835_v17 = vld [vmem:[#allocation5 + $0x154] ss:$12 sps:$4 sm:$0xff]   ;;  %4505 = vst.msk [vmem:[#allocation5 + $0x16c] sm:$0xf] %vm3512_vm0, %v4440_v19  ;;  %v6842_v55 = vcombine.low %v5268_v59, %v5270_v14 }
 0x457   : > { %5859 = vmatprep.mubr.bf16.mxu1 %v7835_v17  ;;  %v7539_v57 = vpop.f32.mrf.mxu1 }
 0x458   : > { %v3736_v18 = vpop.permute.xlu1 %3735  ;;  %5860 = vmatmul.mubr.bf16.gmra.mxu1 %v6842_v55 }
 0x459   : > { %3801 = vst.msk [vmem:[#allocation5 + $0x174] sm:$0xf] %vm3769_vm1, %v3736_v18  ;;  %v3734_v27 = vpop.permute.xlu0 %3733  ;;  %v7540_v24 = vpop.f32.mrf.mxu1 }
 0x45a   : > { %3800 = vst.msk [vmem:[#allocation5 + $0x168] sm:$0xf] %vm3769_vm1, %v3734_v27  ;;  %v7541_v45 = vadd.f32 %v7540_v24, %v7539_v57  ;;  %v7687_v27 = vpop.f32.mrf.mxu0 }
 0x45b   : > { %v7542_v41 = vpop.f32.mrf.mxu1 }
 0x45c   : > { %v4699_v54 = vpop.permute.xlu1 %4698  ;;  %v5798_v42 = vadd.f32 %v7541_v45, %v10037_v4  ;;  %v5990_v24 = vpop.f32.mrf.mxu0 }
 0x45d   : > { %4763 = vst.msk [vmem:[#allocation5 + $0x178] sm:$0xf] %vm3769_vm1, %v4699_v54  ;;  %v4697_v36 = vpop.permute.xlu0 %4696  ;;  %v7543_v51 = vpop.f32.mrf.mxu1 }
 0x45e   : > { %4762 = vst.msk [vmem:[#allocation5 + $0x16c] sm:$0xf] %vm3769_vm1, %v4697_v36  ;;  %v5959_v52 = vadd.f32 %v5958_v53, %v5798_v42  ;;  %v7544_v43 = vadd.f32 %v7543_v51, %v7542_v41  ;;  %v7688_v36 = vpop.f32.mrf.mxu0 }
 0x460   : > { %v3993_v16 = vpop.permute.xlu1 %3992  ;;  %v6049_v56 = vmax.f32 %v5959_v52, 0.0  ;;  %v5801_v3 = vadd.f32 %v7544_v43, %v10037_v4 }
 0x461   : > { %4058 = vst.msk [vmem:[#allocation5 + $0x174] sm:$0xf] %vm4026_vm2, %v3993_v16  ;;  %v3991_v39 = vpop.permute.xlu0 %3990 }
 0x462   : > { %4057 = vst.msk [vmem:[#allocation5 + $0x168] sm:$0xf] %vm4026_vm2, %v3991_v39  ;;  %6081 = vst [vmem:[%s10061_s17 + $0x60] sm:$0xff] %v6049_v56  ;;  %v5962_v46 = vadd.f32 %v5961_v11, %v5801_v3  ;;  %v5993_v56 = vpop.f32.mrf.mxu0 }
 0x464   : > { %v4955_v20 = vpop.permute.xlu1 %4954  ;;  %v6050_v38 = vmax.f32 %v5962_v46, 0.0 }
 0x465   : > { %5019 = vst.msk [vmem:[#allocation5 + $0x178] sm:$0xf] %vm4026_vm2, %v4955_v20  ;;  %v4953_v8 = vpop.permute.xlu0 %4952 }
 0x466   : > { %5018 = vst.msk [vmem:[#allocation5 + $0x16c] sm:$0xf] %vm4026_vm2, %v4953_v8  ;;  %6082 = vst [vmem:[%s10061_s17 + $0x68] sm:$0xff] %v6050_v38 }
 0x469   : > { %v7840_v15 = vld [vmem:[#allocation5 + $0x168] ss:$12 sps:$4 sm:$0xff]  }
 0x46d   : > { %v7838_v37 = vld [vmem:[#allocation5 + $0x16c] ss:$12 sps:$4 sm:$0xff]  }
 0x46e   : > { %5867 = vmatprep.mubr.bf16.mxu1 %v7838_v37 }
 0x46f   : > { %5868 = vmatmul.mubr.bf16.gmra.mxu1 %v7840_v15 }
 0x470   : > { %v7545_v29 = vpop.f32.mrf.mxu1 }
 0x472   : > { %v7546_v28 = vpop.f32.mrf.mxu1 }
 0x473   : > { %v7547_v2 = vadd.f32 %v7546_v28, %v7545_v29 }
 0x474   : > { %v7548_v5 = vpop.f32.mrf.mxu1 }
 0x475   : > { %v5806_v13 = vadd.f32 %v7547_v2, %v10037_v4 }
 0x476   : > { %v7549_v31 = vpop.f32.mrf.mxu1 }
 0x477   : > { %v5967_v63 = vadd.f32 %v7679_v58, %v5806_v13  ;;  %v7550_v10 = vadd.f32 %v7549_v31, %v7548_v5  ;;  %v7691_v31 = vpop.f32.mrf.mxu0 }
 0x479   : > { %v6051_v1 = vmax.f32 %v5967_v63, 0.0  ;;  %v5809_v33 = vadd.f32 %v7550_v10, %v10037_v4  ;;  %v6006_v10 = vpop.f32.mrf.mxu0 }
 0x47b   : > { %6083 = vst [vmem:[%s10061_s17 + $0x70] sm:$0xff] %v6051_v1  ;;  %v5970_v34 = vadd.f32 %v7680_v0, %v5809_v33 }
 0x47d   : > { %v6052_v44 = vmax.f32 %v5970_v34, 0.0 }
 0x47f   : > { %6084 = vst [vmem:[%s10061_s17 + $0x78] sm:$0xff] %v6052_v44 }
 0x488   : > { %v7551_v9 = vpop.f32.mrf.mxu1 }
 0x48a   : > { %v7552_v12 = vpop.f32.mrf.mxu1 }
 0x48b   : > { %v7553_v22 = vadd.f32 %v7552_v12, %v7551_v9 }
 0x48c   : > { %v7554_v21 = vpop.f32.mrf.mxu1 }
 0x48d   : > { %v5814_v6 = vadd.f32 %v7553_v22, %v10037_v4 }
 0x48e   : > { %v7555_v23 = vpop.f32.mrf.mxu1 }
 0x48f   : > { %v5975_v48 = vadd.f32 %v5974_v40, %v5814_v6  ;;  %v7556_v25 = vadd.f32 %v7555_v23, %v7554_v21 }
 0x491   : > { %v6053_v35 = vmax.f32 %v5975_v48, 0.0  ;;  %v5817_v47 = vadd.f32 %v7556_v25, %v10037_v4 }
 0x493   : > { %6085 = vst [vmem:[%s10061_s17 + $0x80] sm:$0xff] %v6053_v35  ;;  %v5978_v30 = vadd.f32 %v5977_v26, %v5817_v47 }
 0x495   : > { %v6054_v32 = vmax.f32 %v5978_v30, 0.0 }
 0x497   : > { %6086 = vst [vmem:[%s10061_s17 + $0x88] sm:$0xff] %v6054_v32 }
 0x4a0   : > { %v7557_v49 = vpop.f32.mrf.mxu1 }
 0x4a2   : > { %v7558_v62 = vpop.f32.mrf.mxu1 }
 0x4a3   : > { %v7559_v50 = vadd.f32 %v7558_v62, %v7557_v49 }
 0x4a4   : > { %v7560_v61 = vpop.f32.mrf.mxu1 }
 0x4a5   : > { %v5822_v14 = vadd.f32 %v7559_v50, %v10037_v4 }
 0x4a6   : > { %v7561_v19 = vpop.f32.mrf.mxu1 }
 0x4a7   : > { %v5983_v59 = vadd.f32 %v7683_v7, %v5822_v14  ;;  %v7562_v17 = vadd.f32 %v7561_v19, %v7560_v61  ;;  %v7692_v7 = vpop.f32.mrf.mxu0 }
 0x4a9   : > { %v6055_v58 = vmax.f32 %v5983_v59, 0.0  ;;  %v5825_v55 = vadd.f32 %v7562_v17, %v10037_v4  ;;  %v6009_v6 = vpop.f32.mrf.mxu0 }
 0x4ab   : > { %6087 = vst [vmem:[%s10061_s17 + $0x90] sm:$0xff] %v6055_v58  ;;  %v5986_v18 = vadd.f32 %v7684_v60, %v5825_v55  ;;  %v7695_v19 = vpop.f32.mrf.mxu0 }
 0x4ad   : > { %v6056_v57 = vmax.f32 %v5986_v18, 0.0  ;;  %v6022_v17 = vpop.f32.mrf.mxu0 }
 0x4af   : > { %6088 = vst [vmem:[%s10061_s17 + $0x98] sm:$0xff] %v6056_v57  ;;  %v7696_v57 = vpop.f32.mrf.mxu0 }
 0x4b8   : > { %v7563_v53 = vpop.f32.mrf.mxu1 }
 0x4ba   : > { %v7564_v45 = vpop.f32.mrf.mxu1 }
 0x4bb   : > { %v7565_v54 = vadd.f32 %v7564_v45, %v7563_v53 }
 0x4bc   : > { %v7566_v41 = vpop.f32.mrf.mxu1 }
 0x4bd   : > { %v5830_v42 = vadd.f32 %v7565_v54, %v10037_v4  ;;  %v6025_v54 = vpop.f32.mrf.mxu0 }
 0x4be   : > { %v7567_v0 = vpop.f32.mrf.mxu1 }
 0x4bf   : > { %v5991_v51 = vadd.f32 %v5990_v24, %v5830_v42  ;;  %v7568_v52 = vadd.f32 %v7567_v0, %v7566_v41 }
 0x4c1   : > { %v6057_v43 = vmax.f32 %v5991_v51, 0.0  ;;  %v5833_v16 = vadd.f32 %v7568_v52, %v10037_v4 }
 0x4c3   : > { %6089 = vst [vmem:[%s10061_s17 + $0xa0] sm:$0xff] %v6057_v43  ;;  %v5994_v3 = vadd.f32 %v5993_v56, %v5833_v16 }
 0x4c5   : > { %v6058_v39 = vmax.f32 %v5994_v3, 0.0 }
 0x4c7   : > { %6090 = vst [vmem:[%s10061_s17 + $0xa8] sm:$0xff] %v6058_v39 }
 0x4d0   : > { %v7569_v11 = vpop.f32.mrf.mxu1 }
 0x4d2   : > { %v7570_v46 = vpop.f32.mrf.mxu1 }
 0x4d3   : > { %v7571_v20 = vadd.f32 %v7570_v46, %v7569_v11 }
 0x4d4   : > { %v7572_v38 = vpop.f32.mrf.mxu1 }
 0x4d5   : > { %v5838_v8 = vadd.f32 %v7571_v20, %v10037_v4 }
 0x4d6   : > { %v7573_v37 = vpop.f32.mrf.mxu1 }
 0x4d7   : > { %v5999_v15 = vadd.f32 %v7687_v27, %v5838_v8  ;;  %v7574_v29 = vadd.f32 %v7573_v37, %v7572_v38 }
 0x4d9   : > { %v6059_v28 = vmax.f32 %v5999_v15, 0.0  ;;  %v5841_v2 = vadd.f32 %v7574_v29, %v10037_v4 }
 0x4db   : > { %6091 = vst [vmem:[%s10061_s17 + $0xb0] sm:$0xff] %v6059_v28  ;;  %v6002_v5 = vadd.f32 %v7688_v36, %v5841_v2 }
 0x4dd   : > { %v6060_v13 = vmax.f32 %v6002_v5, 0.0 }
 0x4df   : > { %6092 = vst [vmem:[%s10061_s17 + $0xb8] sm:$0xff] %v6060_v13 }
 0x4e8   : > { %v7575_v63 = vpop.f32.mrf.mxu1 }
 0x4ea   : > { %v7576_v1 = vpop.f32.mrf.mxu1 }
 0x4eb   : > { %v7577_v33 = vadd.f32 %v7576_v1, %v7575_v63 }
 0x4ec   : > { %v7578_v34 = vpop.f32.mrf.mxu1 }
 0x4ed   : > { %v5846_v44 = vadd.f32 %v7577_v33, %v10037_v4 }
 0x4ee   : > { %v7579_v9 = vpop.f32.mrf.mxu1 }
 0x4ef   : > { %v6007_v40 = vadd.f32 %v6006_v10, %v5846_v44  ;;  %v7580_v12 = vadd.f32 %v7579_v9, %v7578_v34 }
 0x4f1   : > { %v6061_v22 = vmax.f32 %v6007_v40, 0.0  ;;  %v5849_v21 = vadd.f32 %v7580_v12, %v10037_v4 }
 0x4f3   : > { %6093 = vst [vmem:[%s10061_s17 + $0xc0] sm:$0xff] %v6061_v22  ;;  %v6010_v60 = vadd.f32 %v6009_v6, %v5849_v21 }
 0x4f5   : > { %v6062_v23 = vmax.f32 %v6010_v60, 0.0 }
 0x4f7   : > { %6094 = vst [vmem:[%s10061_s17 + $0xc8] sm:$0xff] %v6062_v23 }
 0x500   : > { %v7581_v48 = vpop.f32.mrf.mxu1 }
 0x502   : > { %v7582_v25 = vpop.f32.mrf.mxu1 }
 0x503   : > { %v7583_v35 = vadd.f32 %v7582_v25, %v7581_v48 }
 0x504   : > { %v7584_v47 = vpop.f32.mrf.mxu1 }
 0x505   : > { %v5854_v26 = vadd.f32 %v7583_v35, %v10037_v4 }
 0x506   : > { %v7585_v30 = vpop.f32.mrf.mxu1 }
 0x507   : > { %v6015_v32 = vadd.f32 %v7691_v31, %v5854_v26  ;;  %v7586_v49 = vadd.f32 %v7585_v30, %v7584_v47 }
 0x509   : > { %v6063_v62 = vmax.f32 %v6015_v32, 0.0  ;;  %v5857_v50 = vadd.f32 %v7586_v49, %v10037_v4 }
 0x50b   : > { %6095 = vst [vmem:[%s10061_s17 + $0xd0] sm:$0xff] %v6063_v62  ;;  %v6018_v61 = vadd.f32 %v7692_v7, %v5857_v50 }
 0x50d   : > { %v6064_v14 = vmax.f32 %v6018_v61, 0.0 }
 0x50f   : > { %6096 = vst [vmem:[%s10061_s17 + $0xd8] sm:$0xff] %v6064_v14 }
 0x518   : > { %v7587_v59 = vpop.f32.mrf.mxu1 }
 0x51a   : > { %v7588_v58 = vpop.f32.mrf.mxu1 }
 0x51b   : > { %v7589_v55 = vadd.f32 %v7588_v58, %v7587_v59 }
 0x51c   : > { %v7590_v18 = vpop.f32.mrf.mxu1 }
 0x51d   : > { %v5862_v27 = vadd.f32 %v7589_v55, %v10037_v4 }
 0x51e   : > { %v7591_v53 = vpop.f32.mrf.mxu1 }
 0x51f   : > { %v7592_v24 = vadd.f32 %v7591_v53, %v7590_v18  ;;  %v6023_v45 = vadd.f32 %v6022_v17, %v5862_v27 }
 0x521   : > { %v6065_v41 = vmax.f32 %v6023_v45, 0.0  ;;  %v5865_v42 = vadd.f32 %v7592_v24, %v10037_v4 }
 0x523   : > { %6097 = vst [vmem:[%s10061_s17 + $0xe0] sm:$0xff] %v6065_v41  ;;  %v6026_v36 = vadd.f32 %v6025_v54, %v5865_v42 }
 0x525   : > { %v6066_v0 = vmax.f32 %v6026_v36, 0.0 }
 0x527   : > { %6098 = vst [vmem:[%s10061_s17 + $0xe8] sm:$0xff] %v6066_v0 }
 0x52f   : > { %v7593_v51 = vpop.f32.mrf.mxu1 }
 0x531   : > { %v7594_v52 = vpop.f32.mrf.mxu1 }
 0x532   : > { %v7595_v43 = vadd.f32 %v7594_v52, %v7593_v51 }
 0x533   : > { %v7596_v16 = vpop.f32.mrf.mxu1 }
 0x534   : > { %v5870_v56 = vadd.f32 %v7595_v43, %v10037_v4 }
 0x535   : > { %v7597_v3 = vpop.f32.mrf.mxu1 }
 0x536   : > { %v6031_v39 = vadd.f32 %v7695_v19, %v5870_v56  ;;  %v7598_v11 = vadd.f32 %v7597_v3, %v7596_v16 }
 0x538   : > { %v6067_v46 = vmax.f32 %v6031_v39, 0.0  ;;  %v5873_v20 = vadd.f32 %v7598_v11, %v10037_v4 }
 0x53a   : > { %6099 = vst [vmem:[%s10061_s17 + $0xf0] sm:$0xff] %v6067_v46  ;;  %v6034_v38 = vadd.f32 %v7696_v57, %v5873_v20 }
 0x53c   : > { %v6068_v8 = vmax.f32 %v6034_v38, 0.0 }
 0x53e   : > { %6100 = vst [vmem:[%s10061_s17 + $0xf8] sm:$0xff] %v6068_v8 }
 0x53f   : > { %7855 = shalt.err (!%p7852_p3)
}
 0x540   : > { %s7856_s9 = scalar_lea.hbm %s10244_s26, 4096  ;;  %s7860_s12 = scalar_lea.hbm %s10296_s5, 8192 }
 0x541   : > { %p7857_p4 = scmp.ne.s32.totalorder %s10244_s26, %s7856_s9  ;;  %p7861_p9 = scmp.lt.s32.totalorder %s10244_s26, %s10296_s5 }
 0x542   : > { %p7862_p10 = scmp.lt.s32.totalorder %s7860_s12, %s7856_s9 }
 0x543   : > { %p7858_p7 = pnand %p7857_p4, %p7988_p5 }
 0x544   : > { %p7863_p11 = por %p7862_p10, %p7861_p9 }
 0x545   : > { %p7859_p8 = pneg %p7858_p7 }
 0x547   : > { %p7864_p12 = pnand %p7863_p11, %p7859_p8 }
 0x549   : > { %7867 = shalt.err (!%p7864_p12)
}
 0x54a   : > { %s7918_s17 = smov 128   ;;  %s7919_s16 = smov 8  }
 0x54b   : > { %7697 = dma.vmem_to_hbm [thread:$0]  (%p7988_p5), %s10246_s13, 4096, %s10244_s26, %s10251_s30, %s7918_s17, %s7918_s17, %s7919_s16  }
 0x54c PF: > { %p7703_p13 = scmp.ge.s32.totalorder %s7902_s21, 2  ;;  %s6130_s23 = sand.u32 1, %s7890_s18  }
 0x54d   : > { %s6131_s25 = scalar_lea.sflag [#allocation7], %s6130_s23 }
 0x54e   : > { %p7700_p0 = pnand %p7703_p13, %p7992_p6 }
 0x550   : > { %p7701_p1 = pneg %p7700_p0 }
 0x552   : > { %7885 = dma.done.wait (%p7701_p1), %s6131_s25, 4096  }
 0x553   : > { %7887 = vsyncadd (%p7701_p1), %s6131_s25, 4294963200  ;;  %p15_p2 = scmp.ge.s32.totalorder %s7975_s24, 4   ;;  %s10299_s18 = smov %s7894_s19 }
 0x554   : > { %s10300_s19 = smov %s7898_s20  ;;  %s10301_s20 = smov %s7986_s27 }
 0x555   : > { %s10302_s21 = smov %s7975_s24  ;;  %17 = sbr.rel (!%p15_p2) target bundleno = 3 (0x3), region = 79 }
 0x55a   :  { %6136 = vsyncpa [#allocation7], 1 }
 0x55b   :  { %6138 = vsyncpa [#allocation7 + $0x1], 1 }

</bundles_post_ra>
